<compile_context>
chip_gen: v6e
topology: v6e:2x2x1
jax: 0.10.0
libtpu: 0.0.40
codegen_flags: <defaults>
</compile_context>

<pallas_src>
import functools
import math

import jax
import jax.numpy as jnp
from jax.experimental import pallas as pl
from jax.experimental.pallas import tpu as pltpu

NEG_INF = -1e30      # python float (NOT a jnp array -> no captured-constant error)
LN_EPS = 1e-5        # nn.LayerNorm default


# --------------------------- in-kernel math helpers ------------------------- #

def _ln(y, g, b):
    mu = jnp.mean(y, axis=-1, keepdims=True)
    var = jnp.mean(jnp.square(y - mu), axis=-1, keepdims=True)
    return (y - mu) * jax.lax.rsqrt(var + LN_EPS) * g + b


def _mm(a, w):
    # bf16 x bf16 MXU matmul with f32 accumulation.
    return jnp.dot(a.astype(jnp.bfloat16), w, preferred_element_type=jnp.float32)


def _attn_into(att_ref, q_cols, k_cols, v_cols, *, num_heads, batch, lq, lk,
               bias=None, causal=False):
    """Multi-head attention with heads/batches handled by static 2-D slices.

    q_cols: (batch*lq, H*Dh); k_cols/v_cols: (batch*lk, H*Dh).  The softmax scale
    is already folded into the Q projection.  Per-head outputs are written into
    att_ref, a (batch*lq, H*Dh) f32 VMEM scratch (head merge = column slices).
    """
    dh = q_cols.shape[-1] // num_heads
    if causal:
        row = jax.lax.broadcasted_iota(jnp.int32, (lq, lk), 0)
        col = jax.lax.broadcasted_iota(jnp.int32, (lq, lk), 1)
        cmask = col > row
    for b in range(batch):                      # static python loops (tiny N, H)
        qrows = slice(b * lq, (b + 1) * lq)
        krows = slice(b * lk, (b + 1) * lk)
        for h in range(num_heads):
            cols = slice(h * dh, (h + 1) * dh)
            q = q_cols[qrows, cols].astype(jnp.bfloat16)     # (lq, dh)
            k = k_cols[krows, cols].astype(jnp.bfloat16)     # (lk, dh)
            v = v_cols[krows, cols].astype(jnp.bfloat16)     # (lk, dh)
            s = jax.lax.dot_general(q, k, (((1,), (1,)), ((), ())),
                                    preferred_element_type=jnp.float32)  # (lq, lk)
            if bias is not None:
                s = s + bias[b:b + 1, :]                     # (1, lk) key-pad bias
            if causal:
                s = jnp.where(cmask, NEG_INF, s)
            m = jnp.max(s, axis=-1, keepdims=True)
            p = jnp.exp(s - m)
            p = p * pl.reciprocal(jnp.sum(p, axis=-1, keepdims=True), approx=True)
            att_ref[qrows, cols] = jnp.dot(p.astype(jnp.bfloat16), v,
                                           preferred_element_type=jnp.float32)


# ------------------------------ fused kernels ------------------------------- #

def encoder_kernel(bias_ref, x0_ref,
                   in_w, in_b, out_w, out_b, w1, b1, w2, b2,
                   ln1_g, ln1_b, ln2_g, ln2_b, lnf_g, lnf_b,
                   y_ref, att_ref, *, num_heads, batch, seq):
    """One grid step == one encoder layer; y_ref is the layer-carried activation."""
    l = pl.program_id(0)

    @pl.when(l == 0)
    def _():
        y_ref[...] = x0_ref[...]

    x = y_ref[...]                                            # (N*S, E) f32
    e = x.shape[-1]

    # self-attention (fused QKV projection; scale folded into Q weights)
    qkv = _mm(x, in_w[...]) + in_b[...]                       # (N*S, 3E)
    _attn_into(att_ref, qkv[:, :e], qkv[:, e:2 * e], qkv[:, 2 * e:],
               num_heads=num_heads, batch=batch, lq=seq, lk=seq,
               bias=bias_ref[...])
    y = _ln(_mm(att_ref[...], out_w[...]) + out_b[...] + x, ln1_g[...], ln1_b[...])

    # feed-forward + residual + LN  (dropout = identity in eval mode)
    h = jnp.maximum(_mm(y, w1[...]) + b1[...], 0.0)
    z = _ln(_mm(h, w2[...]) + b2[...] + y, ln2_g[...], ln2_b[...])

    last = pl.num_programs(0) - 1

    @pl.when(l != last)
    def _():
        y_ref[...] = z

    @pl.when(l == last)
    def _():
        y_ref[...] = _ln(z, lnf_g[...], lnf_b[...])           # encoder final norm


def decoder_kernel(y0_ref, mem_ref,
                   sa_in_w, sa_in_b, sa_out_w, sa_out_b,
                   ca_q_w, ca_q_b, ca_kv_w, ca_kv_b, ca_out_w, ca_out_b,
                   w1, b1, w2, b2,
                   ln1_g, ln1_b, ln2_g, ln2_b, ln3_g, ln3_b,
                   lnf_g, lnf_b, fc_w, fc_b,
                   logits_ref, carry_ref, att_ref,
                   *, num_heads, batch, tgt_len, src_len):
    """One grid step == one decoder layer; carry in VMEM scratch; last step also
    applies the decoder final norm and the (lane-dense, padded) fc_out projection."""
    l = pl.program_id(0)

    @pl.when(l == 0)
    def _():
        carry_ref[...] = y0_ref[...]

    y = carry_ref[...]                                        # (N*T, E)
    mem = mem_ref[...]                                        # (N*S, E)
    e = y.shape[-1]

    # causal self-attention
    qkv = _mm(y, sa_in_w[...]) + sa_in_b[...]
    _attn_into(att_ref, qkv[:, :e], qkv[:, e:2 * e], qkv[:, 2 * e:],
               num_heads=num_heads, batch=batch, lq=tgt_len, lk=tgt_len,
               causal=True)
    y1 = _ln(_mm(att_ref[...], sa_out_w[...]) + sa_out_b[...] + y,
             ln1_g[...], ln1_b[...])

    # cross-attention (memory_key_padding_mask is None in the reference forward)
    q = _mm(y1, ca_q_w[...]) + ca_q_b[...]
    kv = _mm(mem, ca_kv_w[...]) + ca_kv_b[...]
    _attn_into(att_ref, q, kv[:, :e], kv[:, e:],
               num_heads=num_heads, batch=batch, lq=tgt_len, lk=src_len)
    y2 = _ln(_mm(att_ref[...], ca_out_w[...]) + ca_out_b[...] + y1,
             ln2_g[...], ln2_b[...])

    # feed-forward
    h = jnp.maximum(_mm(y2, w1[...]) + b1[...], 0.0)
    y3 = _ln(_mm(h, w2[...]) + b2[...] + y2, ln3_g[...], ln3_b[...])
    carry_ref[...] = y3

    @pl.when(l == pl.num_programs(0) - 1)
    def _():
        yn = _ln(y3, lnf_g[...], lnf_b[...])                  # decoder final norm
        logits_ref[...] = _mm(yn, fc_w[...]) + fc_b[...]      # (N*T, V_pad)


# ------------------------------ pallas_call wrappers ------------------------ #

ENC_WKEYS = ("in_w", "in_b", "out_w", "out_b", "w1", "b1", "w2", "b2",
             "ln1_g", "ln1_b", "ln2_g", "ln2_b")
DEC_WKEYS = ("sa_in_w", "sa_in_b", "sa_out_w", "sa_out_b",
             "ca_q_w", "ca_q_b", "ca_kv_w", "ca_kv_b", "ca_out_w", "ca_out_b",
             "w1", "b1", "w2", "b2",
             "ln1_g", "ln1_b", "ln2_g", "ln2_b", "ln3_g", "ln3_b")


def _layer_spec(shape):
    nd = len(shape)
    return pl.BlockSpec((None,) + tuple(shape[1:]),
                        lambda l, _nd=nd: (l,) + (0,) * (_nd - 1))


def _full_spec(shape):
    nd = len(shape)
    return pl.BlockSpec(tuple(shape), lambda l, _nd=nd: (0,) * _nd)


def run_encoder(x0, pad_bias, p, *, num_heads, batch, seq):
    n_layers = p["in_w"].shape[0]
    embed = x0.shape[-1]
    inputs = [pad_bias, x0] + [p[k] for k in ENC_WKEYS] + [p["lnf_g"], p["lnf_b"]]
    in_specs = ([_full_spec(pad_bias.shape), _full_spec(x0.shape)]
                + [_layer_spec(p[k].shape) for k in ENC_WKEYS]
                + [_full_spec(p["lnf_g"].shape), _full_spec(p["lnf_b"].shape)])
    kern = functools.partial(encoder_kernel, num_heads=num_heads,
                             batch=batch, seq=seq)
    return pl.pallas_call(
        kern,
        grid=(n_layers,),
        in_specs=in_specs,
        out_specs=_full_spec(x0.shape),
        out_shape=jax.ShapeDtypeStruct(x0.shape, jnp.float32),
        scratch_shapes=[pltpu.VMEM((batch * seq, embed), jnp.float32)],
        compiler_params=pltpu.CompilerParams(dimension_semantics=("arbitrary",)),
    )(*inputs)


def run_decoder(y0, memory, p, *, num_heads, batch, tgt_len, src_len):
    n_layers = p["sa_in_w"].shape[0]
    embed = y0.shape[-1]
    v_pad = p["fc_w"].shape[-1]
    inputs = ([y0, memory] + [p[k] for k in DEC_WKEYS]
              + [p["lnf_g"], p["lnf_b"], p["fc_w"], p["fc_b"]])
    in_specs = ([_full_spec(y0.shape), _full_spec(memory.shape)]
                + [_layer_spec(p[k].shape) for k in DEC_WKEYS]
                + [_full_spec(p["lnf_g"].shape), _full_spec(p["lnf_b"].shape),
                   _full_spec(p["fc_w"].shape), _full_spec(p["fc_b"].shape)])
    kern = functools.partial(decoder_kernel, num_heads=num_heads, batch=batch,
                             tgt_len=tgt_len, src_len=src_len)
    return pl.pallas_call(
        kern,
        grid=(n_layers,),
        in_specs=in_specs,
        out_specs=_full_spec((batch * tgt_len, v_pad)),
        out_shape=jax.ShapeDtypeStruct((batch * tgt_len, v_pad), jnp.float32),
        scratch_shapes=[pltpu.VMEM((batch * tgt_len, embed), jnp.float32),
                        pltpu.VMEM((batch * tgt_len, embed), jnp.float32)],
        compiler_params=pltpu.CompilerParams(dimension_semantics=("arbitrary",)),
    )(*inputs)


# ------------------------------ Parameters ---------------------------------- #

def init_params(key, E, src_vocab, trg_vocab, max_len, n_enc, n_dec, d_ff, num_heads):
    keys = iter(jax.random.split(key, 64))
    dh = E // num_heads
    scale_q = 1.0 / math.sqrt(dh)          # folded into Q projection weights

    def randf(shape, std=0.02):
        return std * jax.random.normal(next(keys), shape, dtype=jnp.float32)

    def bf(x):
        return x.astype(jnp.bfloat16)

    def zeros(shape):
        return jnp.zeros(shape, jnp.float32)

    def ones(shape):
        return jnp.ones(shape, jnp.float32)

    enc = dict(
        in_w=bf(randf((n_enc, E, 3 * E)).at[:, :, :E].multiply(scale_q)),
        in_b=zeros((n_enc, 1, 3 * E)),
        out_w=bf(randf((n_enc, E, E))), out_b=zeros((n_enc, 1, E)),
        w1=bf(randf((n_enc, E, d_ff))), b1=zeros((n_enc, 1, d_ff)),
        w2=bf(randf((n_enc, d_ff, E))), b2=zeros((n_enc, 1, E)),
        ln1_g=ones((n_enc, 1, E)), ln1_b=zeros((n_enc, 1, E)),
        ln2_g=ones((n_enc, 1, E)), ln2_b=zeros((n_enc, 1, E)),
        lnf_g=ones((1, E)), lnf_b=zeros((1, E)),
    )

    v_pad = ((trg_vocab + 127) // 128) * 128          # lane-dense fc_out width
    fc_w = jnp.zeros((E, v_pad), jnp.float32).at[:, :trg_vocab].set(
        randf((E, trg_vocab)))

    dec = dict(
        sa_in_w=bf(randf((n_dec, E, 3 * E)).at[:, :, :E].multiply(scale_q)),
        sa_in_b=zeros((n_dec, 1, 3 * E)),
        sa_out_w=bf(randf((n_dec, E, E))), sa_out_b=zeros((n_dec, 1, E)),
        ca_q_w=bf(randf((n_dec, E, E)) * scale_q), ca_q_b=zeros((n_dec, 1, E)),
        ca_kv_w=bf(randf((n_dec, E, 2 * E))), ca_kv_b=zeros((n_dec, 1, 2 * E)),
        ca_out_w=bf(randf((n_dec, E, E))), ca_out_b=zeros((n_dec, 1, E)),
        w1=bf(randf((n_dec, E, d_ff))), b1=zeros((n_dec, 1, d_ff)),
        w2=bf(randf((n_dec, d_ff, E))), b2=zeros((n_dec, 1, E)),
        ln1_g=ones((n_dec, 1, E)), ln1_b=zeros((n_dec, 1, E)),
        ln2_g=ones((n_dec, 1, E)), ln2_b=zeros((n_dec, 1, E)),
        ln3_g=ones((n_dec, 1, E)), ln3_b=zeros((n_dec, 1, E)),
        lnf_g=ones((1, E)), lnf_b=zeros((1, E)),
        fc_w=bf(fc_w), fc_b=zeros((1, v_pad)),
    )

    return dict(
        src_word_emb=randf((src_vocab, E)), src_pos_emb=randf((max_len, E)),
        trg_word_emb=randf((trg_vocab, E)), trg_pos_emb=randf((max_len, E)),
        enc=enc, dec=dec,
    )


# ------------------------------- Forward ------------------------------------ #

def transformer_forward(params, src, trg, *, num_heads, src_pad_idx, trg_vocab):
    S, N = src.shape
    T, _ = trg.shape
    E = params["src_word_emb"].shape[1]

    # batch-first flattening keeps each batch's rows contiguous for in-kernel
    # per-head slicing; it's cheap XLA glue on (N, L) index tensors.
    src_b = src.T                                              # (N, S)
    trg_b = trg.T                                              # (N, T)

    # TODO(synk): embedding gathers stay as plain-JAX jnp.take (no gather-DMA kernel).
    embed_src = (jnp.take(params["src_word_emb"], src_b, axis=0)
                 + params["src_pos_emb"][:S][None, :, :])      # (N, S, E)
    embed_trg = (jnp.take(params["trg_word_emb"], trg_b, axis=0)
                 + params["trg_pos_emb"][:T][None, :, :])      # (N, T, E)
    # dropout on embeddings is identity in eval mode.

    # src key-padding mask as a tiny (N, S) additive bias (broadcast in-kernel).
    pad_bias = jnp.where(src_b == src_pad_idx, NEG_INF, 0.0).astype(jnp.float32)

    memory = run_encoder(embed_src.reshape(N * S, E), pad_bias, params["enc"],
                         num_heads=num_heads, batch=N, seq=S)          # (N*S, E)
    logits = run_decoder(embed_trg.reshape(N * T, E), memory, params["dec"],
                         num_heads=num_heads, batch=N, tgt_len=T, src_len=S)

    out = logits.reshape(N, T, -1)[:, :, :trg_vocab]           # drop vocab padding
    return out.transpose(1, 0, 2)                              # (T, N, trg_vocab)


# --------------------------------- Main ------------------------------------- #

if __name__ == "__main__":
    EMBED = 32
    SRC_VOCAB, TRG_VOCAB = 50, 60
    SRC_PAD_IDX = 0
    NUM_HEADS = 2
    NUM_ENC, NUM_DEC = 2, 2
    DIM_FF = 64            # nn.Transformer's dim_feedforward (forward_expansion arg)
    MAX_LEN = 16
    SRC_LEN, TRG_LEN, BATCH = 10, 8, 2

    key = jax.random.PRNGKey(0)
    pkey, skey, tkey = jax.random.split(key, 3)
    params = init_params(pkey, EMBED, SRC_VOCAB, TRG_VOCAB, MAX_LEN,
                         NUM_ENC, NUM_DEC, DIM_FF, NUM_HEADS)

    src = jax.random.randint(skey, (SRC_LEN, BATCH), 1, SRC_VOCAB, dtype=jnp.int32)
    src = src.at[-2:, :].set(SRC_PAD_IDX)   # exercise the key-padding mask
    trg = jax.random.randint(tkey, (TRG_LEN, BATCH), 1, TRG_VOCAB, dtype=jnp.int32)

    fwd = jax.jit(functools.partial(transformer_forward, num_heads=NUM_HEADS,
                                    src_pad_idx=SRC_PAD_IDX, trg_vocab=TRG_VOCAB))
    out = jax.block_until_ready(fwd(params, src, trg))

    assert out.shape == (TRG_LEN, BATCH, TRG_VOCAB), out.shape
    assert bool(jnp.all(jnp.isfinite(out)))
    print("KERNEL_OK")
</pallas_src>

<mosaic_0001>
module attributes {stable_mosaic.version = 11 : i64} {
  func.func @encoder_kernel(%arg0: i32, %arg1: memref<2x10xf32, #tpu.memory_space<vmem>>, %arg2: memref<20x32xf32, #tpu.memory_space<vmem>>, %arg3: memref<1x32x96xbf16, #tpu.memory_space<vmem>>, %arg4: memref<1x1x96xf32, #tpu.memory_space<vmem>>, %arg5: memref<1x32x32xbf16, #tpu.memory_space<vmem>>, %arg6: memref<1x1x32xf32, #tpu.memory_space<vmem>>, %arg7: memref<1x32x64xbf16, #tpu.memory_space<vmem>>, %arg8: memref<1x1x64xf32, #tpu.memory_space<vmem>>, %arg9: memref<1x64x32xbf16, #tpu.memory_space<vmem>>, %arg10: memref<1x1x32xf32, #tpu.memory_space<vmem>>, %arg11: memref<1x1x32xf32, #tpu.memory_space<vmem>>, %arg12: memref<1x1x32xf32, #tpu.memory_space<vmem>>, %arg13: memref<1x1x32xf32, #tpu.memory_space<vmem>>, %arg14: memref<1x1x32xf32, #tpu.memory_space<vmem>>, %arg15: memref<1x32xf32, #tpu.memory_space<vmem>>, %arg16: memref<1x32xf32, #tpu.memory_space<vmem>>, %arg17: memref<20x32xf32, #tpu.memory_space<vmem>>, %arg18: memref<20x32xf32, #tpu.memory_space<vmem>>) attributes {dimension_semantics = [#tpu.dimension_semantics<arbitrary>], iteration_bounds = array<i64: 2>, scalar_prefetch = 0 : i64, scratch_operands = 1 : i64, tpu.core_type = #tpu.core_type<tc>, window_params = [{pipeline_mode = #tpu.pipeline_mode<synchronous>, transform_indices = @transform_0, window_bounds = array<i64: 2, 10>}, {pipeline_mode = #tpu.pipeline_mode<synchronous>, transform_indices = @transform_1, window_bounds = array<i64: 20, 32>}, {transform_indices = @transform_2, window_bounds = array<i64: 1, 32, 96>}, {transform_indices = @transform_3, window_bounds = array<i64: 1, 1, 96>}, {transform_indices = @transform_4, window_bounds = array<i64: 1, 32, 32>}, {transform_indices = @transform_5, window_bounds = array<i64: 1, 1, 32>}, {transform_indices = @transform_6, window_bounds = array<i64: 1, 32, 64>}, {transform_indices = @transform_7, window_bounds = array<i64: 1, 1, 64>}, {transform_indices = @transform_8, window_bounds = array<i64: 1, 64, 32>}, {transform_indices = @transform_9, window_bounds = array<i64: 1, 1, 32>}, {transform_indices = @transform_10, window_bounds = array<i64: 1, 1, 32>}, {transform_indices = @transform_11, window_bounds = array<i64: 1, 1, 32>}, {transform_indices = @transform_12, window_bounds = array<i64: 1, 1, 32>}, {transform_indices = @transform_13, window_bounds = array<i64: 1, 1, 32>}, {pipeline_mode = #tpu.pipeline_mode<synchronous>, transform_indices = @transform_14, window_bounds = array<i64: 1, 32>}, {pipeline_mode = #tpu.pipeline_mode<synchronous>, transform_indices = @transform_15, window_bounds = array<i64: 1, 32>}, {pipeline_mode = #tpu.pipeline_mode<synchronous>, transform_indices = @transform_16, window_bounds = array<i64: 20, 32>}]} {
    %c0_i32 = arith.constant 0 : i32
    %0 = arith.cmpi eq, %arg0, %c0_i32 : i32
    %1 = arith.extui %0 : i1 to i32
    %c0_i32_0 = arith.constant 0 : i32
    %2 = arith.cmpi ne, %1, %c0_i32_0 : i32
    scf.if %2 {
      %c0_81 = arith.constant 0 : index
      %c0_82 = arith.constant 0 : index
      %195 = vector.load %arg2[%c0_81, %c0_82] : memref<20x32xf32, #tpu.memory_space<vmem>>, vector<20x32xf32>
      %c0_83 = arith.constant 0 : index
      %c0_84 = arith.constant 0 : index
      %196 = vector.load %arg17[%c0_83, %c0_84] : memref<20x32xf32, #tpu.memory_space<vmem>>, vector<20x32xf32>
      tpu.vector_store %arg17[%c0_83, %c0_84], %195 {strides = array<i32>} : memref<20x32xf32, #tpu.memory_space<vmem>>, vector<20x32xf32>,
    } else {
    }
    %c0 = arith.constant 0 : index
    %c0_1 = arith.constant 0 : index
    %3 = vector.load %arg17[%c0, %c0_1] : memref<20x32xf32, #tpu.memory_space<vmem>>, vector<20x32xf32>
    %c0_2 = arith.constant 0 : index
    %c0_3 = arith.constant 0 : index
    %c0_4 = arith.constant 0 : index
    %4 = vector.load %arg3[%c0_2, %c0_3, %c0_4] : memref<1x32x96xbf16, #tpu.memory_space<vmem>>, vector<1x32x96xbf16>
    %5 = vector.shape_cast %4 : vector<1x32x96xbf16> to vector<32x96xbf16>
    %6 = arith.truncf %3 : vector<20x32xf32> to vector<20x32xbf16>
    %cst = arith.constant dense<0.000000e+00> : vector<20x96xf32>
    %7 = tpu.matmul %6, %5, %cst {dimension_numbers = #tpu.dot_dimension_numbers<[1], [0], [0], [1], [0, 0, 1, 1], [], []>} : vector<20x32xbf16>, vector<32x96xbf16>, vector<20x96xf32> -> vector<20x96xf32>
    %c0_5 = arith.constant 0 : index
    %c0_6 = arith.constant 0 : index
    %c0_7 = arith.constant 0 : index
    %8 = vector.load %arg4[%c0_5, %c0_6, %c0_7] : memref<1x1x96xf32, #tpu.memory_space<vmem>>, vector<1x1x96xf32>
    %9 = vector.shape_cast %8 : vector<1x1x96xf32> to vector<1x96xf32>
    %10 = vector.broadcast %9 : vector<1x96xf32> to vector<20x96xf32>
    %11 = arith.addf %7, %10 : vector<20x96xf32>
    %12 = vector.extract_strided_slice %11 {offsets = [0, 0], sizes = [20, 32], strides = [1, 1]} : vector<20x96xf32> to vector<20x32xf32>
    %13 = vector.extract_strided_slice %11 {offsets = [0, 32], sizes = [20, 32], strides = [1, 1]} : vector<20x96xf32> to vector<20x32xf32>
    %14 = vector.extract_strided_slice %11 {offsets = [0, 64], sizes = [20, 32], strides = [1, 1]} : vector<20x96xf32> to vector<20x32xf32>
    %c0_8 = arith.constant 0 : index
    %c0_9 = arith.constant 0 : index
    %15 = vector.load %arg1[%c0_8, %c0_9] : memref<2x10xf32, #tpu.memory_space<vmem>>, vector<2x10xf32>
    %16 = vector.extract_strided_slice %12 {offsets = [0, 0], sizes = [10, 16], strides = [1, 1]} : vector<20x32xf32> to vector<10x16xf32>
    %17 = arith.truncf %16 : vector<10x16xf32> to vector<10x16xbf16>
    %18 = vector.extract_strided_slice %13 {offsets = [0, 0], sizes = [10, 16], strides = [1, 1]} : vector<20x32xf32> to vector<10x16xf32>
    %19 = arith.truncf %18 : vector<10x16xf32> to vector<10x16xbf16>
    %20 = vector.extract_strided_slice %14 {offsets = [0, 0], sizes = [10, 16], strides = [1, 1]} : vector<20x32xf32> to vector<10x16xf32>
    %21 = arith.truncf %20 : vector<10x16xf32> to vector<10x16xbf16>
    %cst_10 = arith.constant dense<0.000000e+00> : vector<10x10xf32>
    %22 = tpu.matmul %17, %19, %cst_10 {dimension_numbers = #tpu.dot_dimension_numbers<[1], [1], [0], [0], [0, 0, 1, 0], [], []>} : vector<10x16xbf16>, vector<10x16xbf16>, vector<10x10xf32> -> vector<10x10xf32>
    %23 = vector.extract_strided_slice %15 {offsets = [0, 0], sizes = [1, 10], strides = [1, 1]} : vector<2x10xf32> to vector<1x10xf32>
    %24 = vector.broadcast %23 : vector<1x10xf32> to vector<10x10xf32>
    %25 = arith.addf %22, %24 : vector<10x10xf32>
    %cst_11 = arith.constant dense<0xFF800000> : vector<10xf32>
    %26 = vector.multi_reduction <maximumf>, %25, %cst_11 [1] : vector<10x10xf32> to vector<10xf32>
    %27 = vector.shape_cast %26 : vector<10xf32> to vector<10x1xf32>
    %28 = vector.broadcast %27 : vector<10x1xf32> to vector<10x10xf32>
    %29 = arith.subf %25, %28 : vector<10x10xf32>
    %30 = math.exp %29 : vector<10x10xf32>
    %cst_12 = arith.constant dense<0.000000e+00> : vector<10xf32>
    %31 = vector.multi_reduction <add>, %30, %cst_12 [1] : vector<10x10xf32> to vector<10xf32>
    %32 = vector.shape_cast %31 : vector<10xf32> to vector<10x1xf32>
    %33 = tpu.reciprocal %32 {approx = true} : vector<10x1xf32> -> vector<10x1xf32>
    %34 = vector.broadcast %33 : vector<10x1xf32> to vector<10x10xf32>
    %35 = arith.mulf %30, %34 : vector<10x10xf32>
    %36 = arith.truncf %35 : vector<10x10xf32> to vector<10x10xbf16>
    %cst_13 = arith.constant dense<0.000000e+00> : vector<10x16xf32>
    %37 = tpu.matmul %36, %21, %cst_13 {dimension_numbers = #tpu.dot_dimension_numbers<[1], [0], [0], [1], [0, 0, 1, 1], [], []>} : vector<10x10xbf16>, vector<10x16xbf16>, vector<10x16xf32> -> vector<10x16xf32>
    %c0_14 = arith.constant 0 : index
    %c0_15 = arith.constant 0 : index
    %38 = vector.load %arg18[%c0_14, %c0_15] : memref<20x32xf32, #tpu.memory_space<vmem>>, vector<10x16xf32>
    tpu.vector_store %arg18[%c0_14, %c0_15], %37 {strides = array<i32>} : memref<20x32xf32, #tpu.memory_space<vmem>>, vector<10x16xf32>,
    %39 = vector.extract_strided_slice %12 {offsets = [0, 16], sizes = [10, 16], strides = [1, 1]} : vector<20x32xf32> to vector<10x16xf32>
    %40 = arith.truncf %39 : vector<10x16xf32> to vector<10x16xbf16>
    %41 = vector.extract_strided_slice %13 {offsets = [0, 16], sizes = [10, 16], strides = [1, 1]} : vector<20x32xf32> to vector<10x16xf32>
    %42 = arith.truncf %41 : vector<10x16xf32> to vector<10x16xbf16>
    %43 = vector.extract_strided_slice %14 {offsets = [0, 16], sizes = [10, 16], strides = [1, 1]} : vector<20x32xf32> to vector<10x16xf32>
    %44 = arith.truncf %43 : vector<10x16xf32> to vector<10x16xbf16>
    %cst_16 = arith.constant dense<0.000000e+00> : vector<10x10xf32>
    %45 = tpu.matmul %40, %42, %cst_16 {dimension_numbers = #tpu.dot_dimension_numbers<[1], [1], [0], [0], [0, 0, 1, 0], [], []>} : vector<10x16xbf16>, vector<10x16xbf16>, vector<10x10xf32> -> vector<10x10xf32>
    %46 = vector.extract_strided_slice %15 {offsets = [0, 0], sizes = [1, 10], strides = [1, 1]} : vector<2x10xf32> to vector<1x10xf32>
    %47 = vector.broadcast %46 : vector<1x10xf32> to vector<10x10xf32>
    %48 = arith.addf %45, %47 : vector<10x10xf32>
    %cst_17 = arith.constant dense<0xFF800000> : vector<10xf32>
    %49 = vector.multi_reduction <maximumf>, %48, %cst_17 [1] : vector<10x10xf32> to vector<10xf32>
    %50 = vector.shape_cast %49 : vector<10xf32> to vector<10x1xf32>
    %51 = vector.broadcast %50 : vector<10x1xf32> to vector<10x10xf32>
    %52 = arith.subf %48, %51 : vector<10x10xf32>
    %53 = math.exp %52 : vector<10x10xf32>
    %cst_18 = arith.constant dense<0.000000e+00> : vector<10xf32>
    %54 = vector.multi_reduction <add>, %53, %cst_18 [1] : vector<10x10xf32> to vector<10xf32>
    %55 = vector.shape_cast %54 : vector<10xf32> to vector<10x1xf32>
    %56 = tpu.reciprocal %55 {approx = true} : vector<10x1xf32> -> vector<10x1xf32>
    %57 = vector.broadcast %56 : vector<10x1xf32> to vector<10x10xf32>
    %58 = arith.mulf %53, %57 : vector<10x10xf32>
    %59 = arith.truncf %58 : vector<10x10xf32> to vector<10x10xbf16>
    %cst_19 = arith.constant dense<0.000000e+00> : vector<10x16xf32>
    %60 = tpu.matmul %59, %44, %cst_19 {dimension_numbers = #tpu.dot_dimension_numbers<[1], [0], [0], [1], [0, 0, 1, 1], [], []>} : vector<10x10xbf16>, vector<10x16xbf16>, vector<10x16xf32> -> vector<10x16xf32>
    %c0_20 = arith.constant 0 : index
    %c16 = arith.constant 16 : index
    %61 = vector.load %arg18[%c0_20, %c16] : memref<20x32xf32, #tpu.memory_space<vmem>>, vector<10x16xf32>
    tpu.vector_store %arg18[%c0_20, %c16], %60 {strides = array<i32>} : memref<20x32xf32, #tpu.memory_space<vmem>>, vector<10x16xf32>,
    %62 = vector.extract_strided_slice %12 {offsets = [10, 0], sizes = [10, 16], strides = [1, 1]} : vector<20x32xf32> to vector<10x16xf32>
    %63 = arith.truncf %62 : vector<10x16xf32> to vector<10x16xbf16>
    %64 = vector.extract_strided_slice %13 {offsets = [10, 0], sizes = [10, 16], strides = [1, 1]} : vector<20x32xf32> to vector<10x16xf32>
    %65 = arith.truncf %64 : vector<10x16xf32> to vector<10x16xbf16>
    %66 = vector.extract_strided_slice %14 {offsets = [10, 0], sizes = [10, 16], strides = [1, 1]} : vector<20x32xf32> to vector<10x16xf32>
    %67 = arith.truncf %66 : vector<10x16xf32> to vector<10x16xbf16>
    %cst_21 = arith.constant dense<0.000000e+00> : vector<10x10xf32>
    %68 = tpu.matmul %63, %65, %cst_21 {dimension_numbers = #tpu.dot_dimension_numbers<[1], [1], [0], [0], [0, 0, 1, 0], [], []>} : vector<10x16xbf16>, vector<10x16xbf16>, vector<10x10xf32> -> vector<10x10xf32>
    %69 = vector.extract_strided_slice %15 {offsets = [1, 0], sizes = [1, 10], strides = [1, 1]} : vector<2x10xf32> to vector<1x10xf32>
    %70 = vector.broadcast %69 : vector<1x10xf32> to vector<10x10xf32>
    %71 = arith.addf %68, %70 : vector<10x10xf32>
    %cst_22 = arith.constant dense<0xFF800000> : vector<10xf32>
    %72 = vector.multi_reduction <maximumf>, %71, %cst_22 [1] : vector<10x10xf32> to vector<10xf32>
    %73 = vector.shape_cast %72 : vector<10xf32> to vector<10x1xf32>
    %74 = vector.broadcast %73 : vector<10x1xf32> to vector<10x10xf32>
    %75 = arith.subf %71, %74 : vector<10x10xf32>
    %76 = math.exp %75 : vector<10x10xf32>
    %cst_23 = arith.constant dense<0.000000e+00> : vector<10xf32>
    %77 = vector.multi_reduction <add>, %76, %cst_23 [1] : vector<10x10xf32> to vector<10xf32>
    %78 = vector.shape_cast %77 : vector<10xf32> to vector<10x1xf32>
    %79 = tpu.reciprocal %78 {approx = true} : vector<10x1xf32> -> vector<10x1xf32>
    %80 = vector.broadcast %79 : vector<10x1xf32> to vector<10x10xf32>
    %81 = arith.mulf %76, %80 : vector<10x10xf32>
    %82 = arith.truncf %81 : vector<10x10xf32> to vector<10x10xbf16>
    %cst_24 = arith.constant dense<0.000000e+00> : vector<10x16xf32>
    %83 = tpu.matmul %82, %67, %cst_24 {dimension_numbers = #tpu.dot_dimension_numbers<[1], [0], [0], [1], [0, 0, 1, 1], [], []>} : vector<10x10xbf16>, vector<10x16xbf16>, vector<10x16xf32> -> vector<10x16xf32>
    %c10 = arith.constant 10 : index
    %c0_25 = arith.constant 0 : index
    %84 = vector.load %arg18[%c10, %c0_25] : memref<20x32xf32, #tpu.memory_space<vmem>>, vector<10x16xf32>
    tpu.vector_store %arg18[%c10, %c0_25], %83 {strides = array<i32>} : memref<20x32xf32, #tpu.memory_space<vmem>>, vector<10x16xf32>,
    %85 = vector.extract_strided_slice %12 {offsets = [10, 16], sizes = [10, 16], strides = [1, 1]} : vector<20x32xf32> to vector<10x16xf32>
    %86 = arith.truncf %85 : vector<10x16xf32> to vector<10x16xbf16>
    %87 = vector.extract_strided_slice %13 {offsets = [10, 16], sizes = [10, 16], strides = [1, 1]} : vector<20x32xf32> to vector<10x16xf32>
    %88 = arith.truncf %87 : vector<10x16xf32> to vector<10x16xbf16>
    %89 = vector.extract_strided_slice %14 {offsets = [10, 16], sizes = [10, 16], strides = [1, 1]} : vector<20x32xf32> to vector<10x16xf32>
    %90 = arith.truncf %89 : vector<10x16xf32> to vector<10x16xbf16>
    %cst_26 = arith.constant dense<0.000000e+00> : vector<10x10xf32>
    %91 = tpu.matmul %86, %88, %cst_26 {dimension_numbers = #tpu.dot_dimension_numbers<[1], [1], [0], [0], [0, 0, 1, 0], [], []>} : vector<10x16xbf16>, vector<10x16xbf16>, vector<10x10xf32> -> vector<10x10xf32>
    %92 = vector.extract_strided_slice %15 {offsets = [1, 0], sizes = [1, 10], strides = [1, 1]} : vector<2x10xf32> to vector<1x10xf32>
    %93 = vector.broadcast %92 : vector<1x10xf32> to vector<10x10xf32>
    %94 = arith.addf %91, %93 : vector<10x10xf32>
    %cst_27 = arith.constant dense<0xFF800000> : vector<10xf32>
    %95 = vector.multi_reduction <maximumf>, %94, %cst_27 [1] : vector<10x10xf32> to vector<10xf32>
    %96 = vector.shape_cast %95 : vector<10xf32> to vector<10x1xf32>
    %97 = vector.broadcast %96 : vector<10x1xf32> to vector<10x10xf32>
    %98 = arith.subf %94, %97 : vector<10x10xf32>
    %99 = math.exp %98 : vector<10x10xf32>
    %cst_28 = arith.constant dense<0.000000e+00> : vector<10xf32>
    %100 = vector.multi_reduction <add>, %99, %cst_28 [1] : vector<10x10xf32> to vector<10xf32>
    %101 = vector.shape_cast %100 : vector<10xf32> to vector<10x1xf32>
    %102 = tpu.reciprocal %101 {approx = true} : vector<10x1xf32> -> vector<10x1xf32>
    %103 = vector.broadcast %102 : vector<10x1xf32> to vector<10x10xf32>
    %104 = arith.mulf %99, %103 : vector<10x10xf32>
    %105 = arith.truncf %104 : vector<10x10xf32> to vector<10x10xbf16>
    %cst_29 = arith.constant dense<0.000000e+00> : vector<10x16xf32>
    %106 = tpu.matmul %105, %90, %cst_29 {dimension_numbers = #tpu.dot_dimension_numbers<[1], [0], [0], [1], [0, 0, 1, 1], [], []>} : vector<10x10xbf16>, vector<10x16xbf16>, vector<10x16xf32> -> vector<10x16xf32>
    %c10_30 = arith.constant 10 : index
    %c16_31 = arith.constant 16 : index
    %107 = vector.load %arg18[%c10_30, %c16_31] : memref<20x32xf32, #tpu.memory_space<vmem>>, vector<10x16xf32>
    tpu.vector_store %arg18[%c10_30, %c16_31], %106 {strides = array<i32>} : memref<20x32xf32, #tpu.memory_space<vmem>>, vector<10x16xf32>,
    %c0_32 = arith.constant 0 : index
    %c0_33 = arith.constant 0 : index
    %108 = vector.load %arg18[%c0_32, %c0_33] : memref<20x32xf32, #tpu.memory_space<vmem>>, vector<20x32xf32>
    %c0_34 = arith.constant 0 : index
    %c0_35 = arith.constant 0 : index
    %c0_36 = arith.constant 0 : index
    %109 = vector.load %arg5[%c0_34, %c0_35, %c0_36] : memref<1x32x32xbf16, #tpu.memory_space<vmem>>, vector<1x32x32xbf16>
    %110 = vector.shape_cast %109 : vector<1x32x32xbf16> to vector<32x32xbf16>
    %111 = arith.truncf %108 : vector<20x32xf32> to vector<20x32xbf16>
    %cst_37 = arith.constant dense<0.000000e+00> : vector<20x32xf32>
    %112 = tpu.matmul %111, %110, %cst_37 {dimension_numbers = #tpu.dot_dimension_numbers<[1], [0], [0], [1], [0, 0, 1, 1], [], []>} : vector<20x32xbf16>, vector<32x32xbf16>, vector<20x32xf32> -> vector<20x32xf32>
    %c0_38 = arith.constant 0 : index
    %c0_39 = arith.constant 0 : index
    %c0_40 = arith.constant 0 : index
    %113 = vector.load %arg6[%c0_38, %c0_39, %c0_40] : memref<1x1x32xf32, #tpu.memory_space<vmem>>, vector<1x1x32xf32>
    %114 = vector.shape_cast %113 : vector<1x1x32xf32> to vector<1x32xf32>
    %115 = vector.broadcast %114 : vector<1x32xf32> to vector<20x32xf32>
    %116 = arith.addf %112, %115 : vector<20x32xf32>
    %117 = arith.addf %116, %3 : vector<20x32xf32>
    %c0_41 = arith.constant 0 : index
    %c0_42 = arith.constant 0 : index
    %c0_43 = arith.constant 0 : index
    %118 = vector.load %arg11[%c0_41, %c0_42, %c0_43] : memref<1x1x32xf32, #tpu.memory_space<vmem>>, vector<1x1x32xf32>
    %119 = vector.shape_cast %118 : vector<1x1x32xf32> to vector<1x32xf32>
    %c0_44 = arith.constant 0 : index
    %c0_45 = arith.constant 0 : index
    %c0_46 = arith.constant 0 : index
    %120 = vector.load %arg12[%c0_44, %c0_45, %c0_46] : memref<1x1x32xf32, #tpu.memory_space<vmem>>, vector<1x1x32xf32>
    %121 = vector.shape_cast %120 : vector<1x1x32xf32> to vector<1x32xf32>
    %cst_47 = arith.constant dense<0.000000e+00> : vector<20xf32>
    %122 = vector.multi_reduction <add>, %117, %cst_47 [1] : vector<20x32xf32> to vector<20xf32>
    %123 = vector.shape_cast %122 : vector<20xf32> to vector<20x1xf32>
    %cst_48 = arith.constant 3.200000e+01 : f32
    %124 = vector.broadcast %cst_48 : f32 to vector<20x1xf32>
    %125 = arith.divf %123, %124 : vector<20x1xf32>
    %126 = vector.broadcast %125 : vector<20x1xf32> to vector<20x32xf32>
    %127 = arith.subf %117, %126 : vector<20x32xf32>
    %128 = arith.mulf %127, %127 : vector<20x32xf32>
    %cst_49 = arith.constant dense<0.000000e+00> : vector<20xf32>
    %129 = vector.multi_reduction <add>, %128, %cst_49 [1] : vector<20x32xf32> to vector<20xf32>
    %130 = vector.shape_cast %129 : vector<20xf32> to vector<20x1xf32>
    %cst_50 = arith.constant 3.200000e+01 : f32
    %131 = vector.broadcast %cst_50 : f32 to vector<20x1xf32>
    %132 = arith.divf %130, %131 : vector<20x1xf32>
    %133 = vector.broadcast %125 : vector<20x1xf32> to vector<20x32xf32>
    %134 = arith.subf %117, %133 : vector<20x32xf32>
    %cst_51 = arith.constant 9.99999974E-6 : f32
    %135 = vector.broadcast %cst_51 : f32 to vector<20x1xf32>
    %136 = arith.addf %132, %135 : vector<20x1xf32>
    %137 = math.rsqrt %136 : vector<20x1xf32>
    %138 = vector.broadcast %137 : vector<20x1xf32> to vector<20x32xf32>
    %139 = arith.mulf %134, %138 : vector<20x32xf32>
    %140 = vector.broadcast %119 : vector<1x32xf32> to vector<20x32xf32>
    %141 = arith.mulf %139, %140 : vector<20x32xf32>
    %142 = vector.broadcast %121 : vector<1x32xf32> to vector<20x32xf32>
    %143 = arith.addf %141, %142 : vector<20x32xf32>
    %c0_52 = arith.constant 0 : index
    %c0_53 = arith.constant 0 : index
    %c0_54 = arith.constant 0 : index
    %144 = vector.load %arg7[%c0_52, %c0_53, %c0_54] : memref<1x32x64xbf16, #tpu.memory_space<vmem>>, vector<1x32x64xbf16>
    %145 = vector.shape_cast %144 : vector<1x32x64xbf16> to vector<32x64xbf16>
    %146 = arith.truncf %143 : vector<20x32xf32> to vector<20x32xbf16>
    %cst_55 = arith.constant dense<0.000000e+00> : vector<20x64xf32>
    %147 = tpu.matmul %146, %145, %cst_55 {dimension_numbers = #tpu.dot_dimension_numbers<[1], [0], [0], [1], [0, 0, 1, 1], [], []>} : vector<20x32xbf16>, vector<32x64xbf16>, vector<20x64xf32> -> vector<20x64xf32>
    %c0_56 = arith.constant 0 : index
    %c0_57 = arith.constant 0 : index
    %c0_58 = arith.constant 0 : index
    %148 = vector.load %arg8[%c0_56, %c0_57, %c0_58] : memref<1x1x64xf32, #tpu.memory_space<vmem>>, vector<1x1x64xf32>
    %149 = vector.shape_cast %148 : vector<1x1x64xf32> to vector<1x64xf32>
    %150 = vector.broadcast %149 : vector<1x64xf32> to vector<20x64xf32>
    %151 = arith.addf %147, %150 : vector<20x64xf32>
    %cst_59 = arith.constant 0.000000e+00 : f32
    %152 = vector.broadcast %cst_59 : f32 to vector<20x64xf32>
    %153 = arith.maximumf %151, %152 : vector<20x64xf32>
    %c0_60 = arith.constant 0 : index
    %c0_61 = arith.constant 0 : index
    %c0_62 = arith.constant 0 : index
    %154 = vector.load %arg9[%c0_60, %c0_61, %c0_62] : memref<1x64x32xbf16, #tpu.memory_space<vmem>>, vector<1x64x32xbf16>
    %155 = vector.shape_cast %154 : vector<1x64x32xbf16> to vector<64x32xbf16>
    %156 = arith.truncf %153 : vector<20x64xf32> to vector<20x64xbf16>
    %cst_63 = arith.constant dense<0.000000e+00> : vector<20x32xf32>
    %157 = tpu.matmul %156, %155, %cst_63 {dimension_numbers = #tpu.dot_dimension_numbers<[1], [0], [0], [1], [0, 0, 1, 1], [], []>} : vector<20x64xbf16>, vector<64x32xbf16>, vector<20x32xf32> -> vector<20x32xf32>
    %c0_64 = arith.constant 0 : index
    %c0_65 = arith.constant 0 : index
    %c0_66 = arith.constant 0 : index
    %158 = vector.load %arg10[%c0_64, %c0_65, %c0_66] : memref<1x1x32xf32, #tpu.memory_space<vmem>>, vector<1x1x32xf32>
    %159 = vector.shape_cast %158 : vector<1x1x32xf32> to vector<1x32xf32>
    %160 = vector.broadcast %159 : vector<1x32xf32> to vector<20x32xf32>
    %161 = arith.addf %157, %160 : vector<20x32xf32>
    %162 = arith.addf %161, %143 : vector<20x32xf32>
    %c0_67 = arith.constant 0 : index
    %c0_68 = arith.constant 0 : index
    %c0_69 = arith.constant 0 : index
    %163 = vector.load %arg13[%c0_67, %c0_68, %c0_69] : memref<1x1x32xf32, #tpu.memory_space<vmem>>, vector<1x1x32xf32>
    %164 = vector.shape_cast %163 : vector<1x1x32xf32> to vector<1x32xf32>
    %c0_70 = arith.constant 0 : index
    %c0_71 = arith.constant 0 : index
    %c0_72 = arith.constant 0 : index
    %165 = vector.load %arg14[%c0_70, %c0_71, %c0_72] : memref<1x1x32xf32, #tpu.memory_space<vmem>>, vector<1x1x32xf32>
    %166 = vector.shape_cast %165 : vector<1x1x32xf32> to vector<1x32xf32>
    %cst_73 = arith.constant dense<0.000000e+00> : vector<20xf32>
    %167 = vector.multi_reduction <add>, %162, %cst_73 [1] : vector<20x32xf32> to vector<20xf32>
    %168 = vector.shape_cast %167 : vector<20xf32> to vector<20x1xf32>
    %cst_74 = arith.constant 3.200000e+01 : f32
    %169 = vector.broadcast %cst_74 : f32 to vector<20x1xf32>
    %170 = arith.divf %168, %169 : vector<20x1xf32>
    %171 = vector.broadcast %170 : vector<20x1xf32> to vector<20x32xf32>
    %172 = arith.subf %162, %171 : vector<20x32xf32>
    %173 = arith.mulf %172, %172 : vector<20x32xf32>
    %cst_75 = arith.constant dense<0.000000e+00> : vector<20xf32>
    %174 = vector.multi_reduction <add>, %173, %cst_75 [1] : vector<20x32xf32> to vector<20xf32>
    %175 = vector.shape_cast %174 : vector<20xf32> to vector<20x1xf32>
    %cst_76 = arith.constant 3.200000e+01 : f32
    %176 = vector.broadcast %cst_76 : f32 to vector<20x1xf32>
    %177 = arith.divf %175, %176 : vector<20x1xf32>
    %178 = vector.broadcast %170 : vector<20x1xf32> to vector<20x32xf32>
    %179 = arith.subf %162, %178 : vector<20x32xf32>
    %cst_77 = arith.constant 9.99999974E-6 : f32
    %180 = vector.broadcast %cst_77 : f32 to vector<20x1xf32>
    %181 = arith.addf %177, %180 : vector<20x1xf32>
    %182 = math.rsqrt %181 : vector<20x1xf32>
    %183 = vector.broadcast %182 : vector<20x1xf32> to vector<20x32xf32>
    %184 = arith.mulf %179, %183 : vector<20x32xf32>
    %185 = vector.broadcast %164 : vector<1x32xf32> to vector<20x32xf32>
    %186 = arith.mulf %184, %185 : vector<20x32xf32>
    %187 = vector.broadcast %166 : vector<1x32xf32> to vector<20x32xf32>
    %188 = arith.addf %186, %187 : vector<20x32xf32>
    %c1_i32 = arith.constant 1 : i32
    %189 = arith.cmpi ne, %arg0, %c1_i32 : i32
    %190 = arith.extui %189 : i1 to i32
    %c0_i32_78 = arith.constant 0 : i32
    %191 = arith.cmpi ne, %190, %c0_i32_78 : i32
    scf.if %191 {
      %c0_81 = arith.constant 0 : index
      %c0_82 = arith.constant 0 : index
      %195 = vector.load %arg17[%c0_81, %c0_82] : memref<20x32xf32, #tpu.memory_space<vmem>>, vector<20x32xf32>
      tpu.vector_store %arg17[%c0_81, %c0_82], %188 {strides = array<i32>} : memref<20x32xf32, #tpu.memory_space<vmem>>, vector<20x32xf32>,
    } else {
    }
    %c1_i32_79 = arith.constant 1 : i32
    %192 = arith.cmpi eq, %arg0, %c1_i32_79 : i32
    %193 = arith.extui %192 : i1 to i32
    %c0_i32_80 = arith.constant 0 : i32
    %194 = arith.cmpi ne, %193, %c0_i32_80 : i32
    scf.if %194 {
      %c0_81 = arith.constant 0 : index
      %c0_82 = arith.constant 0 : index
      %195 = vector.load %arg15[%c0_81, %c0_82] : memref<1x32xf32, #tpu.memory_space<vmem>>, vector<1x32xf32>
      %c0_83 = arith.constant 0 : index
      %c0_84 = arith.constant 0 : index
      %196 = vector.load %arg16[%c0_83, %c0_84] : memref<1x32xf32, #tpu.memory_space<vmem>>, vector<1x32xf32>
      %cst_85 = arith.constant dense<0.000000e+00> : vector<20xf32>
      %197 = vector.multi_reduction <add>, %188, %cst_85 [1] : vector<20x32xf32> to vector<20xf32>
      %198 = vector.shape_cast %197 : vector<20xf32> to vector<20x1xf32>
      %cst_86 = arith.constant 3.200000e+01 : f32
      %199 = vector.broadcast %cst_86 : f32 to vector<20x1xf32>
      %200 = arith.divf %198, %199 : vector<20x1xf32>
      %201 = vector.broadcast %200 : vector<20x1xf32> to vector<20x32xf32>
      %202 = arith.subf %188, %201 : vector<20x32xf32>
      %203 = arith.mulf %202, %202 : vector<20x32xf32>
      %cst_87 = arith.constant dense<0.000000e+00> : vector<20xf32>
      %204 = vector.multi_reduction <add>, %203, %cst_87 [1] : vector<20x32xf32> to vector<20xf32>
      %205 = vector.shape_cast %204 : vector<20xf32> to vector<20x1xf32>
      %cst_88 = arith.constant 3.200000e+01 : f32
      %206 = vector.broadcast %cst_88 : f32 to vector<20x1xf32>
      %207 = arith.divf %205, %206 : vector<20x1xf32>
      %208 = vector.broadcast %200 : vector<20x1xf32> to vector<20x32xf32>
      %209 = arith.subf %188, %208 : vector<20x32xf32>
      %cst_89 = arith.constant 9.99999974E-6 : f32
      %210 = vector.broadcast %cst_89 : f32 to vector<20x1xf32>
      %211 = arith.addf %207, %210 : vector<20x1xf32>
      %212 = math.rsqrt %211 : vector<20x1xf32>
      %213 = vector.broadcast %212 : vector<20x1xf32> to vector<20x32xf32>
      %214 = arith.mulf %209, %213 : vector<20x32xf32>
      %215 = vector.broadcast %195 : vector<1x32xf32> to vector<20x32xf32>
      %216 = arith.mulf %214, %215 : vector<20x32xf32>
      %217 = vector.broadcast %196 : vector<1x32xf32> to vector<20x32xf32>
      %218 = arith.addf %216, %217 : vector<20x32xf32>
      %c0_90 = arith.constant 0 : index
      %c0_91 = arith.constant 0 : index
      %219 = vector.load %arg17[%c0_90, %c0_91] : memref<20x32xf32, #tpu.memory_space<vmem>>, vector<20x32xf32>
      tpu.vector_store %arg17[%c0_90, %c0_91], %218 {strides = array<i32>} : memref<20x32xf32, #tpu.memory_space<vmem>>, vector<20x32xf32>,
    } else {
    }
    return
  }
  func.func @transform_0(%arg0: i32) -> (i32, i32) {
    %c0_i32 = arith.constant 0 : i32
    %c0_i32_0 = arith.constant 0 : i32
    %c0_i32_1 = arith.constant 0 : i32
    return %c0_i32, %c0_i32_0 : i32, i32
  }
  func.func @transform_1(%arg0: i32) -> (i32, i32) {
    %c0_i32 = arith.constant 0 : i32
    %c0_i32_0 = arith.constant 0 : i32
    %c0_i32_1 = arith.constant 0 : i32
    return %c0_i32, %c0_i32_0 : i32, i32
  }
  func.func @transform_2(%arg0: i32) -> (i32, i32, i32) {
    %c0_i32 = arith.constant 0 : i32
    %c0_i32_0 = arith.constant 0 : i32
    %c0_i32_1 = arith.constant 0 : i32
    return %arg0, %c0_i32, %c0_i32_0 : i32, i32, i32
  }
  func.func @transform_3(%arg0: i32) -> (i32, i32, i32) {
    %c0_i32 = arith.constant 0 : i32
    %c0_i32_0 = arith.constant 0 : i32
    %c0_i32_1 = arith.constant 0 : i32
    return %arg0, %c0_i32, %c0_i32_0 : i32, i32, i32
  }
  func.func @transform_4(%arg0: i32) -> (i32, i32, i32) {
    %c0_i32 = arith.constant 0 : i32
    %c0_i32_0 = arith.constant 0 : i32
    %c0_i32_1 = arith.constant 0 : i32
    return %arg0, %c0_i32, %c0_i32_0 : i32, i32, i32
  }
  func.func @transform_5(%arg0: i32) -> (i32, i32, i32) {
    %c0_i32 = arith.constant 0 : i32
    %c0_i32_0 = arith.constant 0 : i32
    %c0_i32_1 = arith.constant 0 : i32
    return %arg0, %c0_i32, %c0_i32_0 : i32, i32, i32
  }
  func.func @transform_6(%arg0: i32) -> (i32, i32, i32) {
    %c0_i32 = arith.constant 0 : i32
    %c0_i32_0 = arith.constant 0 : i32
    %c0_i32_1 = arith.constant 0 : i32
    return %arg0, %c0_i32, %c0_i32_0 : i32, i32, i32
  }
  func.func @transform_7(%arg0: i32) -> (i32, i32, i32) {
    %c0_i32 = arith.constant 0 : i32
    %c0_i32_0 = arith.constant 0 : i32
    %c0_i32_1 = arith.constant 0 : i32
    return %arg0, %c0_i32, %c0_i32_0 : i32, i32, i32
  }
  func.func @transform_8(%arg0: i32) -> (i32, i32, i32) {
    %c0_i32 = arith.constant 0 : i32
    %c0_i32_0 = arith.constant 0 : i32
    %c0_i32_1 = arith.constant 0 : i32
    return %arg0, %c0_i32, %c0_i32_0 : i32, i32, i32
  }
  func.func @transform_9(%arg0: i32) -> (i32, i32, i32) {
    %c0_i32 = arith.constant 0 : i32
    %c0_i32_0 = arith.constant 0 : i32
    %c0_i32_1 = arith.constant 0 : i32
    return %arg0, %c0_i32, %c0_i32_0 : i32, i32, i32
  }
  func.func @transform_10(%arg0: i32) -> (i32, i32, i32) {
    %c0_i32 = arith.constant 0 : i32
    %c0_i32_0 = arith.constant 0 : i32
    %c0_i32_1 = arith.constant 0 : i32
    return %arg0, %c0_i32, %c0_i32_0 : i32, i32, i32
  }
  func.func @transform_11(%arg0: i32) -> (i32, i32, i32) {
    %c0_i32 = arith.constant 0 : i32
    %c0_i32_0 = arith.constant 0 : i32
    %c0_i32_1 = arith.constant 0 : i32
    return %arg0, %c0_i32, %c0_i32_0 : i32, i32, i32
  }
  func.func @transform_12(%arg0: i32) -> (i32, i32, i32) {
    %c0_i32 = arith.constant 0 : i32
    %c0_i32_0 = arith.constant 0 : i32
    %c0_i32_1 = arith.constant 0 : i32
    return %arg0, %c0_i32, %c0_i32_0 : i32, i32, i32
  }
  func.func @transform_13(%arg0: i32) -> (i32, i32, i32) {
    %c0_i32 = arith.constant 0 : i32
    %c0_i32_0 = arith.constant 0 : i32
    %c0_i32_1 = arith.constant 0 : i32
    return %arg0, %c0_i32, %c0_i32_0 : i32, i32, i32
  }
  func.func @transform_14(%arg0: i32) -> (i32, i32) {
    %c0_i32 = arith.constant 0 : i32
    %c0_i32_0 = arith.constant 0 : i32
    %c0_i32_1 = arith.constant 0 : i32
    return %c0_i32, %c0_i32_0 : i32, i32
  }
  func.func @transform_15(%arg0: i32) -> (i32, i32) {
    %c0_i32 = arith.constant 0 : i32
    %c0_i32_0 = arith.constant 0 : i32
    %c0_i32_1 = arith.constant 0 : i32
    return %c0_i32, %c0_i32_0 : i32, i32
  }
  func.func @transform_16(%arg0: i32) -> (i32, i32) {
    %c0_i32 = arith.constant 0 : i32
    %c0_i32_0 = arith.constant 0 : i32
    %c0_i32_1 = arith.constant 0 : i32
    return %c0_i32, %c0_i32_0 : i32, i32
  }
}

module attributes {stable_mosaic.version = 11 : i64} {
  func.func @decoder_kernel(%arg0: i32, %arg1: memref<16x32xf32, #tpu.memory_space<vmem>>, %arg2: memref<20x32xf32, #tpu.memory_space<vmem>>, %arg3: memref<1x32x96xbf16, #tpu.memory_space<vmem>>, %arg4: memref<1x1x96xf32, #tpu.memory_space<vmem>>, %arg5: memref<1x32x32xbf16, #tpu.memory_space<vmem>>, %arg6: memref<1x1x32xf32, #tpu.memory_space<vmem>>, %arg7: memref<1x32x32xbf16, #tpu.memory_space<vmem>>, %arg8: memref<1x1x32xf32, #tpu.memory_space<vmem>>, %arg9: memref<1x32x64xbf16, #tpu.memory_space<vmem>>, %arg10: memref<1x1x64xf32, #tpu.memory_space<vmem>>, %arg11: memref<1x32x32xbf16, #tpu.memory_space<vmem>>, %arg12: memref<1x1x32xf32, #tpu.memory_space<vmem>>, %arg13: memref<1x32x64xbf16, #tpu.memory_space<vmem>>, %arg14: memref<1x1x64xf32, #tpu.memory_space<vmem>>, %arg15: memref<1x64x32xbf16, #tpu.memory_space<vmem>>, %arg16: memref<1x1x32xf32, #tpu.memory_space<vmem>>, %arg17: memref<1x1x32xf32, #tpu.memory_space<vmem>>, %arg18: memref<1x1x32xf32, #tpu.memory_space<vmem>>, %arg19: memref<1x1x32xf32, #tpu.memory_space<vmem>>, %arg20: memref<1x1x32xf32, #tpu.memory_space<vmem>>, %arg21: memref<1x1x32xf32, #tpu.memory_space<vmem>>, %arg22: memref<1x1x32xf32, #tpu.memory_space<vmem>>, %arg23: memref<1x32xf32, #tpu.memory_space<vmem>>, %arg24: memref<1x32xf32, #tpu.memory_space<vmem>>, %arg25: memref<32x128xbf16, #tpu.memory_space<vmem>>, %arg26: memref<1x128xf32, #tpu.memory_space<vmem>>, %arg27: memref<16x128xf32, #tpu.memory_space<vmem>>, %arg28: memref<16x32xf32, #tpu.memory_space<vmem>>, %arg29: memref<16x32xf32, #tpu.memory_space<vmem>>) attributes {dimension_semantics = [#tpu.dimension_semantics<arbitrary>], iteration_bounds = array<i64: 2>, scalar_prefetch = 0 : i64, scratch_operands = 2 : i64, tpu.core_type = #tpu.core_type<tc>, window_params = [{pipeline_mode = #tpu.pipeline_mode<synchronous>, transform_indices = @transform_0, window_bounds = array<i64: 16, 32>}, {pipeline_mode = #tpu.pipeline_mode<synchronous>, transform_indices = @transform_1, window_bounds = array<i64: 20, 32>}, {transform_indices = @transform_2, window_bounds = array<i64: 1, 32, 96>}, {transform_indices = @transform_3, window_bounds = array<i64: 1, 1, 96>}, {transform_indices = @transform_4, window_bounds = array<i64: 1, 32, 32>}, {transform_indices = @transform_5, window_bounds = array<i64: 1, 1, 32>}, {transform_indices = @transform_6, window_bounds = array<i64: 1, 32, 32>}, {transform_indices = @transform_7, window_bounds = array<i64: 1, 1, 32>}, {transform_indices = @transform_8, window_bounds = array<i64: 1, 32, 64>}, {transform_indices = @transform_9, window_bounds = array<i64: 1, 1, 64>}, {transform_indices = @transform_10, window_bounds = array<i64: 1, 32, 32>}, {transform_indices = @transform_11, window_bounds = array<i64: 1, 1, 32>}, {transform_indices = @transform_12, window_bounds = array<i64: 1, 32, 64>}, {transform_indices = @transform_13, window_bounds = array<i64: 1, 1, 64>}, {transform_indices = @transform_14, window_bounds = array<i64: 1, 64, 32>}, {transform_indices = @transform_15, window_bounds = array<i64: 1, 1, 32>}, {transform_indices = @transform_16, window_bounds = array<i64: 1, 1, 32>}, {transform_indices = @transform_17, window_bounds = array<i64: 1, 1, 32>}, {transform_indices = @transform_18, window_bounds = array<i64: 1, 1, 32>}, {transform_indices = @transform_19, window_bounds = array<i64: 1, 1, 32>}, {transform_indices = @transform_20, window_bounds = array<i64: 1, 1, 32>}, {transform_indices = @transform_21, window_bounds = array<i64: 1, 1, 32>}, {pipeline_mode = #tpu.pipeline_mode<synchronous>, transform_indices = @transform_22, window_bounds = array<i64: 1, 32>}, {pipeline_mode = #tpu.pipeline_mode<synchronous>, transform_indices = @transform_23, window_bounds = array<i64: 1, 32>}, {pipeline_mode = #tpu.pipeline_mode<synchronous>, transform_indices = @transform_24, window_bounds = array<i64: 32, 128>}, {pipeline_mode = #tpu.pipeline_mode<synchronous>, transform_indices = @transform_25, window_bounds = array<i64: 1, 128>}, {pipeline_mode = #tpu.pipeline_mode<synchronous>, transform_indices = @transform_26, window_bounds = array<i64: 16, 128>}]} {
    %c0_i32 = arith.constant 0 : i32
    %0 = arith.cmpi eq, %arg0, %c0_i32 : i32
    %1 = arith.extui %0 : i1 to i32
    %c0_i32_0 = arith.constant 0 : i32
    %2 = arith.cmpi ne, %1, %c0_i32_0 : i32
    scf.if %2 {
      %c0_143 = arith.constant 0 : index
      %c0_144 = arith.constant 0 : index
      %326 = vector.load %arg1[%c0_143, %c0_144] : memref<16x32xf32, #tpu.memory_space<vmem>>, vector<16x32xf32>
      %c0_145 = arith.constant 0 : index
      %c0_146 = arith.constant 0 : index
      %327 = vector.load %arg28[%c0_145, %c0_146] : memref<16x32xf32, #tpu.memory_space<vmem>>, vector<16x32xf32>
      tpu.vector_store %arg28[%c0_145, %c0_146], %326 {strides = array<i32>} : memref<16x32xf32, #tpu.memory_space<vmem>>, vector<16x32xf32>,
    } else {
    }
    %c0 = arith.constant 0 : index
    %c0_1 = arith.constant 0 : index
    %3 = vector.load %arg28[%c0, %c0_1] : memref<16x32xf32, #tpu.memory_space<vmem>>, vector<16x32xf32>
    %c0_2 = arith.constant 0 : index
    %c0_3 = arith.constant 0 : index
    %4 = vector.load %arg2[%c0_2, %c0_3] : memref<20x32xf32, #tpu.memory_space<vmem>>, vector<20x32xf32>
    %c0_4 = arith.constant 0 : index
    %c0_5 = arith.constant 0 : index
    %c0_6 = arith.constant 0 : index
    %5 = vector.load %arg3[%c0_4, %c0_5, %c0_6] : memref<1x32x96xbf16, #tpu.memory_space<vmem>>, vector<1x32x96xbf16>
    %6 = vector.shape_cast %5 : vector<1x32x96xbf16> to vector<32x96xbf16>
    %7 = arith.truncf %3 : vector<16x32xf32> to vector<16x32xbf16>
    %cst = arith.constant dense<0.000000e+00> : vector<16x96xf32>
    %8 = tpu.matmul %7, %6, %cst {dimension_numbers = #tpu.dot_dimension_numbers<[1], [0], [0], [1], [0, 0, 1, 1], [], []>} : vector<16x32xbf16>, vector<32x96xbf16>, vector<16x96xf32> -> vector<16x96xf32>
    %c0_7 = arith.constant 0 : index
    %c0_8 = arith.constant 0 : index
    %c0_9 = arith.constant 0 : index
    %9 = vector.load %arg4[%c0_7, %c0_8, %c0_9] : memref<1x1x96xf32, #tpu.memory_space<vmem>>, vector<1x1x96xf32>
    %10 = vector.shape_cast %9 : vector<1x1x96xf32> to vector<1x96xf32>
    %11 = vector.broadcast %10 : vector<1x96xf32> to vector<16x96xf32>
    %12 = arith.addf %8, %11 : vector<16x96xf32>
    %13 = vector.extract_strided_slice %12 {offsets = [0, 0], sizes = [16, 32], strides = [1, 1]} : vector<16x96xf32> to vector<16x32xf32>
    %14 = vector.extract_strided_slice %12 {offsets = [0, 32], sizes = [16, 32], strides = [1, 1]} : vector<16x96xf32> to vector<16x32xf32>
    %15 = vector.extract_strided_slice %12 {offsets = [0, 64], sizes = [16, 32], strides = [1, 1]} : vector<16x96xf32> to vector<16x32xf32>
    %16 = tpu.iota {dimensions = array<i32: 0>} : vector<8x8xi32>
    %17 = tpu.iota {dimensions = array<i32: 1>} : vector<8x8xi32>
    %18 = arith.cmpi sgt, %17, %16 : vector<8x8xi32>
    %19 = vector.extract_strided_slice %13 {offsets = [0, 0], sizes = [8, 16], strides = [1, 1]} : vector<16x32xf32> to vector<8x16xf32>
    %20 = arith.truncf %19 : vector<8x16xf32> to vector<8x16xbf16>
    %21 = vector.extract_strided_slice %14 {offsets = [0, 0], sizes = [8, 16], strides = [1, 1]} : vector<16x32xf32> to vector<8x16xf32>
    %22 = arith.truncf %21 : vector<8x16xf32> to vector<8x16xbf16>
    %23 = vector.extract_strided_slice %15 {offsets = [0, 0], sizes = [8, 16], strides = [1, 1]} : vector<16x32xf32> to vector<8x16xf32>
    %24 = arith.truncf %23 : vector<8x16xf32> to vector<8x16xbf16>
    %cst_10 = arith.constant dense<0.000000e+00> : vector<8x8xf32>
    %25 = tpu.matmul %20, %22, %cst_10 {dimension_numbers = #tpu.dot_dimension_numbers<[1], [1], [0], [0], [0, 0, 1, 0], [], []>} : vector<8x16xbf16>, vector<8x16xbf16>, vector<8x8xf32> -> vector<8x8xf32>
    %cst_11 = arith.constant -1.000000e+30 : f32
    %26 = vector.broadcast %cst_11 : f32 to vector<8x8xf32>
    %27 = arith.select %18, %26, %25 : vector<8x8xi1>, vector<8x8xf32>
    %cst_12 = arith.constant dense<0xFF800000> : vector<8xf32>
    %28 = vector.multi_reduction <maximumf>, %27, %cst_12 [1] : vector<8x8xf32> to vector<8xf32>
    %29 = vector.shape_cast %28 : vector<8xf32> to vector<8x1xf32>
    %30 = vector.broadcast %29 : vector<8x1xf32> to vector<8x8xf32>
    %31 = arith.subf %27, %30 : vector<8x8xf32>
    %32 = math.exp %31 : vector<8x8xf32>
    %cst_13 = arith.constant dense<0.000000e+00> : vector<8xf32>
    %33 = vector.multi_reduction <add>, %32, %cst_13 [1] : vector<8x8xf32> to vector<8xf32>
    %34 = vector.shape_cast %33 : vector<8xf32> to vector<8x1xf32>
    %35 = tpu.reciprocal %34 {approx = true} : vector<8x1xf32> -> vector<8x1xf32>
    %36 = vector.broadcast %35 : vector<8x1xf32> to vector<8x8xf32>
    %37 = arith.mulf %32, %36 : vector<8x8xf32>
    %38 = arith.truncf %37 : vector<8x8xf32> to vector<8x8xbf16>
    %cst_14 = arith.constant dense<0.000000e+00> : vector<8x16xf32>
    %39 = tpu.matmul %38, %24, %cst_14 {dimension_numbers = #tpu.dot_dimension_numbers<[1], [0], [0], [1], [0, 0, 1, 1], [], []>} : vector<8x8xbf16>, vector<8x16xbf16>, vector<8x16xf32> -> vector<8x16xf32>
    %c0_15 = arith.constant 0 : index
    %c0_16 = arith.constant 0 : index
    %40 = vector.load %arg29[%c0_15, %c0_16] : memref<16x32xf32, #tpu.memory_space<vmem>>, vector<8x16xf32>
    tpu.vector_store %arg29[%c0_15, %c0_16], %39 {strides = array<i32>} : memref<16x32xf32, #tpu.memory_space<vmem>>, vector<8x16xf32>,
    %41 = vector.extract_strided_slice %13 {offsets = [0, 16], sizes = [8, 16], strides = [1, 1]} : vector<16x32xf32> to vector<8x16xf32>
    %42 = arith.truncf %41 : vector<8x16xf32> to vector<8x16xbf16>
    %43 = vector.extract_strided_slice %14 {offsets = [0, 16], sizes = [8, 16], strides = [1, 1]} : vector<16x32xf32> to vector<8x16xf32>
    %44 = arith.truncf %43 : vector<8x16xf32> to vector<8x16xbf16>
    %45 = vector.extract_strided_slice %15 {offsets = [0, 16], sizes = [8, 16], strides = [1, 1]} : vector<16x32xf32> to vector<8x16xf32>
    %46 = arith.truncf %45 : vector<8x16xf32> to vector<8x16xbf16>
    %cst_17 = arith.constant dense<0.000000e+00> : vector<8x8xf32>
    %47 = tpu.matmul %42, %44, %cst_17 {dimension_numbers = #tpu.dot_dimension_numbers<[1], [1], [0], [0], [0, 0, 1, 0], [], []>} : vector<8x16xbf16>, vector<8x16xbf16>, vector<8x8xf32> -> vector<8x8xf32>
    %cst_18 = arith.constant -1.000000e+30 : f32
    %48 = vector.broadcast %cst_18 : f32 to vector<8x8xf32>
    %49 = arith.select %18, %48, %47 : vector<8x8xi1>, vector<8x8xf32>
    %cst_19 = arith.constant dense<0xFF800000> : vector<8xf32>
    %50 = vector.multi_reduction <maximumf>, %49, %cst_19 [1] : vector<8x8xf32> to vector<8xf32>
    %51 = vector.shape_cast %50 : vector<8xf32> to vector<8x1xf32>
    %52 = vector.broadcast %51 : vector<8x1xf32> to vector<8x8xf32>
    %53 = arith.subf %49, %52 : vector<8x8xf32>
    %54 = math.exp %53 : vector<8x8xf32>
    %cst_20 = arith.constant dense<0.000000e+00> : vector<8xf32>
    %55 = vector.multi_reduction <add>, %54, %cst_20 [1] : vector<8x8xf32> to vector<8xf32>
    %56 = vector.shape_cast %55 : vector<8xf32> to vector<8x1xf32>
    %57 = tpu.reciprocal %56 {approx = true} : vector<8x1xf32> -> vector<8x1xf32>
    %58 = vector.broadcast %57 : vector<8x1xf32> to vector<8x8xf32>
    %59 = arith.mulf %54, %58 : vector<8x8xf32>
    %60 = arith.truncf %59 : vector<8x8xf32> to vector<8x8xbf16>
    %cst_21 = arith.constant dense<0.000000e+00> : vector<8x16xf32>
    %61 = tpu.matmul %60, %46, %cst_21 {dimension_numbers = #tpu.dot_dimension_numbers<[1], [0], [0], [1], [0, 0, 1, 1], [], []>} : vector<8x8xbf16>, vector<8x16xbf16>, vector<8x16xf32> -> vector<8x16xf32>
    %c0_22 = arith.constant 0 : index
    %c16 = arith.constant 16 : index
    %62 = vector.load %arg29[%c0_22, %c16] : memref<16x32xf32, #tpu.memory_space<vmem>>, vector<8x16xf32>
    tpu.vector_store %arg29[%c0_22, %c16], %61 {strides = array<i32>} : memref<16x32xf32, #tpu.memory_space<vmem>>, vector<8x16xf32>,
    %63 = vector.extract_strided_slice %13 {offsets = [8, 0], sizes = [8, 16], strides = [1, 1]} : vector<16x32xf32> to vector<8x16xf32>
    %64 = arith.truncf %63 : vector<8x16xf32> to vector<8x16xbf16>
    %65 = vector.extract_strided_slice %14 {offsets = [8, 0], sizes = [8, 16], strides = [1, 1]} : vector<16x32xf32> to vector<8x16xf32>
    %66 = arith.truncf %65 : vector<8x16xf32> to vector<8x16xbf16>
    %67 = vector.extract_strided_slice %15 {offsets = [8, 0], sizes = [8, 16], strides = [1, 1]} : vector<16x32xf32> to vector<8x16xf32>
    %68 = arith.truncf %67 : vector<8x16xf32> to vector<8x16xbf16>
    %cst_23 = arith.constant dense<0.000000e+00> : vector<8x8xf32>
    %69 = tpu.matmul %64, %66, %cst_23 {dimension_numbers = #tpu.dot_dimension_numbers<[1], [1], [0], [0], [0, 0, 1, 0], [], []>} : vector<8x16xbf16>, vector<8x16xbf16>, vector<8x8xf32> -> vector<8x8xf32>
    %cst_24 = arith.constant -1.000000e+30 : f32
    %70 = vector.broadcast %cst_24 : f32 to vector<8x8xf32>
    %71 = arith.select %18, %70, %69 : vector<8x8xi1>, vector<8x8xf32>
    %cst_25 = arith.constant dense<0xFF800000> : vector<8xf32>
    %72 = vector.multi_reduction <maximumf>, %71, %cst_25 [1] : vector<8x8xf32> to vector<8xf32>
    %73 = vector.shape_cast %72 : vector<8xf32> to vector<8x1xf32>
    %74 = vector.broadcast %73 : vector<8x1xf32> to vector<8x8xf32>
    %75 = arith.subf %71, %74 : vector<8x8xf32>
    %76 = math.exp %75 : vector<8x8xf32>
    %cst_26 = arith.constant dense<0.000000e+00> : vector<8xf32>
    %77 = vector.multi_reduction <add>, %76, %cst_26 [1] : vector<8x8xf32> to vector<8xf32>
    %78 = vector.shape_cast %77 : vector<8xf32> to vector<8x1xf32>
    %79 = tpu.reciprocal %78 {approx = true} : vector<8x1xf32> -> vector<8x1xf32>
    %80 = vector.broadcast %79 : vector<8x1xf32> to vector<8x8xf32>
    %81 = arith.mulf %76, %80 : vector<8x8xf32>
    %82 = arith.truncf %81 : vector<8x8xf32> to vector<8x8xbf16>
    %cst_27 = arith.constant dense<0.000000e+00> : vector<8x16xf32>
    %83 = tpu.matmul %82, %68, %cst_27 {dimension_numbers = #tpu.dot_dimension_numbers<[1], [0], [0], [1], [0, 0, 1, 1], [], []>} : vector<8x8xbf16>, vector<8x16xbf16>, vector<8x16xf32> -> vector<8x16xf32>
    %c8 = arith.constant 8 : index
    %c0_28 = arith.constant 0 : index
    %84 = vector.load %arg29[%c8, %c0_28] : memref<16x32xf32, #tpu.memory_space<vmem>>, vector<8x16xf32>
    tpu.vector_store %arg29[%c8, %c0_28], %83 {strides = array<i32>} : memref<16x32xf32, #tpu.memory_space<vmem>>, vector<8x16xf32>,
    %85 = vector.extract_strided_slice %13 {offsets = [8, 16], sizes = [8, 16], strides = [1, 1]} : vector<16x32xf32> to vector<8x16xf32>
    %86 = arith.truncf %85 : vector<8x16xf32> to vector<8x16xbf16>
    %87 = vector.extract_strided_slice %14 {offsets = [8, 16], sizes = [8, 16], strides = [1, 1]} : vector<16x32xf32> to vector<8x16xf32>
    %88 = arith.truncf %87 : vector<8x16xf32> to vector<8x16xbf16>
    %89 = vector.extract_strided_slice %15 {offsets = [8, 16], sizes = [8, 16], strides = [1, 1]} : vector<16x32xf32> to vector<8x16xf32>
    %90 = arith.truncf %89 : vector<8x16xf32> to vector<8x16xbf16>
    %cst_29 = arith.constant dense<0.000000e+00> : vector<8x8xf32>
    %91 = tpu.matmul %86, %88, %cst_29 {dimension_numbers = #tpu.dot_dimension_numbers<[1], [1], [0], [0], [0, 0, 1, 0], [], []>} : vector<8x16xbf16>, vector<8x16xbf16>, vector<8x8xf32> -> vector<8x8xf32>
    %cst_30 = arith.constant -1.000000e+30 : f32
    %92 = vector.broadcast %cst_30 : f32 to vector<8x8xf32>
    %93 = arith.select %18, %92, %91 : vector<8x8xi1>, vector<8x8xf32>
    %cst_31 = arith.constant dense<0xFF800000> : vector<8xf32>
    %94 = vector.multi_reduction <maximumf>, %93, %cst_31 [1] : vector<8x8xf32> to vector<8xf32>
    %95 = vector.shape_cast %94 : vector<8xf32> to vector<8x1xf32>
    %96 = vector.broadcast %95 : vector<8x1xf32> to vector<8x8xf32>
    %97 = arith.subf %93, %96 : vector<8x8xf32>
    %98 = math.exp %97 : vector<8x8xf32>
    %cst_32 = arith.constant dense<0.000000e+00> : vector<8xf32>
    %99 = vector.multi_reduction <add>, %98, %cst_32 [1] : vector<8x8xf32> to vector<8xf32>
    %100 = vector.shape_cast %99 : vector<8xf32> to vector<8x1xf32>
    %101 = tpu.reciprocal %100 {approx = true} : vector<8x1xf32> -> vector<8x1xf32>
    %102 = vector.broadcast %101 : vector<8x1xf32> to vector<8x8xf32>
    %103 = arith.mulf %98, %102 : vector<8x8xf32>
    %104 = arith.truncf %103 : vector<8x8xf32> to vector<8x8xbf16>
    %cst_33 = arith.constant dense<0.000000e+00> : vector<8x16xf32>
    %105 = tpu.matmul %104, %90, %cst_33 {dimension_numbers = #tpu.dot_dimension_numbers<[1], [0], [0], [1], [0, 0, 1, 1], [], []>} : vector<8x8xbf16>, vector<8x16xbf16>, vector<8x16xf32> -> vector<8x16xf32>
    %c8_34 = arith.constant 8 : index
    %c16_35 = arith.constant 16 : index
    %106 = vector.load %arg29[%c8_34, %c16_35] : memref<16x32xf32, #tpu.memory_space<vmem>>, vector<8x16xf32>
    tpu.vector_store %arg29[%c8_34, %c16_35], %105 {strides = array<i32>} : memref<16x32xf32, #tpu.memory_space<vmem>>, vector<8x16xf32>,
    %c0_36 = arith.constant 0 : index
    %c0_37 = arith.constant 0 : index
    %107 = vector.load %arg29[%c0_36, %c0_37] : memref<16x32xf32, #tpu.memory_space<vmem>>, vector<16x32xf32>
    %c0_38 = arith.constant 0 : index
    %c0_39 = arith.constant 0 : index
    %c0_40 = arith.constant 0 : index
    %108 = vector.load %arg5[%c0_38, %c0_39, %c0_40] : memref<1x32x32xbf16, #tpu.memory_space<vmem>>, vector<1x32x32xbf16>
    %109 = vector.shape_cast %108 : vector<1x32x32xbf16> to vector<32x32xbf16>
    %110 = arith.truncf %107 : vector<16x32xf32> to vector<16x32xbf16>
    %cst_41 = arith.constant dense<0.000000e+00> : vector<16x32xf32>
    %111 = tpu.matmul %110, %109, %cst_41 {dimension_numbers = #tpu.dot_dimension_numbers<[1], [0], [0], [1], [0, 0, 1, 1], [], []>} : vector<16x32xbf16>, vector<32x32xbf16>, vector<16x32xf32> -> vector<16x32xf32>
    %c0_42 = arith.constant 0 : index
    %c0_43 = arith.constant 0 : index
    %c0_44 = arith.constant 0 : index
    %112 = vector.load %arg6[%c0_42, %c0_43, %c0_44] : memref<1x1x32xf32, #tpu.memory_space<vmem>>, vector<1x1x32xf32>
    %113 = vector.shape_cast %112 : vector<1x1x32xf32> to vector<1x32xf32>
    %114 = vector.broadcast %113 : vector<1x32xf32> to vector<16x32xf32>
    %115 = arith.addf %111, %114 : vector<16x32xf32>
    %116 = arith.addf %115, %3 : vector<16x32xf32>
    %c0_45 = arith.constant 0 : index
    %c0_46 = arith.constant 0 : index
    %c0_47 = arith.constant 0 : index
    %117 = vector.load %arg17[%c0_45, %c0_46, %c0_47] : memref<1x1x32xf32, #tpu.memory_space<vmem>>, vector<1x1x32xf32>
    %118 = vector.shape_cast %117 : vector<1x1x32xf32> to vector<1x32xf32>
    %c0_48 = arith.constant 0 : index
    %c0_49 = arith.constant 0 : index
    %c0_50 = arith.constant 0 : index
    %119 = vector.load %arg18[%c0_48, %c0_49, %c0_50] : memref<1x1x32xf32, #tpu.memory_space<vmem>>, vector<1x1x32xf32>
    %120 = vector.shape_cast %119 : vector<1x1x32xf32> to vector<1x32xf32>
    %cst_51 = arith.constant dense<0.000000e+00> : vector<16xf32>
    %121 = vector.multi_reduction <add>, %116, %cst_51 [1] : vector<16x32xf32> to vector<16xf32>
    %122 = vector.shape_cast %121 : vector<16xf32> to vector<16x1xf32>
    %cst_52 = arith.constant 3.200000e+01 : f32
    %123 = vector.broadcast %cst_52 : f32 to vector<16x1xf32>
    %124 = arith.divf %122, %123 : vector<16x1xf32>
    %125 = vector.broadcast %124 : vector<16x1xf32> to vector<16x32xf32>
    %126 = arith.subf %116, %125 : vector<16x32xf32>
    %127 = arith.mulf %126, %126 : vector<16x32xf32>
    %cst_53 = arith.constant dense<0.000000e+00> : vector<16xf32>
    %128 = vector.multi_reduction <add>, %127, %cst_53 [1] : vector<16x32xf32> to vector<16xf32>
    %129 = vector.shape_cast %128 : vector<16xf32> to vector<16x1xf32>
    %cst_54 = arith.constant 3.200000e+01 : f32
    %130 = vector.broadcast %cst_54 : f32 to vector<16x1xf32>
    %131 = arith.divf %129, %130 : vector<16x1xf32>
    %132 = vector.broadcast %124 : vector<16x1xf32> to vector<16x32xf32>
    %133 = arith.subf %116, %132 : vector<16x32xf32>
    %cst_55 = arith.constant 9.99999974E-6 : f32
    %134 = vector.broadcast %cst_55 : f32 to vector<16x1xf32>
    %135 = arith.addf %131, %134 : vector<16x1xf32>
    %136 = math.rsqrt %135 : vector<16x1xf32>
    %137 = vector.broadcast %136 : vector<16x1xf32> to vector<16x32xf32>
    %138 = arith.mulf %133, %137 : vector<16x32xf32>
    %139 = vector.broadcast %118 : vector<1x32xf32> to vector<16x32xf32>
    %140 = arith.mulf %138, %139 : vector<16x32xf32>
    %141 = vector.broadcast %120 : vector<1x32xf32> to vector<16x32xf32>
    %142 = arith.addf %140, %141 : vector<16x32xf32>
    %c0_56 = arith.constant 0 : index
    %c0_57 = arith.constant 0 : index
    %c0_58 = arith.constant 0 : index
    %143 = vector.load %arg7[%c0_56, %c0_57, %c0_58] : memref<1x32x32xbf16, #tpu.memory_space<vmem>>, vector<1x32x32xbf16>
    %144 = vector.shape_cast %143 : vector<1x32x32xbf16> to vector<32x32xbf16>
    %145 = arith.truncf %142 : vector<16x32xf32> to vector<16x32xbf16>
    %cst_59 = arith.constant dense<0.000000e+00> : vector<16x32xf32>
    %146 = tpu.matmul %145, %144, %cst_59 {dimension_numbers = #tpu.dot_dimension_numbers<[1], [0], [0], [1], [0, 0, 1, 1], [], []>} : vector<16x32xbf16>, vector<32x32xbf16>, vector<16x32xf32> -> vector<16x32xf32>
    %c0_60 = arith.constant 0 : index
    %c0_61 = arith.constant 0 : index
    %c0_62 = arith.constant 0 : index
    %147 = vector.load %arg8[%c0_60, %c0_61, %c0_62] : memref<1x1x32xf32, #tpu.memory_space<vmem>>, vector<1x1x32xf32>
    %148 = vector.shape_cast %147 : vector<1x1x32xf32> to vector<1x32xf32>
    %149 = vector.broadcast %148 : vector<1x32xf32> to vector<16x32xf32>
    %150 = arith.addf %146, %149 : vector<16x32xf32>
    %c0_63 = arith.constant 0 : index
    %c0_64 = arith.constant 0 : index
    %c0_65 = arith.constant 0 : index
    %151 = vector.load %arg9[%c0_63, %c0_64, %c0_65] : memref<1x32x64xbf16, #tpu.memory_space<vmem>>, vector<1x32x64xbf16>
    %152 = vector.shape_cast %151 : vector<1x32x64xbf16> to vector<32x64xbf16>
    %153 = arith.truncf %4 : vector<20x32xf32> to vector<20x32xbf16>
    %cst_66 = arith.constant dense<0.000000e+00> : vector<20x64xf32>
    %154 = tpu.matmul %153, %152, %cst_66 {dimension_numbers = #tpu.dot_dimension_numbers<[1], [0], [0], [1], [0, 0, 1, 1], [], []>} : vector<20x32xbf16>, vector<32x64xbf16>, vector<20x64xf32> -> vector<20x64xf32>
    %c0_67 = arith.constant 0 : index
    %c0_68 = arith.constant 0 : index
    %c0_69 = arith.constant 0 : index
    %155 = vector.load %arg10[%c0_67, %c0_68, %c0_69] : memref<1x1x64xf32, #tpu.memory_space<vmem>>, vector<1x1x64xf32>
    %156 = vector.shape_cast %155 : vector<1x1x64xf32> to vector<1x64xf32>
    %157 = vector.broadcast %156 : vector<1x64xf32> to vector<20x64xf32>
    %158 = arith.addf %154, %157 : vector<20x64xf32>
    %159 = vector.extract_strided_slice %158 {offsets = [0, 0], sizes = [20, 32], strides = [1, 1]} : vector<20x64xf32> to vector<20x32xf32>
    %160 = vector.extract_strided_slice %158 {offsets = [0, 32], sizes = [20, 32], strides = [1, 1]} : vector<20x64xf32> to vector<20x32xf32>
    %161 = vector.extract_strided_slice %150 {offsets = [0, 0], sizes = [8, 16], strides = [1, 1]} : vector<16x32xf32> to vector<8x16xf32>
    %162 = arith.truncf %161 : vector<8x16xf32> to vector<8x16xbf16>
    %163 = vector.extract_strided_slice %159 {offsets = [0, 0], sizes = [10, 16], strides = [1, 1]} : vector<20x32xf32> to vector<10x16xf32>
    %164 = arith.truncf %163 : vector<10x16xf32> to vector<10x16xbf16>
    %165 = vector.extract_strided_slice %160 {offsets = [0, 0], sizes = [10, 16], strides = [1, 1]} : vector<20x32xf32> to vector<10x16xf32>
    %166 = arith.truncf %165 : vector<10x16xf32> to vector<10x16xbf16>
    %cst_70 = arith.constant dense<0.000000e+00> : vector<8x10xf32>
    %167 = tpu.matmul %162, %164, %cst_70 {dimension_numbers = #tpu.dot_dimension_numbers<[1], [1], [0], [0], [0, 0, 1, 0], [], []>} : vector<8x16xbf16>, vector<10x16xbf16>, vector<8x10xf32> -> vector<8x10xf32>
    %cst_71 = arith.constant dense<0xFF800000> : vector<8xf32>
    %168 = vector.multi_reduction <maximumf>, %167, %cst_71 [1] : vector<8x10xf32> to vector<8xf32>
    %169 = vector.shape_cast %168 : vector<8xf32> to vector<8x1xf32>
    %170 = vector.broadcast %169 : vector<8x1xf32> to vector<8x10xf32>
    %171 = arith.subf %167, %170 : vector<8x10xf32>
    %172 = math.exp %171 : vector<8x10xf32>
    %cst_72 = arith.constant dense<0.000000e+00> : vector<8xf32>
    %173 = vector.multi_reduction <add>, %172, %cst_72 [1] : vector<8x10xf32> to vector<8xf32>
    %174 = vector.shape_cast %173 : vector<8xf32> to vector<8x1xf32>
    %175 = tpu.reciprocal %174 {approx = true} : vector<8x1xf32> -> vector<8x1xf32>
    %176 = vector.broadcast %175 : vector<8x1xf32> to vector<8x10xf32>
    %177 = arith.mulf %172, %176 : vector<8x10xf32>
    %178 = arith.truncf %177 : vector<8x10xf32> to vector<8x10xbf16>
    %cst_73 = arith.constant dense<0.000000e+00> : vector<8x16xf32>
    %179 = tpu.matmul %178, %166, %cst_73 {dimension_numbers = #tpu.dot_dimension_numbers<[1], [0], [0], [1], [0, 0, 1, 1], [], []>} : vector<8x10xbf16>, vector<10x16xbf16>, vector<8x16xf32> -> vector<8x16xf32>
    %c0_74 = arith.constant 0 : index
    %c0_75 = arith.constant 0 : index
    %180 = vector.load %arg29[%c0_74, %c0_75] : memref<16x32xf32, #tpu.memory_space<vmem>>, vector<8x16xf32>
    tpu.vector_store %arg29[%c0_74, %c0_75], %179 {strides = array<i32>} : memref<16x32xf32, #tpu.memory_space<vmem>>, vector<8x16xf32>,
    %181 = vector.extract_strided_slice %150 {offsets = [0, 16], sizes = [8, 16], strides = [1, 1]} : vector<16x32xf32> to vector<8x16xf32>
    %182 = arith.truncf %181 : vector<8x16xf32> to vector<8x16xbf16>
    %183 = vector.extract_strided_slice %159 {offsets = [0, 16], sizes = [10, 16], strides = [1, 1]} : vector<20x32xf32> to vector<10x16xf32>
    %184 = arith.truncf %183 : vector<10x16xf32> to vector<10x16xbf16>
    %185 = vector.extract_strided_slice %160 {offsets = [0, 16], sizes = [10, 16], strides = [1, 1]} : vector<20x32xf32> to vector<10x16xf32>
    %186 = arith.truncf %185 : vector<10x16xf32> to vector<10x16xbf16>
    %cst_76 = arith.constant dense<0.000000e+00> : vector<8x10xf32>
    %187 = tpu.matmul %182, %184, %cst_76 {dimension_numbers = #tpu.dot_dimension_numbers<[1], [1], [0], [0], [0, 0, 1, 0], [], []>} : vector<8x16xbf16>, vector<10x16xbf16>, vector<8x10xf32> -> vector<8x10xf32>
    %cst_77 = arith.constant dense<0xFF800000> : vector<8xf32>
    %188 = vector.multi_reduction <maximumf>, %187, %cst_77 [1] : vector<8x10xf32> to vector<8xf32>
    %189 = vector.shape_cast %188 : vector<8xf32> to vector<8x1xf32>
    %190 = vector.broadcast %189 : vector<8x1xf32> to vector<8x10xf32>
    %191 = arith.subf %187, %190 : vector<8x10xf32>
    %192 = math.exp %191 : vector<8x10xf32>
    %cst_78 = arith.constant dense<0.000000e+00> : vector<8xf32>
    %193 = vector.multi_reduction <add>, %192, %cst_78 [1] : vector<8x10xf32> to vector<8xf32>
    %194 = vector.shape_cast %193 : vector<8xf32> to vector<8x1xf32>
    %195 = tpu.reciprocal %194 {approx = true} : vector<8x1xf32> -> vector<8x1xf32>
    %196 = vector.broadcast %195 : vector<8x1xf32> to vector<8x10xf32>
    %197 = arith.mulf %192, %196 : vector<8x10xf32>
    %198 = arith.truncf %197 : vector<8x10xf32> to vector<8x10xbf16>
    %cst_79 = arith.constant dense<0.000000e+00> : vector<8x16xf32>
    %199 = tpu.matmul %198, %186, %cst_79 {dimension_numbers = #tpu.dot_dimension_numbers<[1], [0], [0], [1], [0, 0, 1, 1], [], []>} : vector<8x10xbf16>, vector<10x16xbf16>, vector<8x16xf32> -> vector<8x16xf32>
    %c0_80 = arith.constant 0 : index
    %c16_81 = arith.constant 16 : index
    %200 = vector.load %arg29[%c0_80, %c16_81] : memref<16x32xf32, #tpu.memory_space<vmem>>, vector<8x16xf32>
    tpu.vector_store %arg29[%c0_80, %c16_81], %199 {strides = array<i32>} : memref<16x32xf32, #tpu.memory_space<vmem>>, vector<8x16xf32>,
    %201 = vector.extract_strided_slice %150 {offsets = [8, 0], sizes = [8, 16], strides = [1, 1]} : vector<16x32xf32> to vector<8x16xf32>
    %202 = arith.truncf %201 : vector<8x16xf32> to vector<8x16xbf16>
    %203 = vector.extract_strided_slice %159 {offsets = [10, 0], sizes = [10, 16], strides = [1, 1]} : vector<20x32xf32> to vector<10x16xf32>
    %204 = arith.truncf %203 : vector<10x16xf32> to vector<10x16xbf16>
    %205 = vector.extract_strided_slice %160 {offsets = [10, 0], sizes = [10, 16], strides = [1, 1]} : vector<20x32xf32> to vector<10x16xf32>
    %206 = arith.truncf %205 : vector<10x16xf32> to vector<10x16xbf16>
    %cst_82 = arith.constant dense<0.000000e+00> : vector<8x10xf32>
    %207 = tpu.matmul %202, %204, %cst_82 {dimension_numbers = #tpu.dot_dimension_numbers<[1], [1], [0], [0], [0, 0, 1, 0], [], []>} : vector<8x16xbf16>, vector<10x16xbf16>, vector<8x10xf32> -> vector<8x10xf32>
    %cst_83 = arith.constant dense<0xFF800000> : vector<8xf32>
    %208 = vector.multi_reduction <maximumf>, %207, %cst_83 [1] : vector<8x10xf32> to vector<8xf32>
    %209 = vector.shape_cast %208 : vector<8xf32> to vector<8x1xf32>
    %210 = vector.broadcast %209 : vector<8x1xf32> to vector<8x10xf32>
    %211 = arith.subf %207, %210 : vector<8x10xf32>
    %212 = math.exp %211 : vector<8x10xf32>
    %cst_84 = arith.constant dense<0.000000e+00> : vector<8xf32>
    %213 = vector.multi_reduction <add>, %212, %cst_84 [1] : vector<8x10xf32> to vector<8xf32>
    %214 = vector.shape_cast %213 : vector<8xf32> to vector<8x1xf32>
    %215 = tpu.reciprocal %214 {approx = true} : vector<8x1xf32> -> vector<8x1xf32>
    %216 = vector.broadcast %215 : vector<8x1xf32> to vector<8x10xf32>
    %217 = arith.mulf %212, %216 : vector<8x10xf32>
    %218 = arith.truncf %217 : vector<8x10xf32> to vector<8x10xbf16>
    %cst_85 = arith.constant dense<0.000000e+00> : vector<8x16xf32>
    %219 = tpu.matmul %218, %206, %cst_85 {dimension_numbers = #tpu.dot_dimension_numbers<[1], [0], [0], [1], [0, 0, 1, 1], [], []>} : vector<8x10xbf16>, vector<10x16xbf16>, vector<8x16xf32> -> vector<8x16xf32>
    %c8_86 = arith.constant 8 : index
    %c0_87 = arith.constant 0 : index
    %220 = vector.load %arg29[%c8_86, %c0_87] : memref<16x32xf32, #tpu.memory_space<vmem>>, vector<8x16xf32>
    tpu.vector_store %arg29[%c8_86, %c0_87], %219 {strides = array<i32>} : memref<16x32xf32, #tpu.memory_space<vmem>>, vector<8x16xf32>,
    %221 = vector.extract_strided_slice %150 {offsets = [8, 16], sizes = [8, 16], strides = [1, 1]} : vector<16x32xf32> to vector<8x16xf32>
    %222 = arith.truncf %221 : vector<8x16xf32> to vector<8x16xbf16>
    %223 = vector.extract_strided_slice %159 {offsets = [10, 16], sizes = [10, 16], strides = [1, 1]} : vector<20x32xf32> to vector<10x16xf32>
    %224 = arith.truncf %223 : vector<10x16xf32> to vector<10x16xbf16>
    %225 = vector.extract_strided_slice %160 {offsets = [10, 16], sizes = [10, 16], strides = [1, 1]} : vector<20x32xf32> to vector<10x16xf32>
    %226 = arith.truncf %225 : vector<10x16xf32> to vector<10x16xbf16>
    %cst_88 = arith.constant dense<0.000000e+00> : vector<8x10xf32>
    %227 = tpu.matmul %222, %224, %cst_88 {dimension_numbers = #tpu.dot_dimension_numbers<[1], [1], [0], [0], [0, 0, 1, 0], [], []>} : vector<8x16xbf16>, vector<10x16xbf16>, vector<8x10xf32> -> vector<8x10xf32>
    %cst_89 = arith.constant dense<0xFF800000> : vector<8xf32>
    %228 = vector.multi_reduction <maximumf>, %227, %cst_89 [1] : vector<8x10xf32> to vector<8xf32>
    %229 = vector.shape_cast %228 : vector<8xf32> to vector<8x1xf32>
    %230 = vector.broadcast %229 : vector<8x1xf32> to vector<8x10xf32>
    %231 = arith.subf %227, %230 : vector<8x10xf32>
    %232 = math.exp %231 : vector<8x10xf32>
    %cst_90 = arith.constant dense<0.000000e+00> : vector<8xf32>
    %233 = vector.multi_reduction <add>, %232, %cst_90 [1] : vector<8x10xf32> to vector<8xf32>
    %234 = vector.shape_cast %233 : vector<8xf32> to vector<8x1xf32>
    %235 = tpu.reciprocal %234 {approx = true} : vector<8x1xf32> -> vector<8x1xf32>
    %236 = vector.broadcast %235 : vector<8x1xf32> to vector<8x10xf32>
    %237 = arith.mulf %232, %236 : vector<8x10xf32>
    %238 = arith.truncf %237 : vector<8x10xf32> to vector<8x10xbf16>
    %cst_91 = arith.constant dense<0.000000e+00> : vector<8x16xf32>
    %239 = tpu.matmul %238, %226, %cst_91 {dimension_numbers = #tpu.dot_dimension_numbers<[1], [0], [0], [1], [0, 0, 1, 1], [], []>} : vector<8x10xbf16>, vector<10x16xbf16>, vector<8x16xf32> -> vector<8x16xf32>
    %c8_92 = arith.constant 8 : index
    %c16_93 = arith.constant 16 : index
    %240 = vector.load %arg29[%c8_92, %c16_93] : memref<16x32xf32, #tpu.memory_space<vmem>>, vector<8x16xf32>
    tpu.vector_store %arg29[%c8_92, %c16_93], %239 {strides = array<i32>} : memref<16x32xf32, #tpu.memory_space<vmem>>, vector<8x16xf32>,
    %c0_94 = arith.constant 0 : index
    %c0_95 = arith.constant 0 : index
    %241 = vector.load %arg29[%c0_94, %c0_95] : memref<16x32xf32, #tpu.memory_space<vmem>>, vector<16x32xf32>
    %c0_96 = arith.constant 0 : index
    %c0_97 = arith.constant 0 : index
    %c0_98 = arith.constant 0 : index
    %242 = vector.load %arg11[%c0_96, %c0_97, %c0_98] : memref<1x32x32xbf16, #tpu.memory_space<vmem>>, vector<1x32x32xbf16>
    %243 = vector.shape_cast %242 : vector<1x32x32xbf16> to vector<32x32xbf16>
    %244 = arith.truncf %241 : vector<16x32xf32> to vector<16x32xbf16>
    %cst_99 = arith.constant dense<0.000000e+00> : vector<16x32xf32>
    %245 = tpu.matmul %244, %243, %cst_99 {dimension_numbers = #tpu.dot_dimension_numbers<[1], [0], [0], [1], [0, 0, 1, 1], [], []>} : vector<16x32xbf16>, vector<32x32xbf16>, vector<16x32xf32> -> vector<16x32xf32>
    %c0_100 = arith.constant 0 : index
    %c0_101 = arith.constant 0 : index
    %c0_102 = arith.constant 0 : index
    %246 = vector.load %arg12[%c0_100, %c0_101, %c0_102] : memref<1x1x32xf32, #tpu.memory_space<vmem>>, vector<1x1x32xf32>
    %247 = vector.shape_cast %246 : vector<1x1x32xf32> to vector<1x32xf32>
    %248 = vector.broadcast %247 : vector<1x32xf32> to vector<16x32xf32>
    %249 = arith.addf %245, %248 : vector<16x32xf32>
    %250 = arith.addf %249, %142 : vector<16x32xf32>
    %c0_103 = arith.constant 0 : index
    %c0_104 = arith.constant 0 : index
    %c0_105 = arith.constant 0 : index
    %251 = vector.load %arg19[%c0_103, %c0_104, %c0_105] : memref<1x1x32xf32, #tpu.memory_space<vmem>>, vector<1x1x32xf32>
    %252 = vector.shape_cast %251 : vector<1x1x32xf32> to vector<1x32xf32>
    %c0_106 = arith.constant 0 : index
    %c0_107 = arith.constant 0 : index
    %c0_108 = arith.constant 0 : index
    %253 = vector.load %arg20[%c0_106, %c0_107, %c0_108] : memref<1x1x32xf32, #tpu.memory_space<vmem>>, vector<1x1x32xf32>
    %254 = vector.shape_cast %253 : vector<1x1x32xf32> to vector<1x32xf32>
    %cst_109 = arith.constant dense<0.000000e+00> : vector<16xf32>
    %255 = vector.multi_reduction <add>, %250, %cst_109 [1] : vector<16x32xf32> to vector<16xf32>
    %256 = vector.shape_cast %255 : vector<16xf32> to vector<16x1xf32>
    %cst_110 = arith.constant 3.200000e+01 : f32
    %257 = vector.broadcast %cst_110 : f32 to vector<16x1xf32>
    %258 = arith.divf %256, %257 : vector<16x1xf32>
    %259 = vector.broadcast %258 : vector<16x1xf32> to vector<16x32xf32>
    %260 = arith.subf %250, %259 : vector<16x32xf32>
    %261 = arith.mulf %260, %260 : vector<16x32xf32>
    %cst_111 = arith.constant dense<0.000000e+00> : vector<16xf32>
    %262 = vector.multi_reduction <add>, %261, %cst_111 [1] : vector<16x32xf32> to vector<16xf32>
    %263 = vector.shape_cast %262 : vector<16xf32> to vector<16x1xf32>
    %cst_112 = arith.constant 3.200000e+01 : f32
    %264 = vector.broadcast %cst_112 : f32 to vector<16x1xf32>
    %265 = arith.divf %263, %264 : vector<16x1xf32>
    %266 = vector.broadcast %258 : vector<16x1xf32> to vector<16x32xf32>
    %267 = arith.subf %250, %266 : vector<16x32xf32>
    %cst_113 = arith.constant 9.99999974E-6 : f32
    %268 = vector.broadcast %cst_113 : f32 to vector<16x1xf32>
    %269 = arith.addf %265, %268 : vector<16x1xf32>
    %270 = math.rsqrt %269 : vector<16x1xf32>
    %271 = vector.broadcast %270 : vector<16x1xf32> to vector<16x32xf32>
    %272 = arith.mulf %267, %271 : vector<16x32xf32>
    %273 = vector.broadcast %252 : vector<1x32xf32> to vector<16x32xf32>
    %274 = arith.mulf %272, %273 : vector<16x32xf32>
    %275 = vector.broadcast %254 : vector<1x32xf32> to vector<16x32xf32>
    %276 = arith.addf %274, %275 : vector<16x32xf32>
    %c0_114 = arith.constant 0 : index
    %c0_115 = arith.constant 0 : index
    %c0_116 = arith.constant 0 : index
    %277 = vector.load %arg13[%c0_114, %c0_115, %c0_116] : memref<1x32x64xbf16, #tpu.memory_space<vmem>>, vector<1x32x64xbf16>
    %278 = vector.shape_cast %277 : vector<1x32x64xbf16> to vector<32x64xbf16>
    %279 = arith.truncf %276 : vector<16x32xf32> to vector<16x32xbf16>
    %cst_117 = arith.constant dense<0.000000e+00> : vector<16x64xf32>
    %280 = tpu.matmul %279, %278, %cst_117 {dimension_numbers = #tpu.dot_dimension_numbers<[1], [0], [0], [1], [0, 0, 1, 1], [], []>} : vector<16x32xbf16>, vector<32x64xbf16>, vector<16x64xf32> -> vector<16x64xf32>
    %c0_118 = arith.constant 0 : index
    %c0_119 = arith.constant 0 : index
    %c0_120 = arith.constant 0 : index
    %281 = vector.load %arg14[%c0_118, %c0_119, %c0_120] : memref<1x1x64xf32, #tpu.memory_space<vmem>>, vector<1x1x64xf32>
    %282 = vector.shape_cast %281 : vector<1x1x64xf32> to vector<1x64xf32>
    %283 = vector.broadcast %282 : vector<1x64xf32> to vector<16x64xf32>
    %284 = arith.addf %280, %283 : vector<16x64xf32>
    %cst_121 = arith.constant 0.000000e+00 : f32
    %285 = vector.broadcast %cst_121 : f32 to vector<16x64xf32>
    %286 = arith.maximumf %284, %285 : vector<16x64xf32>
    %c0_122 = arith.constant 0 : index
    %c0_123 = arith.constant 0 : index
    %c0_124 = arith.constant 0 : index
    %287 = vector.load %arg15[%c0_122, %c0_123, %c0_124] : memref<1x64x32xbf16, #tpu.memory_space<vmem>>, vector<1x64x32xbf16>
    %288 = vector.shape_cast %287 : vector<1x64x32xbf16> to vector<64x32xbf16>
    %289 = arith.truncf %286 : vector<16x64xf32> to vector<16x64xbf16>
    %cst_125 = arith.constant dense<0.000000e+00> : vector<16x32xf32>
    %290 = tpu.matmul %289, %288, %cst_125 {dimension_numbers = #tpu.dot_dimension_numbers<[1], [0], [0], [1], [0, 0, 1, 1], [], []>} : vector<16x64xbf16>, vector<64x32xbf16>, vector<16x32xf32> -> vector<16x32xf32>
    %c0_126 = arith.constant 0 : index
    %c0_127 = arith.constant 0 : index
    %c0_128 = arith.constant 0 : index
    %291 = vector.load %arg16[%c0_126, %c0_127, %c0_128] : memref<1x1x32xf32, #tpu.memory_space<vmem>>, vector<1x1x32xf32>
    %292 = vector.shape_cast %291 : vector<1x1x32xf32> to vector<1x32xf32>
    %293 = vector.broadcast %292 : vector<1x32xf32> to vector<16x32xf32>
    %294 = arith.addf %290, %293 : vector<16x32xf32>
    %295 = arith.addf %294, %276 : vector<16x32xf32>
    %c0_129 = arith.constant 0 : index
    %c0_130 = arith.constant 0 : index
    %c0_131 = arith.constant 0 : index
    %296 = vector.load %arg21[%c0_129, %c0_130, %c0_131] : memref<1x1x32xf32, #tpu.memory_space<vmem>>, vector<1x1x32xf32>
    %297 = vector.shape_cast %296 : vector<1x1x32xf32> to vector<1x32xf32>
    %c0_132 = arith.constant 0 : index
    %c0_133 = arith.constant 0 : index
    %c0_134 = arith.constant 0 : index
    %298 = vector.load %arg22[%c0_132, %c0_133, %c0_134] : memref<1x1x32xf32, #tpu.memory_space<vmem>>, vector<1x1x32xf32>
    %299 = vector.shape_cast %298 : vector<1x1x32xf32> to vector<1x32xf32>
    %cst_135 = arith.constant dense<0.000000e+00> : vector<16xf32>
    %300 = vector.multi_reduction <add>, %295, %cst_135 [1] : vector<16x32xf32> to vector<16xf32>
    %301 = vector.shape_cast %300 : vector<16xf32> to vector<16x1xf32>
    %cst_136 = arith.constant 3.200000e+01 : f32
    %302 = vector.broadcast %cst_136 : f32 to vector<16x1xf32>
    %303 = arith.divf %301, %302 : vector<16x1xf32>
    %304 = vector.broadcast %303 : vector<16x1xf32> to vector<16x32xf32>
    %305 = arith.subf %295, %304 : vector<16x32xf32>
    %306 = arith.mulf %305, %305 : vector<16x32xf32>
    %cst_137 = arith.constant dense<0.000000e+00> : vector<16xf32>
    %307 = vector.multi_reduction <add>, %306, %cst_137 [1] : vector<16x32xf32> to vector<16xf32>
    %308 = vector.shape_cast %307 : vector<16xf32> to vector<16x1xf32>
    %cst_138 = arith.constant 3.200000e+01 : f32
    %309 = vector.broadcast %cst_138 : f32 to vector<16x1xf32>
    %310 = arith.divf %308, %309 : vector<16x1xf32>
    %311 = vector.broadcast %303 : vector<16x1xf32> to vector<16x32xf32>
    %312 = arith.subf %295, %311 : vector<16x32xf32>
    %cst_139 = arith.constant 9.99999974E-6 : f32
    %313 = vector.broadcast %cst_139 : f32 to vector<16x1xf32>
    %314 = arith.addf %310, %313 : vector<16x1xf32>
    %315 = math.rsqrt %314 : vector<16x1xf32>
    %316 = vector.broadcast %315 : vector<16x1xf32> to vector<16x32xf32>
    %317 = arith.mulf %312, %316 : vector<16x32xf32>
    %318 = vector.broadcast %297 : vector<1x32xf32> to vector<16x32xf32>
    %319 = arith.mulf %317, %318 : vector<16x32xf32>
    %320 = vector.broadcast %299 : vector<1x32xf32> to vector<16x32xf32>
    %321 = arith.addf %319, %320 : vector<16x32xf32>
    %c0_140 = arith.constant 0 : index
    %c0_141 = arith.constant 0 : index
    %322 = vector.load %arg28[%c0_140, %c0_141] : memref<16x32xf32, #tpu.memory_space<vmem>>, vector<16x32xf32>
    tpu.vector_store %arg28[%c0_140, %c0_141], %321 {strides = array<i32>} : memref<16x32xf32, #tpu.memory_space<vmem>>, vector<16x32xf32>,
    %c1_i32 = arith.constant 1 : i32
    %323 = arith.cmpi eq, %arg0, %c1_i32 : i32
    %324 = arith.extui %323 : i1 to i32
    %c0_i32_142 = arith.constant 0 : i32
    %325 = arith.cmpi ne, %324, %c0_i32_142 : i32
    scf.if %325 {
      %c0_143 = arith.constant 0 : index
      %c0_144 = arith.constant 0 : index
      %326 = vector.load %arg23[%c0_143, %c0_144] : memref<1x32xf32, #tpu.memory_space<vmem>>, vector<1x32xf32>
      %c0_145 = arith.constant 0 : index
      %c0_146 = arith.constant 0 : index
      %327 = vector.load %arg24[%c0_145, %c0_146] : memref<1x32xf32, #tpu.memory_space<vmem>>, vector<1x32xf32>
      %cst_147 = arith.constant dense<0.000000e+00> : vector<16xf32>
      %328 = vector.multi_reduction <add>, %321, %cst_147 [1] : vector<16x32xf32> to vector<16xf32>
      %329 = vector.shape_cast %328 : vector<16xf32> to vector<16x1xf32>
      %cst_148 = arith.constant 3.200000e+01 : f32
      %330 = vector.broadcast %cst_148 : f32 to vector<16x1xf32>
      %331 = arith.divf %329, %330 : vector<16x1xf32>
      %332 = vector.broadcast %331 : vector<16x1xf32> to vector<16x32xf32>
      %333 = arith.subf %321, %332 : vector<16x32xf32>
      %334 = arith.mulf %333, %333 : vector<16x32xf32>
      %cst_149 = arith.constant dense<0.000000e+00> : vector<16xf32>
      %335 = vector.multi_reduction <add>, %334, %cst_149 [1] : vector<16x32xf32> to vector<16xf32>
      %336 = vector.shape_cast %335 : vector<16xf32> to vector<16x1xf32>
      %cst_150 = arith.constant 3.200000e+01 : f32
      %337 = vector.broadcast %cst_150 : f32 to vector<16x1xf32>
      %338 = arith.divf %336, %337 : vector<16x1xf32>
      %339 = vector.broadcast %331 : vector<16x1xf32> to vector<16x32xf32>
      %340 = arith.subf %321, %339 : vector<16x32xf32>
      %cst_151 = arith.constant 9.99999974E-6 : f32
      %341 = vector.broadcast %cst_151 : f32 to vector<16x1xf32>
      %342 = arith.addf %338, %341 : vector<16x1xf32>
      %343 = math.rsqrt %342 : vector<16x1xf32>
      %344 = vector.broadcast %343 : vector<16x1xf32> to vector<16x32xf32>
      %345 = arith.mulf %340, %344 : vector<16x32xf32>
      %346 = vector.broadcast %326 : vector<1x32xf32> to vector<16x32xf32>
      %347 = arith.mulf %345, %346 : vector<16x32xf32>
      %348 = vector.broadcast %327 : vector<1x32xf32> to vector<16x32xf32>
      %349 = arith.addf %347, %348 : vector<16x32xf32>
      %c0_152 = arith.constant 0 : index
      %c0_153 = arith.constant 0 : index
      %350 = vector.load %arg25[%c0_152, %c0_153] : memref<32x128xbf16, #tpu.memory_space<vmem>>, vector<32x128xbf16>
      %351 = arith.truncf %349 : vector<16x32xf32> to vector<16x32xbf16>
      %cst_154 = arith.constant dense<0.000000e+00> : vector<16x128xf32>
      %352 = tpu.matmul %351, %350, %cst_154 {dimension_numbers = #tpu.dot_dimension_numbers<[1], [0], [0], [1], [0, 0, 1, 1], [], []>} : vector<16x32xbf16>, vector<32x128xbf16>, vector<16x128xf32> -> vector<16x128xf32>
      %c0_155 = arith.constant 0 : index
      %c0_156 = arith.constant 0 : index
      %353 = vector.load %arg26[%c0_155, %c0_156] : memref<1x128xf32, #tpu.memory_space<vmem>>, vector<1x128xf32>
      %354 = vector.broadcast %353 : vector<1x128xf32> to vector<16x128xf32>
      %355 = arith.addf %352, %354 : vector<16x128xf32>
      %c0_157 = arith.constant 0 : index
      %c0_158 = arith.constant 0 : index
      %356 = vector.load %arg27[%c0_157, %c0_158] : memref<16x128xf32, #tpu.memory_space<vmem>>, vector<16x128xf32>
      tpu.vector_store %arg27[%c0_157, %c0_158], %355 {strides = array<i32>} : memref<16x128xf32, #tpu.memory_space<vmem>>, vector<16x128xf32>,
    } else {
    }
    return
  }
  func.func @transform_0(%arg0: i32) -> (i32, i32) {
    %c0_i32 = arith.constant 0 : i32
    %c0_i32_0 = arith.constant 0 : i32
    %c0_i32_1 = arith.constant 0 : i32
    return %c0_i32, %c0_i32_0 : i32, i32
  }
  func.func @transform_1(%arg0: i32) -> (i32, i32) {
    %c0_i32 = arith.constant 0 : i32
    %c0_i32_0 = arith.constant 0 : i32
    %c0_i32_1 = arith.constant 0 : i32
    return %c0_i32, %c0_i32_0 : i32, i32
  }
  func.func @transform_2(%arg0: i32) -> (i32, i32, i32) {
    %c0_i32 = arith.constant 0 : i32
    %c0_i32_0 = arith.constant 0 : i32
    %c0_i32_1 = arith.constant 0 : i32
    return %arg0, %c0_i32, %c0_i32_0 : i32, i32, i32
  }
  func.func @transform_3(%arg0: i32) -> (i32, i32, i32) {
    %c0_i32 = arith.constant 0 : i32
    %c0_i32_0 = arith.constant 0 : i32
    %c0_i32_1 = arith.constant 0 : i32
    return %arg0, %c0_i32, %c0_i32_0 : i32, i32, i32
  }
  func.func @transform_4(%arg0: i32) -> (i32, i32, i32) {
    %c0_i32 = arith.constant 0 : i32
    %c0_i32_0 = arith.constant 0 : i32
    %c0_i32_1 = arith.constant 0 : i32
    return %arg0, %c0_i32, %c0_i32_0 : i32, i32, i32
  }
  func.func @transform_5(%arg0: i32) -> (i32, i32, i32) {
    %c0_i32 = arith.constant 0 : i32
    %c0_i32_0 = arith.constant 0 : i32
    %c0_i32_1 = arith.constant 0 : i32
    return %arg0, %c0_i32, %c0_i32_0 : i32, i32, i32
  }
  func.func @transform_6(%arg0: i32) -> (i32, i32, i32) {
    %c0_i32 = arith.constant 0 : i32
    %c0_i32_0 = arith.constant 0 : i32
    %c0_i32_1 = arith.constant 0 : i32
    return %arg0, %c0_i32, %c0_i32_0 : i32, i32, i32
  }
  func.func @transform_7(%arg0: i32) -> (i32, i32, i32) {
    %c0_i32 = arith.constant 0 : i32
    %c0_i32_0 = arith.constant 0 : i32
    %c0_i32_1 = arith.constant 0 : i32
    return %arg0, %c0_i32, %c0_i32_0 : i32, i32, i32
  }
  func.func @transform_8(%arg0: i32) -> (i32, i32, i32) {
    %c0_i32 = arith.constant 0 : i32
    %c0_i32_0 = arith.constant 0 : i32
    %c0_i32_1 = arith.constant 0 : i32
    return %arg0, %c0_i32, %c0_i32_0 : i32, i32, i32
  }
  func.func @transform_9(%arg0: i32) -> (i32, i32, i32) {
    %c0_i32 = arith.constant 0 : i32
    %c0_i32_0 = arith.constant 0 : i32
    %c0_i32_1 = arith.constant 0 : i32
    return %arg0, %c0_i32, %c0_i32_0 : i32, i32, i32
  }
  func.func @transform_10(%arg0: i32) -> (i32, i32, i32) {
    %c0_i32 = arith.constant 0 : i32
    %c0_i32_0 = arith.constant 0 : i32
    %c0_i32_1 = arith.constant 0 : i32
    return %arg0, %c0_i32, %c0_i32_0 : i32, i32, i32
  }
  func.func @transform_11(%arg0: i32) -> (i32, i32, i32) {
    %c0_i32 = arith.constant 0 : i32
    %c0_i32_0 = arith.constant 0 : i32
    %c0_i32_1 = arith.constant 0 : i32
    return %arg0, %c0_i32, %c0_i32_0 : i32, i32, i32
  }
  func.func @transform_12(%arg0: i32) -> (i32, i32, i32) {
    %c0_i32 = arith.constant 0 : i32
    %c0_i32_0 = arith.constant 0 : i32
    %c0_i32_1 = arith.constant 0 : i32
    return %arg0, %c0_i32, %c0_i32_0 : i32, i32, i32
  }
  func.func @transform_13(%arg0: i32) -> (i32, i32, i32) {
    %c0_i32 = arith.constant 0 : i32
    %c0_i32_0 = arith.constant 0 : i32
    %c0_i32_1 = arith.constant 0 : i32
    return %arg0, %c0_i32, %c0_i32_0 : i32, i32, i32
  }
  func.func @transform_14(%arg0: i32) -> (i32, i32, i32) {
    %c0_i32 = arith.constant 0 : i32
    %c0_i32_0 = arith.constant 0 : i32
    %c0_i32_1 = arith.constant 0 : i32
    return %arg0, %c0_i32, %c0_i32_0 : i32, i32, i32
  }
  func.func @transform_15(%arg0: i32) -> (i32, i32, i32) {
    %c0_i32 = arith.constant 0 : i32
    %c0_i32_0 = arith.constant 0 : i32
    %c0_i32_1 = arith.constant 0 : i32
    return %arg0, %c0_i32, %c0_i32_0 : i32, i32, i32
  }
  func.func @transform_16(%arg0: i32) -> (i32, i32, i32) {
    %c0_i32 = arith.constant 0 : i32
    %c0_i32_0 = arith.constant 0 : i32
    %c0_i32_1 = arith.constant 0 : i32
    return %arg0, %c0_i32, %c0_i32_0 : i32, i32, i32
  }
  func.func @transform_17(%arg0: i32) -> (i32, i32, i32) {
    %c0_i32 = arith.constant 0 : i32
    %c0_i32_0 = arith.constant 0 : i32
    %c0_i32_1 = arith.constant 0 : i32
    return %arg0, %c0_i32, %c0_i32_0 : i32, i32, i32
  }
  func.func @transform_18(%arg0: i32) -> (i32, i32, i32) {
    %c0_i32 = arith.constant 0 : i32
    %c0_i32_0 = arith.constant 0 : i32
    %c0_i32_1 = arith.constant 0 : i32
    return %arg0, %c0_i32, %c0_i32_0 : i32, i32, i32
  }
  func.func @transform_19(%arg0: i32) -> (i32, i32, i32) {
    %c0_i32 = arith.constant 0 : i32
    %c0_i32_0 = arith.constant 0 : i32
    %c0_i32_1 = arith.constant 0 : i32
    return %arg0, %c0_i32, %c0_i32_0 : i32, i32, i32
  }
  func.func @transform_20(%arg0: i32) -> (i32, i32, i32) {
    %c0_i32 = arith.constant 0 : i32
    %c0_i32_0 = arith.constant 0 : i32
    %c0_i32_1 = arith.constant 0 : i32
    return %arg0, %c0_i32, %c0_i32_0 : i32, i32, i32
  }
  func.func @transform_21(%arg0: i32) -> (i32, i32, i32) {
    %c0_i32 = arith.constant 0 : i32
    %c0_i32_0 = arith.constant 0 : i32
    %c0_i32_1 = arith.constant 0 : i32
    return %arg0, %c0_i32, %c0_i32_0 : i32, i32, i32
  }
  func.func @transform_22(%arg0: i32) -> (i32, i32) {
    %c0_i32 = arith.constant 0 : i32
    %c0_i32_0 = arith.constant 0 : i32
    %c0_i32_1 = arith.constant 0 : i32
    return %c0_i32, %c0_i32_0 : i32, i32
  }
  func.func @transform_23(%arg0: i32) -> (i32, i32) {
    %c0_i32 = arith.constant 0 : i32
    %c0_i32_0 = arith.constant 0 : i32
    %c0_i32_1 = arith.constant 0 : i32
    return %c0_i32, %c0_i32_0 : i32, i32
  }
  func.func @transform_24(%arg0: i32) -> (i32, i32) {
    %c0_i32 = arith.constant 0 : i32
    %c0_i32_0 = arith.constant 0 : i32
    %c0_i32_1 = arith.constant 0 : i32
    return %c0_i32, %c0_i32_0 : i32, i32
  }
  func.func @transform_25(%arg0: i32) -> (i32, i32) {
    %c0_i32 = arith.constant 0 : i32
    %c0_i32_0 = arith.constant 0 : i32
    %c0_i32_1 = arith.constant 0 : i32
    return %c0_i32, %c0_i32_0 : i32, i32
  }
  func.func @transform_26(%arg0: i32) -> (i32, i32) {
    %c0_i32 = arith.constant 0 : i32
    %c0_i32_0 = arith.constant 0 : i32
    %c0_i32_1 = arith.constant 0 : i32
    return %c0_i32, %c0_i32_0 : i32, i32
  }
}

</mosaic_0001>

<bundles_post_ra>
// kernel: transformer_forward.2
= control target key start
LH: loop header
LB: loop body
LE: loop exit
PB: predicated region body
PF: predicated region fallthrough
CT: control target
= control target key end

     0   :  { %s2255_s21 = smov 0   ;;  %s2550_s0 = inlined_call_operand.vmem [shape: f32[2,10], index: 0, kind: input, shape index: {}]   ;;  %s2551_s1 = inlined_call_operand.vmem [shape: f32[20,32], index: 1, kind: input, shape index: {}]   ;;  %s2552_s2 = inlined_call_operand.vmem [shape: bf16[2,32,96], index: 2, kind: input, shape index: {}]   ;;  %s2553_s3 = inlined_call_operand.vmem [shape: f32[2,1,96], index: 3, kind: input, shape index: {}]   ;;  %s2554_s4 = inlined_call_operand.vmem [shape: bf16[2,32,32], index: 4, kind: input, shape index: {}]   ;;  %s2555_s5 = inlined_call_operand.vmem [shape: f32[2,1,32], index: 5, kind: input, shape index: {}]   ;;  %s2556_s6 = inlined_call_operand.vmem [shape: bf16[2,32,64], index: 6, kind: input, shape index: {}]   ;;  %s2557_s7 = inlined_call_operand.vmem [shape: f32[2,1,64], index: 7, kind: input, shape index: {}]   ;;  %s2558_s8 = inlined_call_operand.vmem [shape: bf16[2,64,32], index: 8, kind: input, shape index: {}]   ;;  %s2559_s9 = inlined_call_operand.vmem [shape: f32[2,1,32], index: 9, kind: input, shape index: {}]   ;;  %s2560_s10 = inlined_call_operand.vmem [shape: f32[2,1,32], index: 10, kind: input, shape index: {}]   ;;  %s2561_s11 = inlined_call_operand.vmem [shape: f32[2,1,32], index: 11, kind: input, shape index: {}]   ;;  %s2562_s12 = inlined_call_operand.vmem [shape: f32[2,1,32], index: 12, kind: input, shape index: {}]   ;;  %s2563_s13 = inlined_call_operand.vmem [shape: f32[2,1,32], index: 13, kind: input, shape index: {}]   ;;  %s2564_s14 = inlined_call_operand.vmem [shape: f32[1,32], index: 14, kind: input, shape index: {}]   ;;  %s2565_s15 = inlined_call_operand.vmem [shape: f32[1,32], index: 15, kind: input, shape index: {}]   ;;  %s2566_s16 = inlined_call_operand.vmem [shape: f32[20,32], index: 16, kind: output, shape index: {}]  }
   0x1   :  { %2572 = sst [smem:[#allocation4_spill]] %s2550_s0 }
   0x2   :  { %2573 = sst [smem:[#allocation5_spill]] %s2552_s2 }
   0x3   :  { %2574 = sst [smem:[#allocation6_spill]] %s2554_s4 }
   0x4   :  { %2575 = sst [smem:[#allocation7_spill]] %s2556_s6 }
   0x5   :  { %2576 = sst [smem:[#allocation8_spill]] %s2557_s7 }
   0x6   :  { %2577 = sst [smem:[#allocation9_spill]] %s2564_s14 }
   0x7   :  { %2578 = sst [smem:[#allocation10_spill]] %s2565_s15 }
   0x8   :  { %2579 = sst [smem:[#allocation11_spill]] %s2566_s16 }
   0x9 LB: > { %2580 = sst [smem:[#allocation3_spill]] %s2160_s21  ;;  %s2261_s22 = sadd.s32 4294967295, %s2160_s21   ;;  %s2160_s21 = sphi %s2255_s21, %s26_s21  }
   0xa   : > { %p1906_p0 = scmp.ge.s32.totalorder %s2160_s21, 1  ;;  %p551_p1 = scmp.lt.s32.totalorder %s2160_s21, 3 }
   0xc   : > { %p552_p2 = pnand %p1906_p0, %p551_p1 }
   0xd   : > { %p635_p3 = scmp.lt.s32.totalorder (!%p552_p2), %s2261_s22, 1  ;;  %s2581_s2 = sld [smem:[#allocation5_spill]] (!%p552_p2) }
   0xe   : > { %555 = sbr.rel (%p552_p2) target bundleno = 2790 (0xae6), region = 84  ;;  %s2582_s4 = sld [smem:[#allocation6_spill]] (!%p552_p2) }
   0xf   : > { %s2583_s6 = sld [smem:[#allocation7_spill]] (!%p552_p2)  ;;  %p1915_p4 = scmp.ne.s32.totalorder (!%p552_p2), %s2261_s22, 0 }
  0x13   : > { %s2267_s23 = scalar_select %p635_p3, %s2261_s22, 1 }
  0x14   : > { %s2585_s25 = sld [smem:[#allocation11_spill]] (!%p1915_p4) }
  0x15   : > { %s1956_s24 = sshll.u32 %s2267_s23, 4  ;;  %s1959_s28 = sshll.u32 %s2267_s23, 5 }
  0x16   : > { %s639_s30 = scalar_lea.vmem %s2581_s2, %s1956_s24  ;;  %s2280_s18 = scalar_lea.vmem %s2582_s4, %s1956_s24 }
  0x17   : > { %s2289_s16 = scalar_lea.vmem %s2583_s6, %s1956_s24  ;;  %s2299_s0 = scalar_lea.vmem %s2558_s8, %s1959_s28 }
  0x18   : > { %s666_s19 = scalar_lea.vmem %s2559_s9, %s2267_s23  ;;  %s669_s14 = scalar_lea.vmem %s2560_s10, %s2267_s23 }
  0x19   : > { %s672_s6 = scalar_lea.vmem %s2561_s11, %s2267_s23  ;;  %s675_s27 = scalar_lea.vmem %s2562_s12, %s2267_s23 }
  0x1a   : > { %s678_s28 = scalar_lea.vmem %s2563_s13, %s2267_s23  ;;  %683 = sbr.rel (%p1915_p4) target bundleno = 34 (0x22), region = 88 }
  0x1f   : > { %v684_v0 = vld [vmem:[%s2551_s1] sm:$0xff]  ;;  %vm687_vm0 = vcmask 261120   ;;  %v685_v1 = vld [vmem:[%s2551_s1 + $0x8] sm:$0xff]  ;;  %v686_v2 = vld [vmem:[%s2551_s1 + $0x10] sm:$0xf]  ;;  %vm690_vm1 = vcmask 257024  }
  0x20   : > { %688 = vst.msk [vmem:[%s2585_s25] sm:$0xff] %vm687_vm0, %v684_v0  ;;  %689 = vst.msk [vmem:[%s2585_s25 + $0x8] sm:$0xff] %vm687_vm0, %v685_v1 }
  0x21   : > { %691 = vst.msk [vmem:[%s2585_s25 + $0x10] sm:$0xf] %vm690_vm1, %v686_v2 }
  0x22 PF: > { %v2094_v3 = vld [vmem:[%s639_s30 + $0x8] sm:$0xff]   ;;  %v2095_v4 = vld [vmem:[%s639_s30] sm:$0xff]   ;;  %s2586_s20 = sld [smem:[#allocation11_spill]]  ;;  %vm720_vm2 = vcmask 261120   ;;  %v2162_v10 = vmov 0.0   ;;  %vm2163_vm3 = vmmov 0   ;;  %s2587_s2 = scalar_lea.vmem %s2553_s3, %s2267_s23  ;;  %v777_v32 = vlaneseq }
  0x23   : > { %1994 = vmatprep.subr.bf16.mxu0 %v2094_v3  ;;  %2002 = vmatprep.subr.bf16.mxu1 %v2162_v10  ;;  %v1916_v13 = vld [vmem:[%s2587_s2] ss:$0 sm:$0xff]  ;;  %s2164_s4 = smov 112   ;;  %s2165_s29 = smov 96   ;;  %vm784_vm4 = vcmask 130048   ;;  %vm832_vm5 = vcmask 80896  }
  0x24   : > { %1995 = vmatpush3.bf16.msra.mxu0 %v2094_v3  ;;  %2004 = vmatprep.mubr.msk.bf16.mxu1 %vm2163_vm3, %v2162_v10  ;;  %s2166_s21 = smov 80   ;;  %v778_v33 = vshrl.u32 %v777_v32, 7  ;;  %s2588_s15 = sld [smem:[#allocation4_spill]]  ;;  %vm836_vm6 = vcmask 74752   ;;  %vm862_vm7 = vcmask 1044480   ;;  %vm908_vm8 = vcmask 123904  }
  0x25   : > { %1996 = vmatprep.subr.bf16.mxu0 %v2095_v4  ;;  %s2167_s24 = smov 64   ;;  %s2168_s7 = smov 48   ;;  %vm1041_vm9 = vcmask 261248   ;;  %vm1043_vm10 = vcmask 255104   ;;  %vm1401_vm11 = vcmask 257024   ;;  %vm1577_vm12 = vcmask 523264  }
  0x26   : > { %v779_v34 = vsub.s32 0, %v778_v33  ;;  %v1048_v47 = vsub.s32 1, %v778_v33  ;;  %s2169_s26 = smov 16   ;;  %s2589_s25 = scalar_lea.vmem %s2555_s5, %s2267_s23 }
  0x27   : > { %p1950_p5 = scmp.eq.s32.totalorder %s2261_s22, 1 }
  0x28   : > { %v2343_v5 = vld [vmem:[%s2586_s20] sm:$0xff]  ;;  %v2348_v6 = vld [vmem:[%s2586_s20 + $0x8] sm:$0xff]  ;;  %v2353_v7 = vld [vmem:[%s2586_s20 + $0x10] sm:$0xf]  ;;  %1997 = vmatpush3.bf16.msra.mxu0 %v2095_v4 }
  0x29   : > { %v699_v8 = vpack.c.bf16 %v2348_v6, %v2343_v5  ;;  %v700_v9 = vpack.c.bf16 %v2353_v7, %v2353_v7  ;;  %2008 = vmatprep.subr.bf16.mxu0 %v2162_v10 }
  0x2a   : > { %v775_v35 = vld [vmem:[%s2588_s15] sm:$0x3] }
  0x2b   : > { %1998 = vmatprep.mubr.msk.bf16.mxu0 %vm720_vm2, %v699_v8  ;;  %v780_v36 = vrot.slane %v775_v35, %v779_v34  ;;  %v1049_v52 = vrot.slane %v775_v35, %v1048_v47 }
  0x2c   : > { %1999 = vmatmul.mubr.msk.bf16.vlgmr.msra.gmra.mxu0 %vm720_vm2, %v700_v9 }
  0x2d   : > { %2010 = vmatprep.mubr.msk.bf16.mxu0 %vm2163_vm3, %v2162_v10 }
  0xec   : > { %v2000_v11 = vpop.f32.mrf.mxu0 }
  0xed   : > { %v770_v16 = vadd.f32 %v2000_v11, %v1916_v13 }
  0xee   : > { %v761_v12 = vpop.f32.mrf.mxu0 }
  0xef   : > { %v762_v17 = vadd.f32 %v1916_v13, %v761_v12 }
  0xf0   : > { %v2001_v14 = vpop.f32.mrf.mxu0 }
  0xf2   : > { %v764_v15 = vpop.f32.mrf.mxu0 }
  0xf3   : > { %v765_v18 = vadd.f32 %v1916_v13, %v764_v15 }
  0xf5   : > { %v2372_v19 = vpack.c.bf16 %v765_v18, %v762_v17  ;;  %v1045_v20 = vpack.c.bf16 %v770_v16, %v765_v18 }
  0xf7   : > { %910 = vrot.lane.b32.xlu1 %v2372_v19, %s2164_s4  ;;  %782 = vrot.lane.b32.xlu0 %v2372_v19, %s2165_s29  ;;  %v2376_v21 = vrot.slane %v1045_v20, 1 }
  0xfb   : > { %1052 = vrot.lane.b32.xlu1 %v2376_v21, %s2165_s29  ;;  %912 = vrot.lane.b32.xlu0 %v2372_v19, %s2166_s21 }
  0xff   : > { %1175 = vrot.lane.b32.xlu1 %v2376_v21, %s2164_s4  ;;  %1177 = vrot.lane.b32.xlu0 %v2376_v21, %s2166_s21  ;;  %s2590_s21 = sld [smem:[#allocation8_spill]] }
 0x105   : > { %s2591_s17 = scalar_lea.vmem %s2590_s21, %s2267_s23 }
 0x169   : > { %v783_v22 = vpop.permute.xlu0 %782  ;;  %v911_v25 = vpop.permute.xlu1 %910 }
 0x16a   : > { %v789_v23 = vsel %vm784_vm4, %v783_v22, 0 }
 0x16b   : > { %2003 = vmatpush3.bf16.xpose.msra.mxu1 %v789_v23 }
 0x16c   : > { %2014 = vmatprep.subr.bf16.mxu1 %v2162_v10 }
 0x16d   : > { %v913_v24 = vpop.permute.xlu0 %912  ;;  %v1053_v27 = vpop.permute.xlu1 %1052 }
 0x16e   : > { %v918_v26 = vsel %vm784_vm4, %v913_v24, 0  ;;  %v1058_v28 = vsel %vm784_vm4, %v1053_v27, 0 }
 0x171   : > { %v1178_v29 = vpop.permute.xlu0 %1177  ;;  %v1176_v31 = vpop.permute.xlu1 %1175 }
 0x172   : > { %2005 = vmatmul.mubr.msk.bf16.vlgmr.msra.gmra.mxu1 %vm784_vm4, %v2372_v19  ;;  %v1183_v30 = vsel %vm784_vm4, %v1178_v29, 0 }
 0x173   : > { %2015 = vmatpush3.bf16.xpose.msra.mxu1 %v918_v26  ;;  %2016 = vmatprep.mubr.msk.bf16.mxu1 %vm2163_vm3, %v2162_v10 }
 0x174   : > { %2026 = vmatprep.subr.bf16.mxu1 %v2162_v10 }
 0x17a   : > { %2017 = vmatmul.mubr.msk.bf16.vlgmr.msra.gmra.mxu1 %vm784_vm4, %v911_v25 }
 0x17b   : > { %2027 = vmatpush3.bf16.xpose.msra.mxu1 %v1058_v28  ;;  %2028 = vmatprep.mubr.msk.bf16.mxu1 %vm2163_vm3, %v2162_v10 }
 0x17c   : > { %2038 = vmatprep.subr.bf16.mxu1 %v2162_v10 }
 0x182   : > { %2029 = vmatmul.mubr.msk.bf16.vlgmr.msra.gmra.mxu1 %vm784_vm4, %v2376_v21 }
 0x183   : > { %2039 = vmatpush3.bf16.xpose.msra.mxu1 %v1183_v30  ;;  %2040 = vmatprep.mubr.msk.bf16.mxu1 %vm2163_vm3, %v2162_v10 }
 0x18a   : > { %2041 = vmatmul.mubr.msk.bf16.vlgmr.msra.gmra.mxu1 %vm784_vm4, %v1176_v31 }
 0x232   : > { %v825_v37 = vpop.f32.mrf.mxu1 }
 0x233   : > { %v826_v38 = vadd.f32 %v825_v37, %v780_v36 }
 0x234   : > { %v2006_v39 = vpop.f32.mrf.mxu1 }
 0x235   : > { %v833_v40 = vsel %vm832_vm5, %v826_v38, -inf }
 0x236   : > { %834 = vmax.xlane.f32.xlu0 %v833_v40  ;;  %v828_v41 = vpop.f32.mrf.mxu1 }
 0x237   : > { %v829_v42 = vadd.f32 %v828_v41, %v780_v36 }
 0x238   : > { %v2007_v43 = vpop.f32.mrf.mxu1 }
 0x239   : > { %v837_v44 = vsel %vm836_vm6, %v829_v42, -inf }
 0x23a   : > { %838 = vmax.xlane.f32.xlu1 %v837_v44  ;;  %v954_v45 = vpop.f32.mrf.mxu1 }
 0x23b   : > { %v955_v46 = vadd.f32 %v954_v45, %v780_v36 }
 0x23c   : > { %v2018_v48 = vpop.f32.mrf.mxu1 }
 0x23d   : > { %v961_v49 = vsel %vm832_vm5, %v955_v46, -inf }
 0x23e   : > { %962 = vmax.xlane.f32.xlu0 %v961_v49  ;;  %v957_v50 = vpop.f32.mrf.mxu1 }
 0x23f   : > { %v958_v51 = vadd.f32 %v957_v50, %v780_v36 }
 0x240   : > { %v2019_v53 = vpop.f32.mrf.mxu1 }
 0x241   : > { %v964_v54 = vsel %vm836_vm6, %v958_v51, -inf }
 0x242   : > { %965 = vmax.xlane.f32.xlu0 %v964_v54  ;;  %v1094_v55 = vpop.f32.mrf.mxu1 }
 0x243   : > { %v1095_v56 = vadd.f32 %v1094_v55, %v1049_v52 }
 0x244   : > { %v2030_v57 = vpop.f32.mrf.mxu1 }
 0x245   : > { %v1101_v58 = vsel %vm832_vm5, %v1095_v56, -inf }
 0x246   : > { %1102 = vmax.xlane.f32.xlu1 %v1101_v58  ;;  %v1097_v59 = vpop.f32.mrf.mxu1 }
 0x247   : > { %v1098_v60 = vadd.f32 %v1097_v59, %v1049_v52 }
 0x248   : > { %v2031_v61 = vpop.f32.mrf.mxu1 }
 0x249   : > { %v1104_v62 = vsel %vm836_vm6, %v1098_v60, -inf }
 0x24a   : > { %1105 = vmax.xlane.f32.xlu0 %v1104_v62  ;;  %v1219_v63 = vpop.f32.mrf.mxu1 }
 0x24b   : > { %v1220_v0 = vadd.f32 %v1219_v63, %v1049_v52 }
 0x24c   : > { %v2042_v1 = vpop.f32.mrf.mxu1 }
 0x24d   : > { %v1226_v2 = vsel %vm832_vm5, %v1220_v0, -inf }
 0x24e   : > { %1227 = vmax.xlane.f32.xlu1 %v1226_v2  ;;  %v1222_v3 = vpop.f32.mrf.mxu1 }
 0x24f   : > { %v1223_v4 = vadd.f32 %v1222_v3, %v1049_v52 }
 0x250   : > { %v2043_v8 = vpop.f32.mrf.mxu1 }
 0x251   : > { %v1229_v9 = vsel %vm836_vm6, %v1223_v4, -inf }
 0x252   : > { %1230 = vmax.xlane.f32.xlu0 %v1229_v9 }
 0x25f   : > { %857 = vrot.lane.b32.xlu1 %v2372_v19, %s2167_s24 }
 0x2bf   : > { %v835_v11 = vpop.xlane.xlu0 %834 }
 0x2c0   : > { %v840_v12 = vsub.f32 %v826_v38, %v835_v11 }
 0x2c2   : > { %v842_v13 = vmul.f32 1.442695, %v840_v12 }
 0x2c3   : > { %v839_v14 = vpop.xlane.xlu1 %838 }
 0x2c4   : > { %2104 = vpow2.f32 %v842_v13  ;;  %v841_v15 = vsub.f32 %v829_v42, %v839_v14 }
 0x2c6   : > { %v844_v16 = vmul.f32 1.442695, %v841_v15 }
 0x2c7   : > { %v963_v17 = vpop.xlane.xlu0 %962 }
 0x2c8   : > { %2106 = vpow2.f32 %v844_v16  ;;  %v967_v18 = vsub.f32 %v955_v46, %v963_v17 }
 0x2ca   : > { %v969_v20 = vmul.f32 1.442695, %v967_v18 }
 0x2cb   : > { %v966_v22 = vpop.xlane.xlu0 %965 }
 0x2cc   : > { %2108 = vpow2.f32 %v969_v20  ;;  %v968_v23 = vsub.f32 %v958_v51, %v966_v22 }
 0x2ce   : > { %v971_v24 = vmul.f32 1.442695, %v968_v23 }
 0x2cf   : > { %v1103_v25 = vpop.xlane.xlu1 %1102 }
 0x2d0   : > { %2110 = vpow2.f32 %v971_v24  ;;  %v1107_v26 = vsub.f32 %v1095_v56, %v1103_v25 }
 0x2d1   : > { %v2105_v27 = vpop.eup %2104 }
 0x2d2   : > { %v1109_v28 = vmul.f32 1.442695, %v1107_v26  ;;  %v846_v29 = vsel %vm832_vm5, %v2105_v27, 0.0 }
 0x2d3   : > { %847 = vadd.xlane.f32.xlu1 %v846_v29  ;;  %v1106_v30 = vpop.xlane.xlu0 %1105 }
 0x2d4   : > { %2112 = vpow2.f32 %v1109_v28  ;;  %v1108_v31 = vsub.f32 %v1098_v60, %v1106_v30 }
 0x2d5   : > { %v2107_v32 = vpop.eup %2106 }
 0x2d6   : > { %v1111_v33 = vmul.f32 1.442695, %v1108_v31  ;;  %v849_v34 = vsel %vm836_vm6, %v2107_v32, 0.0 }
 0x2d7   : > { %v1228_v35 = vpop.xlane.xlu1 %1227  ;;  %850 = vadd.xlane.f32.xlu0 %v849_v34 }
 0x2d8   : > { %2114 = vpow2.f32 %v1111_v33  ;;  %v1232_v36 = vsub.f32 %v1220_v0, %v1228_v35 }
 0x2d9   : > { %v2109_v37 = vpop.eup %2108 }
 0x2da   : > { %v1234_v38 = vmul.f32 1.442695, %v1232_v36  ;;  %v973_v39 = vsel %vm832_vm5, %v2109_v37, 0.0 }
 0x2db   : > { %v858_v40 = vpop.permute.xlu1 %857  ;;  %974 = vadd.xlane.f32.xlu1 %v973_v39  ;;  %v1231_v41 = vpop.xlane.xlu0 %1230 }
 0x2dc   : > { %2116 = vpow2.f32 %v1234_v38  ;;  %v864_v42 = vsel %vm862_vm7, %v858_v40, 0  ;;  %v1233_v43 = vsub.f32 %v1223_v4, %v1231_v41  ;;  %v2097_v38 = vld [vmem:[%s2280_s18] sm:$0xff]  }
 0x2dd   : > { %v2111_v44 = vpop.eup %2110  ;;  %2009 = vmatpush3.bf16.msra.mxu0 %v864_v42 }
 0x2de   : > { %v1236_v45 = vmul.f32 1.442695, %v1233_v43  ;;  %v976_v46 = vsel %vm836_vm6, %v2111_v44, 0.0  ;;  %2020 = vmatprep.subr.bf16.mxu0 %v2162_v10 }
 0x2df   : > { %977 = vadd.xlane.f32.xlu0 %v976_v46 }
 0x2e0   : > { %2118 = vpow2.f32 %v1236_v45 }
 0x2e1   : > { %v2113_v47 = vpop.eup %2112 }
 0x2e2   : > { %v1113_v48 = vsel %vm832_vm5, %v2113_v47, 0.0 }
 0x2e3   : > { %1114 = vadd.xlane.f32.xlu1 %v1113_v48 }
 0x2e5   : > { %v2115_v49 = vpop.eup %2114 }
 0x2e6   : > { %v1116_v50 = vsel %vm836_vm6, %v2115_v49, 0.0 }
 0x2e7   : > { %1117 = vadd.xlane.f32.xlu0 %v1116_v50 }
 0x2e9   : > { %v2117_v51 = vpop.eup %2116 }
 0x2ea   : > { %v1238_v52 = vsel %vm832_vm5, %v2117_v51, 0.0 }
 0x2eb   : > { %1239 = vadd.xlane.f32.xlu1 %v1238_v52 }
 0x2ed   : > { %v2119_v53 = vpop.eup %2118 }
 0x2ee   : > { %v1241_v54 = vsel %vm836_vm6, %v2119_v53, 0.0 }
 0x2ef   : > { %1242 = vadd.xlane.f32.xlu0 %v1241_v54 }
 0x2fc   : > { %1124 = vrot.lane.b32.xlu1 %v2376_v21, %s2167_s24 }
 0x300   : > { %1249 = vrot.lane.b32.xlu1 %v2376_v21, %s2168_s7 }
 0x305   : > { %984 = vrot.lane.b32.xlu0 %v2372_v19, %s2168_s7 }
 0x35c   : > { %v848_v55 = vpop.xlane.xlu1 %847 }
 0x35d   : > { %2120 = vrcp.f32 %v848_v55 }
 0x360   : > { %v851_v56 = vpop.xlane.xlu0 %850 }
 0x361   : > { %2122 = vrcp.f32 %v851_v56  ;;  %v1929_v56 = vld [vmem:[%s2589_s25] ss:$0 sm:$0xff] }
 0x364   : > { %v975_v58 = vpop.xlane.xlu1 %974 }
 0x368   : > { %v978_v57 = vpop.xlane.xlu0 %977 }
 0x369   : > { %2124 = vrcp.f32 %v978_v57 }
 0x36a   : > { %v2121_v59 = vpop.eup %2120  ;;  %2126 = vrcp.f32 %v975_v58 }
 0x36b   : > { %v854_v61 = vmul.f32 %v2121_v59, %v2105_v27 }
 0x36c   : > { %v1115_v1 = vpop.xlane.xlu1 %1114 }
 0x36e   : > { %v2123_v60 = vpop.eup %2122 }
 0x36f   : > { %v855_v62 = vmul.f32 %v2123_v60, %v2107_v32 }
 0x370   : > { %v1118_v63 = vpop.xlane.xlu0 %1117 }
 0x371   : > { %v856_v0 = vpack.c.bf16 %v855_v62, %v854_v61  ;;  %2128 = vrcp.f32 %v1118_v63 }
 0x372   : > { %2130 = vrcp.f32 %v1115_v1 }
 0x373   : > { %2011 = vmatmul.mubr.msk.bf16.vlgmr.msra.gmra.mxu0 %vm832_vm5, %v856_v0 }
 0x374   : > { %2022 = vmatprep.mubr.msk.bf16.mxu0 %vm2163_vm3, %v2162_v10  ;;  %v1240_v21 = vpop.xlane.xlu1 %1239 }
 0x376   : > { %v2125_v19 = vpop.eup %2124 }
 0x377   : > { %v2127_v3 = vpop.eup %2126  ;;  %v982_v4 = vmul.f32 %v2125_v19, %v2111_v44 }
 0x378   : > { %v1243_v2 = vpop.xlane.xlu0 %1242  ;;  %v981_v11 = vmul.f32 %v2127_v3, %v2109_v37  ;;  %v1125_v12 = vpop.permute.xlu1 %1124  ;;  %v2096_v37 = vld [vmem:[%s2280_s18 + $0x8] sm:$0xff]   ;;  %s2592_s18 = sld [smem:[#allocation11_spill]] (!%p1950_p5) }
 0x379   : > { %2132 = vrcp.f32 %v1243_v2  ;;  %v1130_v15 = vsel %vm862_vm7, %v1125_v12, 0  ;;  %2050 = vmatprep.subr.bf16.mxu1 %v2096_v37 }
 0x37a   : > { %2134 = vrcp.f32 %v1240_v21  ;;  %v983_v13 = vpack.c.bf16 %v982_v4, %v981_v11  ;;  %2051 = vmatpush3.bf16.msra.mxu1 %v2096_v37 }
 0x37b   : > { %2052 = vmatprep.subr.bf16.mxu1 %v2097_v38 }
 0x37c   : > { %v985_v8 = vpop.permute.xlu0 %984  ;;  %v1250_v20 = vpop.permute.xlu1 %1249 }
 0x37d   : > { %v990_v9 = vsel %vm862_vm7, %v985_v8, 0  ;;  %v1255_v24 = vsel %vm862_vm7, %v1250_v20, 0  ;;  %v2098_v20 = vld [vmem:[%s2289_s16 + $0x8] sm:$0xff]  }
 0x37e   : > { %2021 = vmatpush3.bf16.msra.mxu0 %v990_v9  ;;  %v2129_v14 = vpop.eup %2128  ;;  %2053 = vmatpush3.bf16.msra.mxu1 %v2097_v38 }
 0x37f   : > { %2032 = vmatprep.subr.bf16.mxu0 %v2162_v10  ;;  %v2131_v16 = vpop.eup %2130  ;;  %v1122_v17 = vmul.f32 %v2129_v14, %v2115_v49 }
 0x380   : > { %v1121_v18 = vmul.f32 %v2131_v16, %v2113_v47 }
 0x381   : > { %2023 = vmatmul.mubr.msk.bf16.vlgmr.msra.gmra.mxu0 %vm832_vm5, %v983_v13 }
 0x382   : > { %2033 = vmatpush3.bf16.msra.mxu0 %v1130_v15  ;;  %2034 = vmatprep.mubr.msk.bf16.mxu0 %vm2163_vm3, %v2162_v10  ;;  %v1123_v22 = vpack.c.bf16 %v1122_v17, %v1121_v18 }
 0x383   : > { %2044 = vmatprep.subr.bf16.mxu0 %v2162_v10 }
 0x386   : > { %v2133_v23 = vpop.eup %2132 }
 0x387   : > { %v2135_v25 = vpop.eup %2134  ;;  %v1247_v26 = vmul.f32 %v2133_v23, %v2119_v53  ;;  %v2100_v23 = vld [vmem:[%s2299_s0 + $0x18] sm:$0xff]  }
 0x388   : > { %v1246_v27 = vmul.f32 %v2135_v25, %v2117_v51  ;;  %2066 = vmatprep.subr.bf16.mxu1 %v2100_v23 }
 0x389   : > { %2035 = vmatmul.mubr.msk.bf16.vlgmr.msra.gmra.mxu0 %vm832_vm5, %v1123_v22  ;;  %v2099_v22 = vld [vmem:[%s2289_s16] sm:$0xff]  }
 0x38a   : > { %2045 = vmatpush3.bf16.msra.mxu0 %v1255_v24  ;;  %2046 = vmatprep.mubr.msk.bf16.mxu0 %vm2163_vm3, %v2162_v10  ;;  %v1248_v28 = vpack.c.bf16 %v1247_v26, %v1246_v27 }
 0x38b   : > { %2058 = vmatprep.subr.bf16.mxu0 %v2098_v20 }
 0x391   : > { %2047 = vmatmul.mubr.msk.bf16.vlgmr.msra.gmra.mxu0 %vm832_vm5, %v1248_v28 }
 0x392   : > { %2059 = vmatpush3.bf16.msra.mxu0 %v2098_v20 }
 0x393   : > { %2060 = vmatprep.subr.bf16.mxu0 %v2099_v22 }
 0x396   : > { %2061 = vmatpush3.bf16.msra.mxu0 %v2099_v22 }
 0x433   : > { %v900_v29 = vpop.f32.mrf.mxu0 }
 0x434   : > { %907 = vst.msk [vmem:[#allocation2] sm:$0xff] %vm784_vm4, %v900_v29 }
 0x435   : > { %v2012_v30 = vpop.f32.mrf.mxu0 }
 0x437   : > { %v903_v31 = vpop.f32.mrf.mxu0 }
 0x438   : > { %909 = vst.msk [vmem:[#allocation2 + $0x8] sm:$0x3] %vm908_vm8, %v903_v31 }
 0x439   : > { %v2013_v32 = vpop.f32.mrf.mxu0 }
 0x441   : > { %v1026_v33 = vpop.f32.mrf.mxu0 }
 0x442   : > { %1035 = vrot.lane.b32.xlu0 %v1026_v33, %s2169_s26 }
 0x443   : > { %v2024_v10 = vpop.f32.mrf.mxu0 }
 0x445   : > { %v1029_v34 = vpop.f32.mrf.mxu0 }
 0x446   : > { %1037 = vrot.lane.b32.xlu1 %v1029_v34, %s2169_s26  ;;  %v1934_v34 = vld [vmem:[%s669_s14] ss:$0 sm:$0xff] }
 0x447   : > { %v2025_v35 = vpop.f32.mrf.mxu0 }
 0x449   : > { %v1166_v36 = vpop.f32.mrf.mxu0 }
 0x44a   : > { %1173 = vst.msk [vmem:[#allocation2 + $0xa] sm:$0xff] %vm784_vm4, %v1166_v36 }
 0x44b   : > { %v2036_v39 = vpop.f32.mrf.mxu0 }
 0x44d   : > { %v1169_v40 = vpop.f32.mrf.mxu0 }
 0x44e   : > { %1174 = vst.msk [vmem:[#allocation2 + $0x12] sm:$0x3] %vm908_vm8, %v1169_v40  ;;  %v1935_v40 = vld [vmem:[%s672_s6] ss:$0 sm:$0xff] }
 0x44f   : > { %v2037_v41 = vpop.f32.mrf.mxu0 }
 0x451   : > { %v1291_v42 = vpop.f32.mrf.mxu0 }
 0x452   : > { %1300 = vrot.lane.b32.xlu0 %v1291_v42, %s2169_s26 }
 0x453   : > { %v2048_v43 = vpop.f32.mrf.mxu0 }
 0x455   : > { %v1294_v44 = vpop.f32.mrf.mxu0 }
 0x456   : > { %1302 = vrot.lane.b32.xlu1 %v1294_v44, %s2169_s26 }
 0x457   : > { %v2049_v45 = vpop.f32.mrf.mxu0 }
 0x4b4   : > { %v1036_v46 = vpop.permute.xlu0 %1035 }
 0x4b5   : > { %1042 = vst.msk [vmem:[#allocation2] sm:$0xff] %vm1041_vm9, %v1036_v46 }
 0x4b8   : > { %v1038_v47 = vpop.permute.xlu1 %1037 }
 0x4b9   : > { %1044 = vst.msk [vmem:[#allocation2 + $0x8] sm:$0x3] %vm1043_vm10, %v1038_v47 }
 0x4bc   : > { %v1308_v50 = vld [vmem:[#allocation2] sm:$0xff] }
 0x4c4   : > { %v1301_v48 = vpop.permute.xlu0 %1300 }
 0x4c5   : > { %1306 = vst.msk [vmem:[#allocation2 + $0xa] sm:$0xff] %vm1041_vm9, %v1301_v48  ;;  %v2101_v48 = vld [vmem:[%s2299_s0 + $0x10] sm:$0xff]  }
 0x4c8   : > { %v1303_v49 = vpop.permute.xlu1 %1302 }
 0x4c9   : > { %1307 = vst.msk [vmem:[#allocation2 + $0x12] sm:$0x3] %vm1043_vm10, %v1303_v49  ;;  %v2102_v49 = vld [vmem:[%s2299_s0 + $0x8] sm:$0xff]  }
 0x4cc   : > { %v1309_v51 = vld [vmem:[#allocation2 + $0x8] sm:$0xff] }
 0x4cd   : > { %v1315_v52 = vpack.c.bf16 %v1309_v51, %v1308_v50  ;;  %v2103_v50 = vld [vmem:[%s2299_s0] sm:$0xff]  }
 0x4cf   : > { %2054 = vmatprep.mubr.msk.bf16.mxu1 %vm720_vm2, %v1315_v52  ;;  %v1936_v52 = vld [vmem:[%s2591_s17] ss:$0 sm:$0xff] }
 0x4d0   : > { %v1310_v53 = vld [vmem:[#allocation2 + $0x10] sm:$0xf] }
 0x4d1   : > { %v1316_v54 = vpack.c.bf16 %v1310_v53, %v1310_v53 }
 0x4d3   : > { %2055 = vmatmul.mubr.msk.bf16.vlgmr.msra.gmra.mxu1 %vm720_vm2, %v1316_v54 }
 0x4d4   : > { %2067 = vmatpush3.bf16.msra.mxu1 %v2100_v23 }
 0x4d5   : > { %2068 = vmatprep.subr.bf16.mxu1 %v2101_v48 }
 0x4d8   : > { %2069 = vmatpush3.bf16.msra.mxu1 %v2101_v48 }
 0x4d9   : > { %2070 = vmatprep.subr.bf16.mxu1 %v2102_v49 }
 0x4dc   : > { %2071 = vmatpush3.bf16.msra.mxu1 %v2102_v49 }
 0x4dd   : > { %2072 = vmatprep.subr.bf16.mxu1 %v2103_v50 }
 0x4e0   : > { %2073 = vmatpush3.bf16.msra.mxu1 %v2103_v50 }
 0x593   : > { %v2056_v55 = vpop.f32.mrf.mxu1 }
 0x594   : > { %v1385_v58 = vadd.f32 %v2056_v55, %v1929_v56 }
 0x595   : > { %v1376_v57 = vpop.f32.mrf.mxu1 }
 0x596   : > { %v1377_v59 = vadd.f32 %v1929_v56, %v1376_v57  ;;  %v1392_v1 = vadd.f32 %v1385_v58, %v2353_v7 }
 0x597   : > { %v2057_v60 = vpop.f32.mrf.mxu1 }
 0x598   : > { %v1390_v61 = vadd.f32 %v1377_v59, %v2343_v5  ;;  %v1402_v2 = vsel %vm1401_vm11, %v1392_v1, 0.0 }
 0x599   : > { %v1379_v62 = vpop.f32.mrf.mxu1 }
 0x59a   : > { %v1380_v63 = vadd.f32 %v1929_v56, %v1379_v62  ;;  %v1395_v0 = vsel %vm720_vm2, %v1390_v61, 0.0 }
 0x59b   : > { %1396 = vadd.xlane.f32.xlu0 %v1395_v0 }
 0x59c   : > { %v1391_v19 = vadd.f32 %v1380_v63, %v2348_v6 }
 0x59e   : > { %v1398_v21 = vsel %vm720_vm2, %v1391_v19, 0.0 }
 0x59f   : > { %1399 = vadd.xlane.f32.xlu1 %v1398_v21  ;;  %1403 = vadd.xlane.f32.xlu0 %v1402_v2 }
 0x624   : > { %v1397_v3 = vpop.xlane.xlu0 %1396 }
 0x625   : > { %v1406_v4 = vmul.f32 0.03125, %v1397_v3 }
 0x627   : > { %v1409_v8 = vsub.f32 %v1390_v61, %v1406_v4 }
 0x628   : > { %v1400_v5 = vpop.xlane.xlu1 %1399  ;;  %v1404_v9 = vpop.xlane.xlu0 %1403 }
 0x629   : > { %v1407_v11 = vmul.f32 0.03125, %v1400_v5  ;;  %v1408_v12 = vmul.f32 0.03125, %v1404_v9  ;;  %v1412_v7 = vmul.f32 %v1409_v8, %v1409_v8 }
 0x62b   : > { %v1410_v13 = vsub.f32 %v1391_v19, %v1407_v11  ;;  %v1411_v14 = vsub.f32 %v1392_v1, %v1408_v12  ;;  %v1415_v6 = vsel %vm720_vm2, %v1412_v7, 0.0  ;;  %v1941_v1 = vld [vmem:[%s666_s19] ss:$0 sm:$0xff] }
 0x62c   : > { %1416 = vadd.xlane.f32.xlu0 %v1415_v6 }
 0x62d   : > { %v1413_v15 = vmul.f32 %v1410_v13, %v1410_v13  ;;  %v1414_v16 = vmul.f32 %v1411_v14, %v1411_v14 }
 0x62f   : > { %v1418_v17 = vsel %vm720_vm2, %v1413_v15, 0.0  ;;  %v1421_v18 = vsel %vm1401_vm11, %v1414_v16, 0.0 }
 0x630   : > { %1419 = vadd.xlane.f32.xlu1 %v1418_v17  ;;  %1422 = vadd.xlane.f32.xlu0 %v1421_v18 }
 0x6b5   : > { %v1417_v24 = vpop.xlane.xlu0 %1416 }
 0x6b6   : > { %v1424_v25 = vmul.f32 0.03125, %v1417_v24 }
 0x6b8   : > { %v1427_v26 = vadd.f32 1e-05, %v1424_v25 }
 0x6b9   : > { %v1420_v27 = vpop.xlane.xlu1 %1419  ;;  %v1423_v28 = vpop.xlane.xlu0 %1422 }
 0x6ba   : > { %2136 = vrsqrt.f32 %v1427_v26  ;;  %v1425_v29 = vmul.f32 0.03125, %v1420_v27  ;;  %v1426_v30 = vmul.f32 0.03125, %v1423_v28 }
 0x6bc   : > { %v1428_v31 = vadd.f32 1e-05, %v1425_v29  ;;  %v1429_v32 = vadd.f32 1e-05, %v1426_v30 }
 0x6be   : > { %2138 = vrsqrt.f32 %v1428_v31 }
 0x6bf   : > { %2140 = vrsqrt.f32 %v1429_v32 }
 0x6c7   : > { %v2137_v33 = vpop.eup %2136 }
 0x6c8   : > { %v1433_v10 = vmul.f32 %v2137_v33, %v1409_v8 }
 0x6ca   : > { %v1442_v38 = vmul.f32 %v1934_v34, %v1433_v10 }
 0x6cb   : > { %v2139_v35 = vpop.eup %2138 }
 0x6cc   : > { %v2141_v36 = vpop.eup %2140  ;;  %v1434_v37 = vmul.f32 %v2139_v35, %v1410_v13  ;;  %v1451_v43 = vadd.f32 %v1935_v40, %v1442_v38 }
 0x6cd   : > { %v1435_v39 = vmul.f32 %v2141_v36, %v1411_v14 }
 0x6ce   : > { %v1443_v41 = vmul.f32 %v1934_v34, %v1434_v37 }
 0x6cf   : > { %v1444_v42 = vmul.f32 %v1934_v34, %v1435_v39  ;;  %v1948_v39 = vld [vmem:[%s675_s27] ss:$0 sm:$0xff] }
 0x6d0   : > { %v1452_v44 = vadd.f32 %v1935_v40, %v1443_v41  ;;  %v1949_v41 = vld [vmem:[%s678_s28] ss:$0 sm:$0xff] }
 0x6d1   : > { %v1453_v45 = vadd.f32 %v1935_v40, %v1444_v42 }
 0x6d2   : > { %v1458_v46 = vpack.c.bf16 %v1452_v44, %v1451_v43 }
 0x6d3   : > { %v1459_v47 = vpack.c.bf16 %v1453_v45, %v1453_v45 }
 0x6d4   : > { %2062 = vmatprep.mubr.msk.bf16.mxu0 %vm720_vm2, %v1458_v46 }
 0x6d5   : > { %2063 = vmatmul.mubr.msk.bf16.vlgmr.msra.gmra.mxu0 %vm720_vm2, %v1459_v47 }
 0x795   : > { %v2064_v51 = vpop.f32.mrf.mxu0 }
 0x796   : > { %v1528_v54 = vadd.f32 %v2064_v51, %v1936_v52 }
 0x797   : > { %v1519_v53 = vpop.f32.mrf.mxu0 }
 0x798   : > { %v1520_v56 = vadd.f32 %v1936_v52, %v1519_v53  ;;  %v1535_v59 = vmax.f32 %v1528_v54, 0.0 }
 0x799   : > { %v2065_v55 = vpop.f32.mrf.mxu0 }
 0x79a   : > { %v1533_v60 = vmax.f32 %v1520_v56, 0.0  ;;  %v1545_v63 = vpack.c.bf16 %v1535_v59, %v1535_v59 }
 0x79b   : > { %v1522_v57 = vpop.f32.mrf.mxu0 }
 0x79c   : > { %v1523_v58 = vadd.f32 %v1936_v52, %v1522_v57 }
 0x79e   : > { %v1534_v61 = vmax.f32 %v1523_v58, 0.0 }
 0x7a0   : > { %v1544_v62 = vpack.c.bf16 %v1534_v61, %v1533_v60 }
 0x7a2   : > { %2074 = vmatprep.mubr.msk.bf16.mxu1 %vm1577_vm12, %v1544_v62 }
 0x7a3   : > { %2075 = vmatmul.mubr.msk.bf16.vlgmr.msra.gmra.mxu1 %vm1577_vm12, %v1545_v63 }
 0x863   : > { %v2076_v0 = vpop.f32.mrf.mxu1 }
 0x864   : > { %v1627_v21 = vadd.f32 %v2076_v0, %v1941_v1 }
 0x865   : > { %v1618_v19 = vpop.f32.mrf.mxu1 }
 0x866   : > { %v1619_v2 = vadd.f32 %v1941_v1, %v1618_v19  ;;  %v1634_v11 = vadd.f32 %v1627_v21, %v1453_v45 }
 0x867   : > { %v2077_v3 = vpop.f32.mrf.mxu1 }
 0x868   : > { %v1632_v4 = vadd.f32 %v1619_v2, %v1451_v43  ;;  %v1643_v13 = vsel %vm1401_vm11, %v1634_v11, 0.0 }
 0x869   : > { %v1621_v8 = vpop.f32.mrf.mxu1 }
 0x86a   : > { %v1622_v5 = vadd.f32 %v1941_v1, %v1621_v8  ;;  %v1637_v9 = vsel %vm720_vm2, %v1632_v4, 0.0 }
 0x86b   : > { %1638 = vadd.xlane.f32.xlu1 %v1637_v9 }
 0x86c   : > { %v1633_v12 = vadd.f32 %v1622_v5, %v1452_v44 }
 0x86e   : > { %v1640_v7 = vsel %vm720_vm2, %v1633_v12, 0.0 }
 0x86f   : > { %1641 = vadd.xlane.f32.xlu0 %v1640_v7  ;;  %1644 = vadd.xlane.f32.xlu1 %v1643_v13 }
 0x8f4   : > { %v1639_v14 = vpop.xlane.xlu1 %1638 }
 0x8f5   : > { %v1646_v6 = vmul.f32 0.03125, %v1639_v14 }
 0x8f7   : > { %v1649_v15 = vsub.f32 %v1632_v4, %v1646_v6 }
 0x8f8   : > { %v1642_v16 = vpop.xlane.xlu0 %1641  ;;  %v1645_v17 = vpop.xlane.xlu1 %1644 }
 0x8f9   : > { %v1647_v18 = vmul.f32 0.03125, %v1642_v16  ;;  %v1648_v20 = vmul.f32 0.03125, %v1645_v17  ;;  %v1652_v22 = vmul.f32 %v1649_v15, %v1649_v15 }
 0x8fb   : > { %v1650_v23 = vsub.f32 %v1633_v12, %v1647_v18  ;;  %v1651_v24 = vsub.f32 %v1634_v11, %v1648_v20  ;;  %v1655_v25 = vsel %vm720_vm2, %v1652_v22, 0.0 }
 0x8fc   : > { %1656 = vadd.xlane.f32.xlu0 %v1655_v25 }
 0x8fd   : > { %v1653_v26 = vmul.f32 %v1650_v23, %v1650_v23  ;;  %v1654_v27 = vmul.f32 %v1651_v24, %v1651_v24 }
 0x8ff   : > { %v1658_v28 = vsel %vm720_vm2, %v1653_v26, 0.0  ;;  %v1661_v29 = vsel %vm1401_vm11, %v1654_v27, 0.0 }
 0x900   : > { %1659 = vadd.xlane.f32.xlu1 %v1658_v28  ;;  %1662 = vadd.xlane.f32.xlu0 %v1661_v29 }
 0x985   : > { %v1657_v30 = vpop.xlane.xlu0 %1656 }
 0x986   : > { %v1664_v31 = vmul.f32 0.03125, %v1657_v30 }
 0x988   : > { %v1667_v32 = vadd.f32 1e-05, %v1664_v31 }
 0x989   : > { %v1663_v33 = vpop.xlane.xlu0 %1662  ;;  %v1660_v10 = vpop.xlane.xlu1 %1659 }
 0x98a   : > { %2142 = vrsqrt.f32 %v1667_v32  ;;  %v1666_v34 = vmul.f32 0.03125, %v1663_v33  ;;  %v1665_v35 = vmul.f32 0.03125, %v1660_v10 }
 0x98c   : > { %v1669_v36 = vadd.f32 1e-05, %v1666_v34  ;;  %v1668_v37 = vadd.f32 1e-05, %v1665_v35 }
 0x98e   : > { %2144 = vrsqrt.f32 %v1669_v36 }
 0x98f   : > { %2146 = vrsqrt.f32 %v1668_v37 }
 0x997   : > { %v2143_v38 = vpop.eup %2142 }
 0x998   : > { %v1673_v40 = vmul.f32 %v2143_v38, %v1649_v15 }
 0x99a   : > { %v1682_v42 = vmul.f32 %v1948_v39, %v1673_v40 }
 0x99b   : > { %v2145_v43 = vpop.eup %2144 }
 0x99c   : > { %v2147_v44 = vpop.eup %2146  ;;  %v1691_v45 = vadd.f32 %v1949_v41, %v1682_v42  ;;  %v1675_v46 = vmul.f32 %v2145_v43, %v1651_v24 }
 0x99d   : > { %v1674_v47 = vmul.f32 %v2147_v44, %v1650_v23  ;;  %1697 = sbr.rel (%p1950_p5) target bundleno = 2469 (0x9a5), region = 92 }
 0x99e   : > { %v1684_v48 = vmul.f32 %v1948_v39, %v1675_v46 }
 0x99f   : > { %v1683_v49 = vmul.f32 %v1948_v39, %v1674_v47 }
 0x9a0   : > { %v1693_v50 = vadd.f32 %v1949_v41, %v1684_v48 }
 0x9a1   : > { %v1692_v51 = vadd.f32 %v1949_v41, %v1683_v49 }
 0x9a2   : > { %1698 = vst.msk [vmem:[%s2592_s18] sm:$0xff] %vm720_vm2, %v1691_v45 }
 0x9a3   : > { %1699 = vst.msk [vmem:[%s2592_s18 + $0x8] sm:$0xff] %vm720_vm2, %v1692_v51 }
 0x9a4   : > { %1700 = vst.msk [vmem:[%s2592_s18 + $0x10] sm:$0xf] %vm1401_vm11, %v1693_v50 }
 0x9a5 PF: > { %p1951_p6 = scmp.ne.s32.totalorder %s2261_s22, 1 }
 0x9a6   : > { %s2593_s2 = sld [smem:[#allocation9_spill]] (!%p1951_p6) }
 0x9a7   : > { %1704 = sbr.rel (%p1951_p6) target bundleno = 2790 (0xae6), region = 96  ;;  %s2594_s6 = sld [smem:[#allocation10_spill]] (!%p1951_p6) }
 0x9a8   : > { %s2595_s17 = sld [smem:[#allocation11_spill]] (!%p1951_p6) }
 0x9ac   : > { %v1707_v52 = vsel %vm720_vm2, %v1691_v45, 0.0  ;;  %v1713_v53 = vsel %vm1401_vm11, %v1693_v50, 0.0  ;;  %v1710_v54 = vsel %vm720_vm2, %v1692_v51, 0.0  ;;  %v1952_v15 = vld [vmem:[%s2593_s2] ss:$0 sm:$0xff] }
 0x9ad   : > { %1708 = vadd.xlane.f32.xlu0 %v1707_v52  ;;  %1714 = vadd.xlane.f32.xlu1 %v1713_v53  ;;  %v1953_v17 = vld [vmem:[%s2594_s6] ss:$0 sm:$0xff] }
 0x9b1   : > { %1711 = vadd.xlane.f32.xlu0 %v1710_v54 }
 0xa36   : > { %v1709_v55 = vpop.xlane.xlu0 %1708  ;;  %v1715_v56 = vpop.xlane.xlu1 %1714 }
 0xa37   : > { %v1716_v57 = vmul.f32 0.03125, %v1709_v55  ;;  %v1718_v58 = vmul.f32 0.03125, %v1715_v56 }
 0xa39   : > { %v1719_v59 = vsub.f32 %v1691_v45, %v1716_v57  ;;  %v1721_v60 = vsub.f32 %v1693_v50, %v1718_v58 }
 0xa3a   : > { %v1712_v61 = vpop.xlane.xlu0 %1711 }
 0xa3b   : > { %v1717_v62 = vmul.f32 0.03125, %v1712_v61  ;;  %v1722_v63 = vmul.f32 %v1719_v59, %v1719_v59  ;;  %v1724_v0 = vmul.f32 %v1721_v60, %v1721_v60 }
 0xa3d   : > { %v1720_v1 = vsub.f32 %v1692_v51, %v1717_v62  ;;  %v1725_v19 = vsel %vm720_vm2, %v1722_v63, 0.0  ;;  %v1731_v21 = vsel %vm1401_vm11, %v1724_v0, 0.0 }
 0xa3e   : > { %1726 = vadd.xlane.f32.xlu1 %v1725_v19 }
 0xa3f   : > { %v1723_v2 = vmul.f32 %v1720_v1, %v1720_v1 }
 0xa41   : > { %v1728_v3 = vsel %vm720_vm2, %v1723_v2, 0.0 }
 0xa42   : > { %1732 = vadd.xlane.f32.xlu1 %v1731_v21  ;;  %1729 = vadd.xlane.f32.xlu0 %v1728_v3 }
 0xac7   : > { %v1727_v4 = vpop.xlane.xlu1 %1726 }
 0xac8   : > { %v1734_v8 = vmul.f32 0.03125, %v1727_v4 }
 0xaca   : > { %v1737_v5 = vadd.f32 1e-05, %v1734_v8 }
 0xacb   : > { %v1733_v9 = vpop.xlane.xlu1 %1732  ;;  %v1730_v11 = vpop.xlane.xlu0 %1729 }
 0xacc   : > { %2148 = vrsqrt.f32 %v1737_v5  ;;  %v1736_v12 = vmul.f32 0.03125, %v1733_v9  ;;  %v1735_v7 = vmul.f32 0.03125, %v1730_v11 }
 0xace   : > { %v1739_v13 = vadd.f32 1e-05, %v1736_v12  ;;  %v1738_v14 = vadd.f32 1e-05, %v1735_v7 }
 0xad0   : > { %2150 = vrsqrt.f32 %v1739_v13 }
 0xad1   : > { %2152 = vrsqrt.f32 %v1738_v14 }
 0xad9   : > { %v2149_v6 = vpop.eup %2148 }
 0xada   : > { %v1743_v16 = vmul.f32 %v2149_v6, %v1719_v59 }
 0xadc   : > { %v1752_v18 = vmul.f32 %v1952_v15, %v1743_v16 }
 0xadd   : > { %v2151_v20 = vpop.eup %2150 }
 0xade   : > { %v2153_v22 = vpop.eup %2152  ;;  %v1761_v23 = vadd.f32 %v1953_v17, %v1752_v18  ;;  %v1745_v24 = vmul.f32 %v2151_v20, %v1721_v60 }
 0xadf   : > { %v1744_v25 = vmul.f32 %v2153_v22, %v1720_v1 }
 0xae0   : > { %1764 = vst.msk [vmem:[%s2595_s17] sm:$0xff] %vm720_vm2, %v1761_v23  ;;  %v1754_v26 = vmul.f32 %v1952_v15, %v1745_v24 }
 0xae1   : > { %v1753_v27 = vmul.f32 %v1952_v15, %v1744_v25 }
 0xae2   : > { %v1763_v28 = vadd.f32 %v1953_v17, %v1754_v26 }
 0xae3   : > { %v1762_v29 = vadd.f32 %v1953_v17, %v1753_v27 }
 0xae4   : > { %1766 = vst.msk [vmem:[%s2595_s17 + $0x10] sm:$0xf] %vm1401_vm11, %v1763_v28 }
 0xae5   : > { %1765 = vst.msk [vmem:[%s2595_s17 + $0x8] sm:$0xff] %vm720_vm2, %v1762_v29 }
 0xae6 PF: > { %s2596_s24 = sld [smem:[#allocation3_spill]] }
 0xaec   : > { %s26_s21 = sadd.s32 1, %s2596_s24  }
 0xaed   : > { %p23_p7 = scmp.ge.s32.totalorder %s26_s21, 4  }
 0xaef   :  { %25 = sbr.rel (!%p23_p7) target bundleno = 9 (0x9), region = 155 }

// kernel: transformer_forward.3
= control target key start
LH: loop header
LB: loop body
LE: loop exit
PB: predicated region body
PF: predicated region fallthrough
CT: control target
= control target key end

     0   :  { %s3549_s27 = smov 0   ;;  %s3996_s0 = inlined_call_operand.vmem [shape: f32[16,32], index: 0, kind: input, shape index: {}]   ;;  %s3997_s1 = inlined_call_operand.vmem [shape: f32[20,32], index: 1, kind: input, shape index: {}]   ;;  %s3998_s2 = inlined_call_operand.vmem [shape: bf16[2,32,96], index: 2, kind: input, shape index: {}]   ;;  %s3999_s3 = inlined_call_operand.vmem [shape: f32[2,1,96], index: 3, kind: input, shape index: {}]   ;;  %s4000_s4 = inlined_call_operand.vmem [shape: bf16[2,32,32], index: 4, kind: input, shape index: {}]   ;;  %s4001_s5 = inlined_call_operand.vmem [shape: f32[2,1,32], index: 5, kind: input, shape index: {}]   ;;  %s4002_s6 = inlined_call_operand.vmem [shape: bf16[2,32,32], index: 6, kind: input, shape index: {}]   ;;  %s4003_s7 = inlined_call_operand.vmem [shape: f32[2,1,32], index: 7, kind: input, shape index: {}]   ;;  %s4004_s8 = inlined_call_operand.vmem [shape: bf16[2,32,64], index: 8, kind: input, shape index: {}]   ;;  %s4005_s9 = inlined_call_operand.vmem [shape: f32[2,1,64], index: 9, kind: input, shape index: {}]   ;;  %s4006_s10 = inlined_call_operand.vmem [shape: bf16[2,32,32], index: 10, kind: input, shape index: {}]   ;;  %s4007_s11 = inlined_call_operand.vmem [shape: f32[2,1,32], index: 11, kind: input, shape index: {}]   ;;  %s4008_s12 = inlined_call_operand.vmem [shape: bf16[2,32,64], index: 12, kind: input, shape index: {}]   ;;  %s4009_s13 = inlined_call_operand.vmem [shape: f32[2,1,64], index: 13, kind: input, shape index: {}]   ;;  %s4010_s14 = inlined_call_operand.vmem [shape: bf16[2,64,32], index: 14, kind: input, shape index: {}]   ;;  %s4011_s15 = inlined_call_operand.vmem [shape: f32[2,1,32], index: 15, kind: input, shape index: {}]   ;;  %s4012_s16 = inlined_call_operand.vmem [shape: f32[2,1,32], index: 16, kind: input, shape index: {}]   ;;  %s4013_s17 = inlined_call_operand.vmem [shape: f32[2,1,32], index: 17, kind: input, shape index: {}]   ;;  %s4014_s18 = inlined_call_operand.vmem [shape: f32[2,1,32], index: 18, kind: input, shape index: {}]   ;;  %s4015_s19 = inlined_call_operand.vmem [shape: f32[2,1,32], index: 19, kind: input, shape index: {}]   ;;  %s4016_s20 = inlined_call_operand.vmem [shape: f32[2,1,32], index: 20, kind: input, shape index: {}]   ;;  %s4017_s21 = inlined_call_operand.vmem [shape: f32[2,1,32], index: 21, kind: input, shape index: {}]   ;;  %s4018_s22 = inlined_call_operand.vmem [shape: f32[1,32], index: 22, kind: input, shape index: {}]   ;;  %s4019_s23 = inlined_call_operand.vmem [shape: f32[1,32], index: 23, kind: input, shape index: {}]   ;;  %s4020_s24 = inlined_call_operand.vmem [shape: bf16[32,128], index: 24, kind: input, shape index: {}]   ;;  %s4021_s25 = inlined_call_operand.vmem [shape: f32[1,128], index: 25, kind: input, shape index: {}]   ;;  %s4022_s26 = inlined_call_operand.vmem [shape: f32[16,128], index: 26, kind: output, shape index: {}]  }
   0x1   :  { %4032 = sst [smem:[#allocation9_spill]] %s3996_s0 }
   0x2   :  { %4033 = sst [smem:[#allocation10_spill]] %s3997_s1 }
   0x3   :  { %4034 = sst [smem:[#allocation11_spill]] %s3998_s2 }
   0x4   :  { %4035 = sst [smem:[#allocation12_spill]] %s3999_s3 }
   0x5   :  { %4036 = sst [smem:[#allocation13_spill]] %s4000_s4 }
   0x6   :  { %4037 = sst [smem:[#allocation14_spill]] %s4001_s5 }
   0x7   :  { %4038 = sst [smem:[#allocation15_spill]] %s4002_s6 }
   0x8   :  { %4039 = sst [smem:[#allocation16_spill]] %s4003_s7 }
   0x9   :  { %4040 = sst [smem:[#allocation17_spill]] %s4004_s8 }
   0xa   :  { %4041 = sst [smem:[#allocation18_spill]] %s4005_s9 }
   0xb   :  { %4042 = sst [smem:[#allocation19_spill]] %s4006_s10 }
   0xc   :  { %4043 = sst [smem:[#allocation20_spill]] %s4008_s12 }
   0xd   :  { %4044 = sst [smem:[#allocation21_spill]] %s4010_s14 }
   0xe   :  { %4045 = sst [smem:[#allocation22_spill]] %s4018_s22 }
   0xf   :  { %4046 = sst [smem:[#allocation23_spill]] %s4019_s23 }
  0x10   :  { %4047 = sst [smem:[#allocation24_spill]] %s4020_s24 }
  0x11   :  { %4048 = sst [smem:[#allocation25_spill]] %s4021_s25 }
  0x12   :  { %4049 = sst [smem:[#allocation26_spill]] %s4022_s26 }
  0x13 LB: > { %4050 = sst [smem:[#allocation4_spill]] %s3402_s27  ;;  %s3555_s3 = sadd.s32 4294967295, %s3402_s27   ;;  %s3402_s27 = sphi %s3549_s27, %s36_s27  }
  0x14   : > { %4051 = sst [smem:[#allocation5_spill]] %s3555_s3  ;;  %p3004_p0 = scmp.ge.s32.totalorder %s3402_s27, 1 }
  0x15   : > { %p871_p1 = scmp.lt.s32.totalorder %s3402_s27, 3 }
  0x17   : > { %p872_p2 = pnand %p3004_p0, %p871_p1 }
  0x19   : > { %875 = sbr.rel (%p872_p2) target bundleno = 4687 (0x124f), region = 124 }
  0x1e   : > { %p1005_p3 = scmp.lt.s32.totalorder %s3555_s3, 1  ;;  %s4053_s2 = sld [smem:[#allocation11_spill]] }
  0x1f   : > { %s4055_s1 = sld [smem:[#allocation13_spill]] }
  0x20   : > { %s3561_s7 = scalar_select %p1005_p3, %s3555_s3, 1 }
  0x21   : > { %s4058_s29 = sld [smem:[#allocation15_spill]] }
  0x22   : > { %s3082_s28 = sshll.u32 %s3561_s7, 4  ;;  %s4063_s8 = sld [smem:[#allocation19_spill]] }
  0x23   : > { %s4064_s12 = sld [smem:[#allocation20_spill]]  ;;  %s1063_s30 = scalar_lea.vmem %s4012_s16, %s3561_s7 }
  0x24   : > { %s3571_s5 = scalar_lea.vmem %s4053_s2, %s3082_s28  ;;  %s4065_s14 = sld [smem:[#allocation21_spill]] }
  0x25   : > { %4054 = sst [smem:[#allocation6_spill]] %s3571_s5  ;;  %s3576_s27 = scalar_lea.vmem %s4055_s1, %s3082_s28 }
  0x26   : > { %4056 = sst [smem:[#allocation7_spill]] %s3576_s27  ;;  %s3088_s5 = sshll.u32 %s3561_s7, 5 }
  0x27   : > { %s3585_s0 = scalar_lea.vmem %s4058_s29, %s3082_s28  ;;  %s4061_s1 = sld [smem:[#allocation17_spill]] }
  0x28   : > { %4059 = sst [smem:[#allocation8_spill]] %s3585_s0  ;;  %s3603_s4 = scalar_lea.vmem %s4063_s8, %s3082_s28 }
  0x29   : > { %s3612_s24 = scalar_lea.vmem %s4064_s12, %s3082_s28  ;;  %s1075_s3 = scalar_lea.vmem %s4016_s20, %s3561_s7 }
  0x2a   : > { %s3622_s22 = scalar_lea.vmem %s4065_s14, %s3088_s5  ;;  %s1072_s5 = scalar_lea.vmem %s4015_s19, %s3561_s7 }
  0x2b   : > { %s4066_s29 = sld [smem:[#allocation5_spill]] }
  0x2d   : > { %s3594_s27 = scalar_lea.vmem %s4061_s1, %s3082_s28  ;;  %s1069_s1 = scalar_lea.vmem %s4014_s18, %s3561_s7 }
  0x31   : > { %p3019_p4 = scmp.ne.s32.totalorder %s4066_s29, 0 }
  0x32   : > { %s4067_s23 = sld [smem:[#allocation9_spill]] (!%p3019_p4) }
  0x33   : > { %1083 = sbr.rel (%p3019_p4) target bundleno = 58 (0x3a), region = 128 }
  0x38   : > { %v1084_v0 = vld [vmem:[%s4067_s23] sm:$0xff]  ;;  %vm1086_vm0 = vcmask 261120   ;;  %v1085_v1 = vld [vmem:[%s4067_s23 + $0x8] sm:$0xff] }
  0x39   : > { %1087 = vst.msk [vmem:[#allocation2] sm:$0xff] %vm1086_vm0, %v1084_v0  ;;  %1088 = vst.msk [vmem:[#allocation2 + $0x8] sm:$0xff] %vm1086_vm0, %v1085_v1 }
  0x3a PF: > { %s4068_s12 = sld [smem:[#allocation6_spill]]  ;;  %v3404_v3 = vmov 0.0   ;;  %vm3405_vm1 = vmmov 0   ;;  %vm1118_vm2 = vcmask 261120   ;;  %s3406_s8 = smov 112   ;;  %vm1172_vm3 = vcmask 130048  }
  0x3b   : > { %3148 = vmatprep.subr.bf16.mxu1 %v3404_v3  ;;  %3162 = vmatprep.subr.bf16.mxu0 %v3404_v3  ;;  %s4069_s25 = sld [smem:[#allocation12_spill]]  ;;  %s3407_s29 = smov 96   ;;  %v1163_v27 = vlaneseq  ;;  %vm1220_vm5 = vcmask 64512   ;;  %vm1238_vm6 = vcmask 1043456   ;;  %vm1398_vm7 = vcmask 261248  }
  0x3c   : > { %3152 = vmatprep.mubr.msk.bf16.mxu1 %vm3405_vm1, %v3404_v3  ;;  %3164 = vmatprep.mubr.msk.bf16.mxu0 %vm3405_vm1, %v3404_v3  ;;  %s3408_s28 = smov 80   ;;  %s3409_s2 = smov 64   ;;  %vm1940_vm8 = vcmask 80896   ;;  %vm1959_vm9 = vcmask 1044480   ;;  %vm2573_vm10 = vcmask 523264  }
  0x3d   : > { %v1164_v28 = vshrl.u32 %v1163_v27, 7  ;;  %v1166_v29 = vand.u32 127, %v1163_v27  ;;  %s3410_s10 = smov 48   ;;  %s4071_s6 = sld [smem:[#allocation7_spill]] }
  0x3e   : > { %s4075_s14 = sld [smem:[#allocation10_spill]] }
  0x3f   : > { %vm1167_vm4 = vcmp.gt.s32.totalorder %v1166_v29, %v1164_v28 }
  0x40   : > { %v3330_v2 = vld [vmem:[%s4068_s12 + $0x8] sm:$0xff]   ;;  %v3331_v4 = vld [vmem:[%s4068_s12] sm:$0xff]   ;;  %s3411_s12 = smov 16  }
  0x41   : > { %3149 = vmatpush3.bf16.msra.mxu1 %v3330_v2  ;;  %v3665_v5 = vld [vmem:[#allocation2] sm:$0xff]  ;;  %v3667_v6 = vld [vmem:[#allocation2 + $0x8] sm:$0xff]  ;;  %s4070_s26 = scalar_lea.vmem %s4069_s25, %s3561_s7  ;;  %s4072_s25 = sld [smem:[#allocation14_spill]] }
  0x42   : > { %3150 = vmatprep.subr.bf16.mxu1 %v3404_v3  ;;  %v1098_v7 = vpack.c.bf16 %v3667_v6, %v3665_v5  ;;  %v3020_v8 = vld [vmem:[%s4070_s26] ss:$0 sm:$0xff] }
  0x45   : > { %3151 = vmatpush3.bf16.msra.mxu1 %v3331_v4 }
  0x46   : > { %3156 = vmatprep.subr.bf16.mxu1 %v3404_v3 }
  0x47   : > { %s4073_s26 = scalar_lea.vmem %s4072_s25, %s3561_s7  ;;  %s4077_s25 = sld [smem:[#allocation18_spill]] }
  0x48   : > { %3153 = vmatmul.mubr.msk.bf16.vlgmr.msra.gmra.mxu1 %vm1118_vm2, %v1098_v7 }
  0x49   : > { %3158 = vmatprep.mubr.msk.bf16.mxu1 %vm3405_vm1, %v3404_v3 }
 0x108   : > { %v1156_v9 = vpop.f32.mrf.mxu1 }
 0x109   : > { %v1157_v10 = vadd.f32 %v3020_v8, %v1156_v9 }
 0x10a   : > { %v3154_v11 = vpop.f32.mrf.mxu1 }
 0x10b   : > { %v3683_v12 = vpack.c.bf16 %v1157_v10, %v1157_v10 }
 0x10c   : > { %v1159_v13 = vpop.f32.mrf.mxu1 }
 0x10d   : > { %v1160_v14 = vadd.f32 %v3020_v8, %v1159_v13  ;;  %1283 = vrot.lane.b32.xlu1 %v3683_v12, %s3406_s8  ;;  %1170 = vrot.lane.b32.xlu0 %v3683_v12, %s3407_s29 }
 0x10e   : > { %v3155_v15 = vpop.f32.mrf.mxu1 }
 0x10f   : > { %v3689_v16 = vpack.c.bf16 %v1160_v14, %v1160_v14 }
 0x111   : > { %1285 = vrot.lane.b32.xlu0 %v3683_v12, %s3408_s28  ;;  %1402 = vrot.lane.b32.xlu1 %v3689_v16, %s3407_s29 }
 0x115   : > { %1514 = vrot.lane.b32.xlu0 %v3689_v16, %s3408_s28  ;;  %1512 = vrot.lane.b32.xlu1 %v3689_v16, %s3406_s8 }
 0x17f   : > { %v1171_v17 = vpop.permute.xlu0 %1170  ;;  %v1284_v20 = vpop.permute.xlu1 %1283 }
 0x180   : > { %v1177_v18 = vsel %vm1172_vm3, %v1171_v17, 0 }
 0x181   : > { %3157 = vmatpush3.bf16.xpose.msra.mxu1 %v1177_v18 }
 0x182   : > { %3168 = vmatprep.subr.bf16.mxu1 %v3404_v3 }
 0x183   : > { %v1286_v19 = vpop.permute.xlu0 %1285  ;;  %v1403_v22 = vpop.permute.xlu1 %1402 }
 0x184   : > { %v1291_v21 = vsel %vm1172_vm3, %v1286_v19, 0  ;;  %v1408_v23 = vsel %vm1172_vm3, %v1403_v22, 0 }
 0x187   : > { %v1515_v24 = vpop.permute.xlu0 %1514  ;;  %v1513_v26 = vpop.permute.xlu1 %1512 }
 0x188   : > { %3159 = vmatmul.mubr.msk.bf16.vlgmr.msra.gmra.mxu1 %vm1172_vm3, %v3683_v12  ;;  %v1520_v25 = vsel %vm1172_vm3, %v1515_v24, 0 }
 0x189   : > { %3169 = vmatpush3.bf16.xpose.msra.mxu1 %v1291_v21  ;;  %3170 = vmatprep.mubr.msk.bf16.mxu1 %vm3405_vm1, %v3404_v3 }
 0x18a   : > { %3180 = vmatprep.subr.bf16.mxu1 %v3404_v3 }
 0x190   : > { %3171 = vmatmul.mubr.msk.bf16.vlgmr.msra.gmra.mxu1 %vm1172_vm3, %v1284_v20 }
 0x191   : > { %3181 = vmatpush3.bf16.xpose.msra.mxu1 %v1408_v23  ;;  %3182 = vmatprep.mubr.msk.bf16.mxu1 %vm3405_vm1, %v3404_v3 }
 0x192   : > { %3192 = vmatprep.subr.bf16.mxu1 %v3404_v3 }
 0x198   : > { %3183 = vmatmul.mubr.msk.bf16.vlgmr.msra.gmra.mxu1 %vm1172_vm3, %v3689_v16 }
 0x199   : > { %3193 = vmatpush3.bf16.xpose.msra.mxu1 %v1520_v25  ;;  %3194 = vmatprep.mubr.msk.bf16.mxu1 %vm3405_vm1, %v3404_v3 }
 0x19a   : > { %3204 = vmatprep.subr.bf16.mxu1 %v3404_v3 }
 0x1a0   : > { %3195 = vmatmul.mubr.msk.bf16.vlgmr.msra.gmra.mxu1 %vm1172_vm3, %v1513_v26 }
 0x1a1   : > { %3208 = vmatprep.mubr.msk.bf16.mxu1 %vm3405_vm1, %v3404_v3 }
 0x248   : > { %v1213_v30 = vpop.f32.mrf.mxu1 }
 0x249   : > { %v1219_v31 = vsel %vm1167_vm4, -1e+30, %v1213_v30 }
 0x24a   : > { %v3160_v32 = vpop.f32.mrf.mxu1  ;;  %v1221_v33 = vsel %vm1220_vm5, %v1219_v31, -inf }
 0x24b   : > { %1222 = vmax.xlane.f32.xlu0 %v1221_v33 }
 0x24c   : > { %v1216_v34 = vpop.f32.mrf.mxu1 }
 0x24e   : > { %v3161_v35 = vpop.f32.mrf.mxu1 }
 0x250   : > { %v1327_v36 = vpop.f32.mrf.mxu1 }
 0x251   : > { %v1333_v37 = vsel %vm1167_vm4, -1e+30, %v1327_v36 }
 0x252   : > { %v3172_v38 = vpop.f32.mrf.mxu1  ;;  %v1334_v39 = vsel %vm1220_vm5, %v1333_v37, -inf }
 0x253   : > { %1335 = vmax.xlane.f32.xlu1 %v1334_v39 }
 0x254   : > { %v1330_v40 = vpop.f32.mrf.mxu1 }
 0x256   : > { %v3173_v41 = vpop.f32.mrf.mxu1 }
 0x258   : > { %v1444_v42 = vpop.f32.mrf.mxu1 }
 0x259   : > { %v1450_v43 = vsel %vm1167_vm4, -1e+30, %v1444_v42 }
 0x25a   : > { %v3184_v44 = vpop.f32.mrf.mxu1  ;;  %v1451_v45 = vsel %vm1220_vm5, %v1450_v43, -inf }
 0x25b   : > { %1452 = vmax.xlane.f32.xlu0 %v1451_v45  ;;  %v3332_v45 = vld [vmem:[%s4071_s6 + $0x8] sm:$0xff]  }
 0x25c   : > { %v1447_v46 = vpop.f32.mrf.mxu1  ;;  %3205 = vmatpush3.bf16.msra.mxu1 %v3332_v45 }
 0x25d   : > { %v3333_v46 = vld [vmem:[%s4071_s6] sm:$0xff]   ;;  %3206 = vmatprep.subr.bf16.mxu1 %v3404_v3  ;;  %s4076_s6 = scalar_lea.vmem %s4013_s17, %s3561_s7 }
 0x25e   : > { %v3185_v47 = vpop.f32.mrf.mxu1 }
 0x260   : > { %v1556_v48 = vpop.f32.mrf.mxu1  ;;  %3207 = vmatpush3.bf16.msra.mxu1 %v3333_v46 }
 0x261   : > { %v1562_v49 = vsel %vm1167_vm4, -1e+30, %v1556_v48 }
 0x262   : > { %v3196_v50 = vpop.f32.mrf.mxu1  ;;  %v1563_v51 = vsel %vm1220_vm5, %v1562_v49, -inf }
 0x263   : > { %1564 = vmax.xlane.f32.xlu0 %v1563_v51 }
 0x264   : > { %v1559_v52 = vpop.f32.mrf.mxu1 }
 0x266   : > { %v3197_v53 = vpop.f32.mrf.mxu1 }
 0x2d4   : > { %v1223_v54 = vpop.xlane.xlu0 %1222 }
 0x2d5   : > { %v1224_v55 = vsub.f32 %v1219_v31, %v1223_v54 }
 0x2d7   : > { %v1225_v56 = vmul.f32 1.442695, %v1224_v55 }
 0x2d9   : > { %3346 = vpow2.f32 %v1225_v56 }
 0x2dc   : > { %v1336_v57 = vpop.xlane.xlu1 %1335 }
 0x2dd   : > { %v1337_v58 = vsub.f32 %v1333_v37, %v1336_v57 }
 0x2df   : > { %v1338_v59 = vmul.f32 1.442695, %v1337_v58 }
 0x2e1   : > { %3348 = vpow2.f32 %v1338_v59 }
 0x2e4   : > { %v1453_v62 = vpop.xlane.xlu0 %1452 }
 0x2e5   : > { %v1454_v9 = vsub.f32 %v1450_v43, %v1453_v62 }
 0x2e6   : > { %v3347_v60 = vpop.eup %3346 }
 0x2e7   : > { %v1227_v61 = vsel %vm1220_vm5, %v3347_v60, 0.0  ;;  %v1455_v10 = vmul.f32 1.442695, %v1454_v9 }
 0x2e8   : > { %1228 = vadd.xlane.f32.xlu1 %v1227_v61 }
 0x2ec   : > { %v1565_v63 = vpop.xlane.xlu0 %1564 }
 0x2ed   : > { %v1566_v0 = vsub.f32 %v1562_v49, %v1565_v63 }
 0x2ee   : > { %v3349_v1 = vpop.eup %3348 }
 0x2ef   : > { %v1567_v2 = vmul.f32 1.442695, %v1566_v0  ;;  %v1340_v4 = vsel %vm1220_vm5, %v3349_v1, 0.0 }
 0x2f0   : > { %1341 = vadd.xlane.f32.xlu0 %v1340_v4 }
 0x2f1   : > { %3350 = vpow2.f32 %v1567_v2 }
 0x2f2   : > { %3352 = vpow2.f32 %v1455_v10 }
 0x2f9   : > { %1233 = vrot.lane.b32.xlu1 %v3683_v12, %s3409_s2 }
 0x2fe   : > { %v3351_v7 = vpop.eup %3350 }
 0x2ff   : > { %v1569_v8 = vsel %vm1220_vm5, %v3351_v7, 0.0  ;;  %v3353_v11 = vpop.eup %3352 }
 0x300   : > { %1570 = vadd.xlane.f32.xlu0 %v1569_v8  ;;  %v1457_v13 = vsel %vm1220_vm5, %v3353_v11, 0.0 }
 0x316   : > { %1346 = vrot.lane.b32.xlu0 %v3683_v12, %s3410_s10 }
 0x31d   : > { %1458 = vadd.xlane.f32.xlu1 %v1457_v13 }
 0x32e   : > { %1463 = vrot.lane.b32.xlu1 %v3689_v16, %s3409_s2  ;;  %s4074_s2 = sld [smem:[#allocation8_spill]] }
 0x332   : > { %1575 = vrot.lane.b32.xlu1 %v3689_v16, %s3410_s10 }
 0x371   : > { %v1229_v14 = vpop.xlane.xlu1 %1228 }
 0x372   : > { %3354 = vrcp.f32 %v1229_v14 }
 0x375   : > { %v1234_v15 = vpop.permute.xlu1 %1233 }
 0x376   : > { %v1240_v17 = vsel %vm1238_vm6, %v1234_v15, 0 }
 0x377   : > { %3163 = vmatpush3.bf16.msra.mxu0 %v1240_v17 }
 0x378   : > { %3174 = vmatprep.subr.bf16.mxu0 %v3404_v3 }
 0x379   : > { %v1342_v18 = vpop.xlane.xlu0 %1341 }
 0x37a   : > { %3356 = vrcp.f32 %v1342_v18 }
 0x37f   : > { %v3355_v12 = vpop.eup %3354 }
 0x380   : > { %v1231_v19 = vmul.f32 %v3355_v12, %v3347_v60  ;;  %v3032_v60 = vld [vmem:[%s4073_s26] ss:$0 sm:$0xff]  ;;  %s4078_s26 = scalar_lea.vmem %s4077_s25, %s3561_s7 }
 0x381   : > { %v3042_v45 = vld [vmem:[%s4078_s26] ss:$0 sm:$0xff] }
 0x382   : > { %v1232_v20 = vpack.c.bf16 %v1231_v19, %v1231_v19 }
 0x384   : > { %3165 = vmatmul.mubr.msk.bf16.vlgmr.msra.gmra.mxu0 %vm1220_vm5, %v1232_v20  ;;  %v3335_v20 = vld [vmem:[%s3594_s27] sm:$0xff]  }
 0x385   : > { %3176 = vmatprep.mubr.msk.bf16.mxu0 %vm3405_vm1, %v3404_v3 }
 0x387   : > { %v3357_v16 = vpop.eup %3356 }
 0x388   : > { %v1344_v22 = vmul.f32 %v3357_v16, %v3349_v1  ;;  %v1091_v16 = vld [vmem:[%s4075_s14] sm:$0xff] }
 0x389   : > { %v1571_v21 = vpop.xlane.xlu0 %1570 }
 0x38a   : > { %v1345_v25 = vpack.c.bf16 %v1344_v22, %v1344_v22 }
 0x38d   : > { %v1347_v23 = vpop.permute.xlu0 %1346 }
 0x38e   : > { %v1352_v24 = vsel %vm1238_vm6, %v1347_v23, 0  ;;  %v1093_v23 = vld [vmem:[%s4075_s14 + $0x10] sm:$0xf] }
 0x38f   : > { %3175 = vmatpush3.bf16.msra.mxu0 %v1352_v24  ;;  %v1818_v24 = vpack.c.bf16 %v1093_v23, %v1093_v23 }
 0x390   : > { %3186 = vmatprep.subr.bf16.mxu0 %v3404_v3 }
 0x392   : > { %3177 = vmatmul.mubr.msk.bf16.vlgmr.msra.gmra.mxu0 %vm1220_vm5, %v1345_v25  ;;  %v3336_v25 = vld [vmem:[%s4074_s2 + $0x8] sm:$0xff]  }
 0x393   : > { %3188 = vmatprep.mubr.msk.bf16.mxu0 %vm3405_vm1, %v3404_v3 }
 0x3a6   : > { %v1459_v26 = vpop.xlane.xlu1 %1458 }
 0x3a7   : > { %3358 = vrcp.f32 %v1459_v26  ;;  %v3337_v26 = vld [vmem:[%s4074_s2] sm:$0xff]   ;;  %s4079_s2 = sld [smem:[#allocation16_spill]] }
 0x3a8   : > { %3360 = vrcp.f32 %v1571_v21  ;;  %v1092_v21 = vld [vmem:[%s4075_s14 + $0x8] sm:$0xff] }
 0x3a9   : > { %v1817_v22 = vpack.c.bf16 %v1092_v21, %v1091_v16 }
 0x3aa   : > { %v1464_v27 = vpop.permute.xlu1 %1463 }
 0x3ab   : > { %v1469_v28 = vsel %vm1238_vm6, %v1464_v27, 0 }
 0x3ac   : > { %3187 = vmatpush3.bf16.msra.mxu0 %v1469_v28 }
 0x3ad   : > { %3198 = vmatprep.subr.bf16.mxu0 %v3404_v3  ;;  %s4080_s10 = scalar_lea.vmem %s4079_s2, %s3561_s7 }
 0x3ae   : > { %v1576_v31 = vpop.permute.xlu1 %1575 }
 0x3af   : > { %v1581_v34 = vsel %vm1238_vm6, %v1576_v31, 0 }
 0x3b4   : > { %v3359_v29 = vpop.eup %3358 }
 0x3b5   : > { %v1461_v30 = vmul.f32 %v3359_v29, %v3353_v11  ;;  %v3361_v33 = vpop.eup %3360 }
 0x3b6   : > { %v1573_v35 = vmul.f32 %v3361_v33, %v3351_v7 }
 0x3b7   : > { %v1462_v32 = vpack.c.bf16 %v1461_v30, %v1461_v30 }
 0x3b8   : > { %v1574_v36 = vpack.c.bf16 %v1573_v35, %v1573_v35  ;;  %v3036_v35 = vld [vmem:[%s1063_s30] ss:$0 sm:$0xff] }
 0x3b9   : > { %3189 = vmatmul.mubr.msk.bf16.vlgmr.msra.gmra.mxu0 %vm1220_vm5, %v1462_v32 }
 0x3ba   : > { %3199 = vmatpush3.bf16.msra.mxu0 %v1581_v34  ;;  %3200 = vmatprep.mubr.msk.bf16.mxu0 %vm3405_vm1, %v3404_v3 }
 0x3bb   : > { %3212 = vmatprep.subr.bf16.mxu0 %v3404_v3 }
 0x3c1   : > { %3201 = vmatmul.mubr.msk.bf16.vlgmr.msra.gmra.mxu0 %vm1220_vm5, %v1574_v36 }
 0x3c2   : > { %3216 = vmatprep.mubr.msk.bf16.mxu0 %vm3405_vm1, %v3404_v3  ;;  %3213 = vmatpush3.bf16.msra.mxu0 %v3336_v25 }
 0x3c3   : > { %3214 = vmatprep.subr.bf16.mxu0 %v3404_v3 }
 0x3c6   : > { %3215 = vmatpush3.bf16.msra.mxu0 %v3337_v26 }
 0x3c7   : > { %3228 = vmatprep.subr.bf16.mxu0 %v3404_v3 }
 0x444   : > { %v1276_v37 = vpop.f32.mrf.mxu0 }
 0x445   : > { %1282 = vst.msk [vmem:[#allocation3] sm:$0xff] %vm1172_vm3, %v1276_v37 }
 0x446   : > { %v3166_v38 = vpop.f32.mrf.mxu0 }
 0x448   : > { %v1279_v39 = vpop.f32.mrf.mxu0 }
 0x449   : > { %v3037_v39 = vld [vmem:[%s4076_s6] ss:$0 sm:$0xff] }
 0x44a   : > { %v3167_v40 = vpop.f32.mrf.mxu0 }
 0x452   : > { %v1388_v41 = vpop.f32.mrf.mxu0 }
 0x453   : > { %1395 = vrot.lane.b32.xlu0 %v1388_v41, %s3411_s12 }
 0x454   : > { %v3178_v42 = vpop.f32.mrf.mxu0 }
 0x456   : > { %v1391_v43 = vpop.f32.mrf.mxu0 }
 0x458   : > { %v3179_v44 = vpop.f32.mrf.mxu0 }
 0x479   : > { %v1505_v47 = vpop.f32.mrf.mxu0 }
 0x47a   : > { %1511 = vst.msk [vmem:[#allocation3 + $0x8] sm:$0xff] %vm1172_vm3, %v1505_v47 }
 0x47b   : > { %v3190_v48 = vpop.f32.mrf.mxu0 }
 0x47d   : > { %v1508_v49 = vpop.f32.mrf.mxu0 }
 0x47f   : > { %v3191_v50 = vpop.f32.mrf.mxu0 }
 0x481   : > { %v1617_v51 = vpop.f32.mrf.mxu0 }
 0x482   : > { %1624 = vrot.lane.b32.xlu1 %v1617_v51, %s3411_s12 }
 0x483   : > { %v3202_v52 = vpop.f32.mrf.mxu0 }
 0x485   : > { %v1620_v53 = vpop.f32.mrf.mxu0 }
 0x487   : > { %v3203_v54 = vpop.f32.mrf.mxu0 }
 0x4c5   : > { %v1396_v55 = vpop.permute.xlu0 %1395 }
 0x4c6   : > { %1399 = vst.msk [vmem:[#allocation3] sm:$0xff] %vm1398_vm7, %v1396_v55 }
 0x4cd   : > { %v1628_v57 = vld [vmem:[#allocation3] sm:$0xff] }
 0x4f4   : > { %v1625_v56 = vpop.permute.xlu1 %1624 }
 0x4f5   : > { %1627 = vst.msk [vmem:[#allocation3 + $0x8] sm:$0xff] %vm1398_vm7, %v1625_v56  ;;  %v3038_v56 = vld [vmem:[%s4080_s10] ss:$0 sm:$0xff]  ;;  %s4084_s10 = scalar_lea.vmem %s4017_s21, %s3561_s7 }
 0x4fc   : > { %v1629_v58 = vld [vmem:[#allocation3 + $0x8] sm:$0xff] }
 0x4fd   : > { %v1634_v59 = vpack.c.bf16 %v1629_v58, %v1628_v57 }
 0x4ff   : > { %3209 = vmatmul.mubr.msk.bf16.vlgmr.msra.gmra.mxu1 %vm1118_vm2, %v1634_v59 }
 0x500   : > { %3224 = vmatprep.mubr.msk.bf16.mxu1 %vm1118_vm2, %v1817_v22 }
 0x5bf   : > { %v1691_v61 = vpop.f32.mrf.mxu1 }
 0x5c0   : > { %v1692_v62 = vadd.f32 %v3032_v60, %v1691_v61 }
 0x5c1   : > { %v3210_v63 = vpop.f32.mrf.mxu1 }
 0x5c2   : > { %v1698_v0 = vadd.f32 %v1692_v62, %v3665_v5 }
 0x5c3   : > { %v1694_v1 = vpop.f32.mrf.mxu1 }
 0x5c4   : > { %v1695_v2 = vadd.f32 %v3032_v60, %v1694_v1  ;;  %v1702_v4 = vsel %vm1118_vm2, %v1698_v0, 0.0 }
 0x5c5   : > { %1703 = vadd.xlane.f32.xlu0 %v1702_v4  ;;  %v3211_v7 = vpop.f32.mrf.mxu1 }
 0x5c6   : > { %v1699_v8 = vadd.f32 %v1695_v2, %v3667_v6  ;;  %v3334_v6 = vld [vmem:[%s3594_s27 + $0x8] sm:$0xff]  }
 0x5c7   : > { %3220 = vmatprep.subr.bf16.mxu1 %v3334_v6 }
 0x5c8   : > { %v1705_v9 = vsel %vm1118_vm2, %v1699_v8, 0.0  ;;  %3221 = vmatpush3.bf16.msra.mxu1 %v3334_v6 }
 0x5c9   : > { %1706 = vadd.xlane.f32.xlu1 %v1705_v9  ;;  %3222 = vmatprep.subr.bf16.mxu1 %v3335_v20 }
 0x5cc   : > { %3223 = vmatpush3.bf16.msra.mxu1 %v3335_v20 }
 0x5cd   : > { %3234 = vmatprep.subr.bf16.mxu1 %v3404_v3 }
 0x5cf   : > { %3225 = vmatmul.mubr.msk.bf16.vlgmr.msra.gmra.mxu1 %vm1118_vm2, %v1818_v24 }
 0x5d0   : > { %3236 = vmatprep.mubr.msk.bf16.mxu1 %vm3405_vm1, %v3404_v3 }
 0x64e   : > { %v1704_v10 = vpop.xlane.xlu0 %1703 }
 0x64f   : > { %v1709_v11 = vmul.f32 0.03125, %v1704_v10 }
 0x651   : > { %v1711_v13 = vsub.f32 %v1698_v0, %v1709_v11 }
 0x652   : > { %v1707_v14 = vpop.xlane.xlu1 %1706 }
 0x653   : > { %v1710_v15 = vmul.f32 0.03125, %v1707_v14  ;;  %v1713_v17 = vmul.f32 %v1711_v13, %v1711_v13 }
 0x655   : > { %v1712_v5 = vsub.f32 %v1699_v8, %v1710_v15  ;;  %v1715_v18 = vsel %vm1118_vm2, %v1713_v17, 0.0 }
 0x656   : > { %1716 = vadd.xlane.f32.xlu0 %v1715_v18 }
 0x657   : > { %v1714_v12 = vmul.f32 %v1712_v5, %v1712_v5 }
 0x659   : > { %v1718_v19 = vsel %vm1118_vm2, %v1714_v12, 0.0 }
 0x65a   : > { %1719 = vadd.xlane.f32.xlu0 %v1718_v19 }
 0x68f   : > { %v3226_v44 = vpop.f32.mrf.mxu1 }
 0x690   : > { %v1887_v48 = vadd.f32 %v3226_v44, %v3042_v45 }
 0x691   : > { %v1878_v46 = vpop.f32.mrf.mxu1 }
 0x692   : > { %v1879_v49 = vadd.f32 %v3042_v45, %v1878_v46 }
 0x693   : > { %v3227_v47 = vpop.f32.mrf.mxu1 }
 0x695   : > { %v1881_v50 = vpop.f32.mrf.mxu1 }
 0x696   : > { %v1882_v51 = vadd.f32 %v3042_v45, %v1881_v50 }
 0x698   : > { %v3822_v52 = vpack.c.bf16 %v1882_v51, %v1879_v49  ;;  %v2121_v53 = vpack.c.bf16 %v1887_v48, %v1882_v51 }
 0x69a   : > { %v3824_v54 = vrot.slane %v2121_v53, 1  ;;  %2007 = vrot.lane.b32.xlu1 %v3822_v52, %s3406_s8  ;;  %v1898_v55 = vsel %vm1172_vm3, %v3822_v52, 0 }
 0x69c   : > { %v2128_v7 = vsel %vm1172_vm3, %v3824_v54, 0 }
 0x69e   : > { %2234 = vrot.lane.b32.xlu1 %v3824_v54, %s3406_s8 }
 0x6df   : > { %v1717_v27 = vpop.xlane.xlu0 %1716 }
 0x6e0   : > { %v1721_v28 = vmul.f32 0.03125, %v1717_v27 }
 0x6e2   : > { %v1723_v29 = vadd.f32 1e-05, %v1721_v28 }
 0x6e3   : > { %v1720_v30 = vpop.xlane.xlu0 %1719 }
 0x6e4   : > { %3362 = vrsqrt.f32 %v1723_v29  ;;  %v1722_v31 = vmul.f32 0.03125, %v1720_v30 }
 0x6e6   : > { %v1724_v32 = vadd.f32 1e-05, %v1722_v31 }
 0x6e8   : > { %3364 = vrsqrt.f32 %v1724_v32 }
 0x6f1   : > { %v3363_v33 = vpop.eup %3362 }
 0x6f2   : > { %v1727_v34 = vmul.f32 %v3363_v33, %v1711_v13 }
 0x6f4   : > { %v1735_v38 = vmul.f32 %v3036_v35, %v1727_v34 }
 0x6f5   : > { %v3365_v36 = vpop.eup %3364 }
 0x6f6   : > { %v1728_v37 = vmul.f32 %v3365_v36, %v1712_v5  ;;  %v3808_v41 = vadd.f32 %v3037_v39, %v1735_v38 }
 0x6f8   : > { %v1736_v40 = vmul.f32 %v3036_v35, %v1728_v37 }
 0x6fa   : > { %v3810_v42 = vadd.f32 %v3037_v39, %v1736_v40 }
 0x6fc   : > { %v1749_v43 = vpack.c.bf16 %v3810_v42, %v3808_v41 }
 0x6fe   : > { %3217 = vmatmul.mubr.msk.bf16.vlgmr.msra.gmra.mxu0 %vm1118_vm2, %v1749_v43 }
 0x6ff   : > { %3230 = vmatprep.mubr.msk.bf16.mxu0 %vm3405_vm1, %v3404_v3  ;;  %3229 = vmatpush3.bf16.xpose.msra.mxu0 %v1898_v55 }
 0x700   : > { %3240 = vmatprep.subr.bf16.mxu0 %v3404_v3 }
 0x70c   : > { %v2008_v60 = vpop.permute.xlu1 %2007 }
 0x70d   : > { %v2013_v62 = vsel %vm1172_vm3, %v2008_v60, 0 }
 0x710   : > { %v2235_v8 = vpop.permute.xlu1 %2234 }
 0x711   : > { %v2240_v9 = vsel %vm1172_vm3, %v2235_v8, 0 }
 0x7be   : > { %v1806_v57 = vpop.f32.mrf.mxu0 }
 0x7bf   : > { %v1807_v58 = vadd.f32 %v3038_v56, %v1806_v57 }
 0x7c0   : > { %v3218_v59 = vpop.f32.mrf.mxu0 }
 0x7c1   : > { %v1892_v61 = vpack.c.bf16 %v1807_v58, %v1807_v58 }
 0x7c2   : > { %v1809_v63 = vpop.f32.mrf.mxu0 }
 0x7c3   : > { %v1810_v0 = vadd.f32 %v3038_v56, %v1809_v63  ;;  %2005 = vrot.lane.b32.xlu0 %v1892_v61, %s3406_s8  ;;  %3231 = vmatmul.mubr.msk.bf16.vlgmr.msra.gmra.mxu0 %vm1172_vm3, %v1892_v61 }
 0x7c4   : > { %v3219_v1 = vpop.f32.mrf.mxu0  ;;  %3241 = vmatpush3.bf16.xpose.msra.mxu0 %v2013_v62  ;;  %3242 = vmatprep.mubr.msk.bf16.mxu0 %vm3405_vm1, %v3404_v3 }
 0x7c5   : > { %v2120_v2 = vpack.c.bf16 %v1810_v0, %v1810_v0  ;;  %3252 = vmatprep.subr.bf16.mxu0 %v3404_v3 }
 0x7c7   : > { %2232 = vrot.lane.b32.xlu1 %v2120_v2, %s3406_s8 }
 0x835   : > { %v2006_v4 = vpop.permute.xlu0 %2005 }
 0x836   : > { %3243 = vmatmul.mubr.msk.bf16.vlgmr.msra.gmra.mxu0 %vm1172_vm3, %v2006_v4 }
 0x837   : > { %3253 = vmatpush3.bf16.xpose.msra.mxu0 %v2128_v7  ;;  %3254 = vmatprep.mubr.msk.bf16.mxu0 %vm3405_vm1, %v3404_v3 }
 0x838   : > { %3264 = vmatprep.subr.bf16.mxu0 %v3404_v3 }
 0x839   : > { %v2233_v10 = vpop.permute.xlu1 %2232 }
 0x83e   : > { %3255 = vmatmul.mubr.msk.bf16.vlgmr.msra.gmra.mxu0 %vm1172_vm3, %v2120_v2 }
 0x83f   : > { %3265 = vmatpush3.bf16.xpose.msra.mxu0 %v2240_v9  ;;  %3266 = vmatprep.mubr.msk.bf16.mxu0 %vm3405_vm1, %v3404_v3 }
 0x840   : > { %3276 = vmatprep.subr.bf16.mxu0 %v3404_v3 }
 0x846   : > { %3267 = vmatmul.mubr.msk.bf16.vlgmr.msra.gmra.mxu0 %vm1172_vm3, %v2233_v10 }
 0x847   : > { %3280 = vmatprep.mubr.msk.bf16.mxu0 %vm3405_vm1, %v3404_v3 }
 0x883   : > { %v1934_v11 = vpop.f32.mrf.mxu0 }
 0x884   : > { %v1941_v13 = vsel %vm1940_vm8, %v1934_v11, -inf }
 0x885   : > { %1942 = vmax.xlane.f32.xlu0 %v1941_v13  ;;  %v3232_v14 = vpop.f32.mrf.mxu0 }
 0x887   : > { %v1937_v15 = vpop.f32.mrf.mxu0 }
 0x889   : > { %v3233_v17 = vpop.f32.mrf.mxu0 }
 0x8f6   : > { %v2049_v5 = vpop.f32.mrf.mxu0 }
 0x8f7   : > { %v2055_v18 = vsel %vm1940_vm8, %v2049_v5, -inf }
 0x8f8   : > { %2056 = vmax.xlane.f32.xlu1 %v2055_v18  ;;  %v3244_v12 = vpop.f32.mrf.mxu0 }
 0x8fa   : > { %v2052_v19 = vpop.f32.mrf.mxu0 }
 0x8fc   : > { %v3245_v6 = vpop.f32.mrf.mxu0 }
 0x8fe   : > { %v2164_v20 = vpop.f32.mrf.mxu0 }
 0x8ff   : > { %v2170_v16 = vsel %vm1940_vm8, %v2164_v20, -inf }
 0x900   : > { %2171 = vmax.xlane.f32.xlu0 %v2170_v16  ;;  %v3256_v21 = vpop.f32.mrf.mxu0 }
 0x901   : > { %v3339_v21 = vld [vmem:[%s3603_s4] sm:$0xff]  }
 0x902   : > { %v2167_v22 = vpop.f32.mrf.mxu0 }
 0x904   : > { %v3257_v23 = vpop.f32.mrf.mxu0 }
 0x906   : > { %v2276_v24 = vpop.f32.mrf.mxu0 }
 0x907   : > { %v2282_v25 = vsel %vm1940_vm8, %v2276_v24, -inf }
 0x908   : > { %2283 = vmax.xlane.f32.xlu0 %v2282_v25  ;;  %v3268_v26 = vpop.f32.mrf.mxu0 }
 0x90a   : > { %v2279_v27 = vpop.f32.mrf.mxu0 }
 0x90c   : > { %v3269_v28 = vpop.f32.mrf.mxu0 }
 0x90e   : > { %v1943_v29 = vpop.xlane.xlu0 %1942 }
 0x90f   : > { %v1944_v30 = vsub.f32 %v1934_v11, %v1943_v29 }
 0x911   : > { %v1945_v31 = vmul.f32 1.442695, %v1944_v30 }
 0x913   : > { %3366 = vpow2.f32 %v1945_v31 }
 0x920   : > { %v3367_v32 = vpop.eup %3366 }
 0x921   : > { %v1947_v33 = vsel %vm1940_vm8, %v3367_v32, 0.0 }
 0x922   : > { %1948 = vadd.xlane.f32.xlu1 %v1947_v33 }
 0x933   : > { %1954 = vrot.lane.b32.xlu1 %v3822_v52, %s3407_s29 }
 0x981   : > { %v2057_v34 = vpop.xlane.xlu1 %2056 }
 0x982   : > { %v2058_v35 = vsub.f32 %v2049_v5, %v2057_v34 }
 0x984   : > { %v2059_v36 = vmul.f32 1.442695, %v2058_v35 }
 0x986   : > { %3368 = vpow2.f32 %v2059_v36 }
 0x989   : > { %v2172_v37 = vpop.xlane.xlu0 %2171 }
 0x98a   : > { %v2173_v38 = vsub.f32 %v2164_v20, %v2172_v37  ;;  %v3338_v20 = vld [vmem:[%s3603_s4 + $0x8] sm:$0xff]   ;;  %s4085_s4 = sld [smem:[#allocation5_spill]] }
 0x98b   : > { %3277 = vmatpush3.bf16.msra.mxu0 %v3338_v20 }
 0x98c   : > { %v2174_v39 = vmul.f32 1.442695, %v2173_v38  ;;  %3278 = vmatprep.subr.bf16.mxu0 %v3404_v3 }
 0x98e   : > { %3370 = vpow2.f32 %v2174_v39 }
 0x98f   : > { %3279 = vmatpush3.bf16.msra.mxu0 %v3339_v21 }
 0x990   : > { %3292 = vmatprep.subr.bf16.mxu0 %v3404_v3  ;;  %p3073_p5 = scmp.ne.s32.totalorder %s4085_s4, 1 }
 0x991   : > { %v2284_v40 = vpop.xlane.xlu0 %2283  ;;  %s4086_s8 = sld [smem:[#allocation24_spill]] (!%p3073_p5) }
 0x992   : > { %v2285_v43 = vsub.f32 %v2276_v24, %v2284_v40  ;;  %s4087_s6 = sld [smem:[#allocation22_spill]] (!%p3073_p5) }
 0x993   : > { %v3369_v44 = vpop.eup %3368  ;;  %s4090_s9 = sld [smem:[#allocation26_spill]] (!%p3073_p5) }
 0x994   : > { %v2286_v45 = vmul.f32 1.442695, %v2285_v43  ;;  %v2061_v46 = vsel %vm1940_vm8, %v3369_v44, 0.0 }
 0x995   : > { %2062 = vadd.xlane.f32.xlu0 %v2061_v46 }
 0x996   : > { %3372 = vpow2.f32 %v2286_v45 }
 0x99b   : > { %v3371_v47 = vpop.eup %3370 }
 0x99c   : > { %v2176_v48 = vsel %vm1940_vm8, %v3371_v47, 0.0 }
 0x99d   : > { %2177 = vadd.xlane.f32.xlu1 %v2176_v48 }
 0x9a3   : > { %v3373_v49 = vpop.eup %3372 }
 0x9a4   : > { %v2288_v50 = vsel %vm1940_vm8, %v3373_v49, 0.0 }
 0x9a5   : > { %2289 = vadd.xlane.f32.xlu0 %v2288_v50 }
 0x9ab   : > { %v1949_v51 = vpop.xlane.xlu1 %1948 }
 0x9ac   : > { %3374 = vrcp.f32 %v1949_v51 }
 0x9ae   : > { %2182 = vrot.lane.b32.xlu1 %v3824_v54, %s3407_s29  ;;  %s4081_s29 = scalar_lea.vmem %s4007_s11, %s3561_s7 }
 0x9af   : > { %v1955_v53 = vpop.permute.xlu1 %1954  ;;  %v3055_v35 = vld [vmem:[%s4081_s29] ss:$0 sm:$0xff] }
 0x9b0   : > { %v1961_v55 = vsel %vm1959_vm9, %v1955_v53, 0 }
 0x9b1   : > { %3235 = vmatpush3.bf16.msra.mxu1 %v1961_v55 }
 0x9b2   : > { %2294 = vrot.lane.b32.xlu1 %v3824_v54, %s3408_s28  ;;  %3246 = vmatprep.subr.bf16.mxu1 %v3404_v3 }
 0x9b9   : > { %v3375_v56 = vpop.eup %3374 }
 0x9ba   : > { %v1951_v57 = vmul.f32 %v3375_v56, %v3367_v32 }
 0x9bb   : > { %2067 = vrot.lane.b32.xlu0 %v3822_v52, %s3408_s28 }
 0x9bc   : > { %v1952_v58 = vpack.c.bf16 %v1951_v57, %v1951_v57 }
 0x9be   : > { %3237 = vmatmul.mubr.msk.bf16.vlgmr.msra.gmra.mxu1 %vm1940_vm8, %v1952_v58 }
 0x9bf   : > { %3248 = vmatprep.mubr.msk.bf16.mxu1 %vm3405_vm1, %v3404_v3 }
 0xa1e   : > { %v2063_v59 = vpop.xlane.xlu0 %2062 }
 0xa1f   : > { %3376 = vrcp.f32 %v2063_v59  ;;  %v3341_v59 = vld [vmem:[%s3612_s24] sm:$0xff]  }
 0xa26   : > { %v2178_v60 = vpop.xlane.xlu1 %2177 }
 0xa27   : > { %3378 = vrcp.f32 %v2178_v60  ;;  %v3342_v60 = vld [vmem:[%s3622_s22 + $0x18] sm:$0xff]  }
 0xa2a   : > { %v2183_v1 = vpop.permute.xlu1 %2182 }
 0xa2b   : > { %v2188_v4 = vsel %vm1959_vm9, %v2183_v1, 0 }
 0xa2c   : > { %v3377_v61 = vpop.eup %3376 }
 0xa2d   : > { %v2065_v54 = vmul.f32 %v3377_v61, %v3369_v44 }
 0xa2e   : > { %v2290_v62 = vpop.xlane.xlu0 %2289  ;;  %v2295_v8 = vpop.permute.xlu1 %2294 }
 0xa2f   : > { %3380 = vrcp.f32 %v2290_v62  ;;  %v2066_v52 = vpack.c.bf16 %v2065_v54, %v2065_v54  ;;  %v2300_v11 = vsel %vm1959_vm9, %v2295_v8, 0 }
 0xa32   : > { %v2068_v63 = vpop.permute.xlu0 %2067 }
 0xa33   : > { %v2073_v0 = vsel %vm1959_vm9, %v2068_v63, 0 }
 0xa34   : > { %3247 = vmatpush3.bf16.msra.mxu1 %v2073_v0  ;;  %v3379_v2 = vpop.eup %3378 }
 0xa35   : > { %3258 = vmatprep.subr.bf16.mxu1 %v3404_v3  ;;  %v2180_v7 = vmul.f32 %v3379_v2, %v3371_v47 }
 0xa37   : > { %3249 = vmatmul.mubr.msk.bf16.vlgmr.msra.gmra.mxu1 %vm1940_vm8, %v2066_v52  ;;  %v2181_v9 = vpack.c.bf16 %v2180_v7, %v2180_v7 }
 0xa38   : > { %3259 = vmatpush3.bf16.msra.mxu1 %v2188_v4  ;;  %3260 = vmatprep.mubr.msk.bf16.mxu1 %vm3405_vm1, %v3404_v3  ;;  %v3059_v4 = vld [vmem:[%s1069_s1] ss:$0 sm:$0xff] }
 0xa39   : > { %3270 = vmatprep.subr.bf16.mxu1 %v3404_v3 }
 0xa3c   : > { %v3381_v10 = vpop.eup %3380 }
 0xa3d   : > { %v2292_v13 = vmul.f32 %v3381_v10, %v3373_v49  ;;  %v3060_v10 = vld [vmem:[%s1072_s5] ss:$0 sm:$0xff]  ;;  %s4082_s5 = scalar_lea.vmem %s4009_s13, %s3561_s7 }
 0xa3f   : > { %3261 = vmatmul.mubr.msk.bf16.vlgmr.msra.gmra.mxu1 %vm1940_vm8, %v2181_v9  ;;  %v2293_v14 = vpack.c.bf16 %v2292_v13, %v2292_v13 }
 0xa40   : > { %3271 = vmatpush3.bf16.msra.mxu1 %v2300_v11  ;;  %3272 = vmatprep.mubr.msk.bf16.mxu1 %vm3405_vm1, %v3404_v3 }
 0xa41   : > { %3284 = vmatprep.subr.bf16.mxu1 %v3404_v3 }
 0xa47   : > { %3273 = vmatmul.mubr.msk.bf16.vlgmr.msra.gmra.mxu1 %vm1940_vm8, %v2293_v14 }
 0xa48   : > { %3288 = vmatprep.mubr.msk.bf16.mxu1 %vm3405_vm1, %v3404_v3 }
 0xa7e   : > { %v1997_v15 = vpop.f32.mrf.mxu1 }
 0xa7f   : > { %2003 = vst.msk [vmem:[#allocation3] sm:$0xff] %vm1172_vm3, %v1997_v15 }
 0xa80   : > { %v3238_v17 = vpop.f32.mrf.mxu1 }
 0xa81   : > { %v3343_v17 = vld [vmem:[%s3622_s22 + $0x10] sm:$0xff]  }
 0xa82   : > { %v2000_v5 = vpop.f32.mrf.mxu1 }
 0xa83   : > { %v3344_v5 = vld [vmem:[%s3622_s22 + $0x8] sm:$0xff]  }
 0xa84   : > { %v3239_v18 = vpop.f32.mrf.mxu1 }
 0xa85   : > { %v3345_v18 = vld [vmem:[%s3622_s22] sm:$0xff]   ;;  %s4083_s22 = scalar_lea.vmem %s4011_s15, %s3561_s7 }
 0xaf7   : > { %v2109_v12 = vpop.f32.mrf.mxu1 }
 0xaf8   : > { %2116 = vrot.lane.b32.xlu0 %v2109_v12, %s3411_s12  ;;  %v3061_v12 = vld [vmem:[%s4082_s5] ss:$0 sm:$0xff]  ;;  %s4088_s5 = sld [smem:[#allocation23_spill]] (!%p3073_p5) }
 0xaf9   : > { %v3250_v19 = vpop.f32.mrf.mxu1 }
 0xafb   : > { %v2112_v6 = vpop.f32.mrf.mxu1 }
 0xafd   : > { %v3251_v16 = vpop.f32.mrf.mxu1 }
 0xaff   : > { %v2224_v22 = vpop.f32.mrf.mxu1 }
 0xb00   : > { %2230 = vst.msk [vmem:[#allocation3 + $0x8] sm:$0xff] %vm1172_vm3, %v2224_v22 }
 0xb01   : > { %v3262_v23 = vpop.f32.mrf.mxu1 }
 0xb03   : > { %v2227_v24 = vpop.f32.mrf.mxu1 }
 0xb05   : > { %v3263_v25 = vpop.f32.mrf.mxu1 }
 0xb07   : > { %v2336_v26 = vpop.f32.mrf.mxu1 }
 0xb08   : > { %2343 = vrot.lane.b32.xlu1 %v2336_v26, %s3411_s12 }
 0xb09   : > { %v3274_v27 = vpop.f32.mrf.mxu1 }
 0xb0b   : > { %v2339_v28 = vpop.f32.mrf.mxu1 }
 0xb0d   : > { %v3275_v29 = vpop.f32.mrf.mxu1 }
 0xb6a   : > { %v2117_v30 = vpop.permute.xlu0 %2116 }
 0xb6b   : > { %2119 = vst.msk [vmem:[#allocation3] sm:$0xff] %vm1398_vm7, %v2117_v30 }
 0xb72   : > { %v2347_v32 = vld [vmem:[#allocation3] sm:$0xff] }
 0xb7a   : > { %v2344_v31 = vpop.permute.xlu1 %2343 }
 0xb7b   : > { %2346 = vst.msk [vmem:[#allocation3 + $0x8] sm:$0xff] %vm1398_vm7, %v2344_v31 }
 0xb82   : > { %v2348_v33 = vld [vmem:[#allocation3 + $0x8] sm:$0xff] }
 0xb83   : > { %v2353_v34 = vpack.c.bf16 %v2348_v33, %v2347_v32 }
 0xb85   : > { %3281 = vmatmul.mubr.msk.bf16.vlgmr.msra.gmra.mxu0 %vm1118_vm2, %v2353_v34 }
 0xb86   : > { %3300 = vmatprep.mubr.msk.bf16.mxu0 %vm3405_vm1, %v3404_v3  ;;  %3293 = vmatpush3.bf16.msra.mxu0 %v3342_v60 }
 0xb87   : > { %3294 = vmatprep.subr.bf16.mxu0 %v3404_v3 }
 0xb8a   : > { %3295 = vmatpush3.bf16.msra.mxu0 %v3343_v17 }
 0xb8b   : > { %3296 = vmatprep.subr.bf16.mxu0 %v3404_v3 }
 0xb8e   : > { %3297 = vmatpush3.bf16.msra.mxu0 %v3344_v5 }
 0xb8f   : > { %3298 = vmatprep.subr.bf16.mxu0 %v3404_v3 }
 0xb92   : > { %3299 = vmatpush3.bf16.msra.mxu0 %v3345_v18 }
 0xc45   : > { %v2410_v36 = vpop.f32.mrf.mxu0 }
 0xc46   : > { %v2411_v37 = vadd.f32 %v3055_v35, %v2410_v36 }
 0xc47   : > { %v3282_v38 = vpop.f32.mrf.mxu0 }
 0xc48   : > { %v2417_v39 = vadd.f32 %v2411_v37, %v3808_v41 }
 0xc49   : > { %v2413_v40 = vpop.f32.mrf.mxu0 }
 0xc4a   : > { %v2414_v43 = vadd.f32 %v3055_v35, %v2413_v40  ;;  %v2421_v44 = vsel %vm1118_vm2, %v2417_v39, 0.0 }
 0xc4b   : > { %2422 = vadd.xlane.f32.xlu0 %v2421_v44  ;;  %v3283_v45 = vpop.f32.mrf.mxu0 }
 0xc4c   : > { %v2418_v46 = vadd.f32 %v2414_v43, %v3810_v42  ;;  %v3340_v42 = vld [vmem:[%s3612_s24 + $0x8] sm:$0xff]  }
 0xc4d   : > { %3285 = vmatpush3.bf16.msra.mxu1 %v3340_v42 }
 0xc4e   : > { %v2424_v47 = vsel %vm1118_vm2, %v2418_v46, 0.0  ;;  %3286 = vmatprep.subr.bf16.mxu1 %v3404_v3  ;;  %v3065_v3 = vld [vmem:[%s4083_s22] ss:$0 sm:$0xff]  ;;  %s4089_s22 = sld [smem:[#allocation25_spill]] (!%p3073_p5) }
 0xc4f   : > { %2425 = vadd.xlane.f32.xlu1 %v2424_v47 }
 0xc51   : > { %3287 = vmatpush3.bf16.msra.mxu1 %v3341_v59 }
 0xcd4   : > { %v2423_v48 = vpop.xlane.xlu0 %2422 }
 0xcd5   : > { %v2427_v49 = vmul.f32 0.03125, %v2423_v48 }
 0xcd7   : > { %v2429_v50 = vsub.f32 %v2417_v39, %v2427_v49 }
 0xcd8   : > { %v2426_v51 = vpop.xlane.xlu1 %2425 }
 0xcd9   : > { %v2428_v53 = vmul.f32 0.03125, %v2426_v51  ;;  %v2431_v41 = vmul.f32 %v2429_v50, %v2429_v50 }
 0xcdb   : > { %v2430_v55 = vsub.f32 %v2418_v46, %v2428_v53  ;;  %v2433_v56 = vsel %vm1118_vm2, %v2431_v41, 0.0 }
 0xcdc   : > { %2434 = vadd.xlane.f32.xlu0 %v2433_v56  ;;  %v3071_v56 = vld [vmem:[%s1075_s3] ss:$0 sm:$0xff] }
 0xcdd   : > { %v2432_v57 = vmul.f32 %v2430_v55, %v2430_v55 }
 0xcdf   : > { %v2436_v58 = vsel %vm1118_vm2, %v2432_v57, 0.0 }
 0xce0   : > { %2437 = vadd.xlane.f32.xlu0 %v2436_v58  ;;  %v3072_v58 = vld [vmem:[%s4084_s10] ss:$0 sm:$0xff] }
 0xd65   : > { %v2435_v61 = vpop.xlane.xlu0 %2434 }
 0xd66   : > { %v2439_v62 = vmul.f32 0.03125, %v2435_v61 }
 0xd68   : > { %v2441_v54 = vadd.f32 1e-05, %v2439_v62 }
 0xd69   : > { %v2438_v63 = vpop.xlane.xlu0 %2437 }
 0xd6a   : > { %3382 = vrsqrt.f32 %v2441_v54  ;;  %v2440_v0 = vmul.f32 0.03125, %v2438_v63 }
 0xd6c   : > { %v2442_v1 = vadd.f32 1e-05, %v2440_v0 }
 0xd6e   : > { %3384 = vrsqrt.f32 %v2442_v1 }
 0xd77   : > { %v3383_v52 = vpop.eup %3382 }
 0xd78   : > { %v2445_v2 = vmul.f32 %v3383_v52, %v2429_v50 }
 0xd7a   : > { %v2453_v9 = vmul.f32 %v3059_v4, %v2445_v2 }
 0xd7b   : > { %v3385_v7 = vpop.eup %3384 }
 0xd7c   : > { %v2446_v8 = vmul.f32 %v3385_v7, %v2430_v55  ;;  %v2461_v13 = vadd.f32 %v3060_v10, %v2453_v9 }
 0xd7e   : > { %v2454_v11 = vmul.f32 %v3059_v4, %v2446_v8 }
 0xd80   : > { %v2462_v14 = vadd.f32 %v3060_v10, %v2454_v11 }
 0xd82   : > { %v2467_v15 = vpack.c.bf16 %v2462_v14, %v2461_v13 }
 0xd84   : > { %3289 = vmatmul.mubr.msk.bf16.vlgmr.msra.gmra.mxu1 %vm1118_vm2, %v2467_v15 }
 0xe44   : > { %v2524_v19 = vpop.f32.mrf.mxu1 }
 0xe45   : > { %v2525_v20 = vadd.f32 %v3061_v12, %v2524_v19 }
 0xe46   : > { %v3290_v6 = vpop.f32.mrf.mxu1 }
 0xe47   : > { %v2531_v23 = vmax.f32 %v2525_v20, 0.0 }
 0xe48   : > { %v2527_v16 = vpop.f32.mrf.mxu1 }
 0xe49   : > { %v2528_v21 = vadd.f32 %v3061_v12, %v2527_v16 }
 0xe4a   : > { %v3291_v22 = vpop.f32.mrf.mxu1 }
 0xe4b   : > { %v2532_v24 = vmax.f32 %v2528_v21, 0.0 }
 0xe4d   : > { %v2541_v25 = vpack.c.bf16 %v2532_v24, %v2531_v23 }
 0xe4f   : > { %3301 = vmatmul.mubr.msk.bf16.vlgmr.msra.gmra.mxu0 %vm2573_vm10, %v2541_v25 }
 0xf0f   : > { %v2611_v26 = vpop.f32.mrf.mxu0 }
 0xf10   : > { %v2612_v27 = vadd.f32 %v3065_v3, %v2611_v26 }
 0xf11   : > { %v3302_v28 = vpop.f32.mrf.mxu0 }
 0xf12   : > { %v2618_v29 = vadd.f32 %v2612_v27, %v2461_v13 }
 0xf13   : > { %v2614_v30 = vpop.f32.mrf.mxu0 }
 0xf14   : > { %v2615_v31 = vadd.f32 %v3065_v3, %v2614_v30  ;;  %v2622_v32 = vsel %vm1118_vm2, %v2618_v29, 0.0 }
 0xf15   : > { %2623 = vadd.xlane.f32.xlu1 %v2622_v32  ;;  %v3303_v33 = vpop.f32.mrf.mxu0 }
 0xf16   : > { %v2619_v34 = vadd.f32 %v2615_v31, %v2462_v14 }
 0xf18   : > { %v2625_v35 = vsel %vm1118_vm2, %v2619_v34, 0.0 }
 0xf19   : > { %2626 = vadd.xlane.f32.xlu0 %v2625_v35 }
 0xf9e   : > { %v2624_v36 = vpop.xlane.xlu1 %2623 }
 0xf9f   : > { %v2628_v37 = vmul.f32 0.03125, %v2624_v36 }
 0xfa1   : > { %v2630_v38 = vsub.f32 %v2618_v29, %v2628_v37 }
 0xfa2   : > { %v2627_v39 = vpop.xlane.xlu0 %2626 }
 0xfa3   : > { %v2629_v40 = vmul.f32 0.03125, %v2627_v39  ;;  %v2632_v43 = vmul.f32 %v2630_v38, %v2630_v38 }
 0xfa5   : > { %v2631_v44 = vsub.f32 %v2619_v34, %v2629_v40  ;;  %v2634_v45 = vsel %vm1118_vm2, %v2632_v43, 0.0 }
 0xfa6   : > { %2635 = vadd.xlane.f32.xlu1 %v2634_v45 }
 0xfa7   : > { %v2633_v46 = vmul.f32 %v2631_v44, %v2631_v44 }
 0xfa9   : > { %v2637_v47 = vsel %vm1118_vm2, %v2633_v46, 0.0 }
 0xfaa   : > { %2638 = vadd.xlane.f32.xlu0 %v2637_v47 }
0x102f   : > { %v2636_v48 = vpop.xlane.xlu1 %2635 }
0x1030   : > { %v2640_v49 = vmul.f32 0.03125, %v2636_v48 }
0x1032   : > { %v2642_v50 = vadd.f32 1e-05, %v2640_v49 }
0x1033   : > { %v2639_v51 = vpop.xlane.xlu0 %2638 }
0x1034   : > { %3386 = vrsqrt.f32 %v2642_v50  ;;  %v2641_v53 = vmul.f32 0.03125, %v2639_v51 }
0x1036   : > { %v2643_v41 = vadd.f32 1e-05, %v2641_v53 }
0x1038   : > { %3388 = vrsqrt.f32 %v2643_v41 }
0x1041   : > { %v3387_v55 = vpop.eup %3386 }
0x1042   : > { %v2646_v57 = vmul.f32 %v3387_v55, %v2630_v38 }
0x1044   : > { %v2654_v42 = vmul.f32 %v3071_v56, %v2646_v57 }
0x1045   : > { %v3389_v59 = vpop.eup %3388 }
0x1046   : > { %v2662_v60 = vadd.f32 %v3072_v58, %v2654_v42  ;;  %v2647_v61 = vmul.f32 %v3389_v59, %v2631_v44 }
0x1048   : > { %2664 = vst.msk [vmem:[#allocation2] sm:$0xff] %vm1118_vm2, %v2662_v60  ;;  %v2655_v62 = vmul.f32 %v3071_v56, %v2647_v61  ;;  %2669 = sbr.rel (%p3073_p5) target bundleno = 4687 (0x124f), region = 132 }
0x104a   : > { %v2663_v54 = vadd.f32 %v3072_v58, %v2655_v62 }
0x104c   : > { %2665 = vst.msk [vmem:[#allocation2 + $0x8] sm:$0xff] %vm1118_vm2, %v2663_v54 }
0x104d   : > { %v2672_v63 = vsel %vm1118_vm2, %v2662_v60, 0.0  ;;  %v2675_v0 = vsel %vm1118_vm2, %v2663_v54, 0.0  ;;  %v3390_v14 = vld [vmem:[%s4086_s8 + $0x8] sm:$0xff]   ;;  %v3412_v15 = vmov 0.0   ;;  %vm3413_vm11 = vmmov 0   ;;  %v3391_v17 = vld [vmem:[%s4086_s8] sm:$0xff]  }
0x104e   : > { %2673 = vadd.xlane.f32.xlu0 %v2672_v63  ;;  %3304 = vmatprep.subr.bf16.mxu0 %v3412_v15  ;;  %v3074_v22 = vld [vmem:[%s4087_s6] ss:$0 sm:$0xff] }
0x104f   : > { %3308 = vmatprep.mubr.msk.bf16.mxu0 %vm3413_vm11, %v3412_v15  ;;  %3305 = vmatpush3.bf16.msra.mxu0 %v3390_v14  ;;  %v3075_v3 = vld [vmem:[%s4088_s5] ss:$0 sm:$0xff] }
0x1050   : > { %3306 = vmatprep.subr.bf16.mxu0 %v3412_v15  ;;  %v3076_v30 = vld [vmem:[%s4089_s22] ss:$0 sm:$0xff] }
0x1052   : > { %2676 = vadd.xlane.f32.xlu0 %v2675_v0 }
0x1053   : > { %3307 = vmatpush3.bf16.msra.mxu0 %v3391_v17 }
0x10d7   : > { %v2674_v1 = vpop.xlane.xlu0 %2673 }
0x10d8   : > { %v2678_v52 = vmul.f32 0.03125, %v2674_v1 }
0x10da   : > { %v2680_v2 = vsub.f32 %v2662_v60, %v2678_v52 }
0x10db   : > { %v2677_v4 = vpop.xlane.xlu0 %2676 }
0x10dc   : > { %v2679_v7 = vmul.f32 0.03125, %v2677_v4  ;;  %v2682_v8 = vmul.f32 %v2680_v2, %v2680_v2 }
0x10de   : > { %v2681_v9 = vsub.f32 %v2663_v54, %v2679_v7  ;;  %v2684_v10 = vsel %vm1118_vm2, %v2682_v8, 0.0 }
0x10df   : > { %2685 = vadd.xlane.f32.xlu1 %v2684_v10 }
0x10e0   : > { %v2683_v11 = vmul.f32 %v2681_v9, %v2681_v9 }
0x10e2   : > { %v2687_v13 = vsel %vm1118_vm2, %v2683_v11, 0.0 }
0x10e3   : > { %2688 = vadd.xlane.f32.xlu1 %v2687_v13 }
0x1168   : > { %v2686_v5 = vpop.xlane.xlu1 %2685 }
0x1169   : > { %v2690_v18 = vmul.f32 0.03125, %v2686_v5 }
0x116b   : > { %v2692_v12 = vadd.f32 1e-05, %v2690_v18 }
0x116c   : > { %v2689_v19 = vpop.xlane.xlu1 %2688 }
0x116d   : > { %3392 = vrsqrt.f32 %v2692_v12  ;;  %v2691_v6 = vmul.f32 0.03125, %v2689_v19 }
0x116f   : > { %v2693_v20 = vadd.f32 1e-05, %v2691_v6 }
0x1171   : > { %3394 = vrsqrt.f32 %v2693_v20 }
0x117a   : > { %v3393_v16 = vpop.eup %3392 }
0x117b   : > { %v2696_v21 = vmul.f32 %v3393_v16, %v2680_v2 }
0x117d   : > { %v2704_v25 = vmul.f32 %v3074_v22, %v2696_v21 }
0x117e   : > { %v3395_v23 = vpop.eup %3394 }
0x117f   : > { %v2697_v24 = vmul.f32 %v3395_v23, %v2681_v9  ;;  %v2712_v27 = vadd.f32 %v3075_v3, %v2704_v25 }
0x1181   : > { %v2705_v26 = vmul.f32 %v3074_v22, %v2697_v24 }
0x1183   : > { %v2713_v28 = vadd.f32 %v3075_v3, %v2705_v26 }
0x1185   : > { %v2718_v29 = vpack.c.bf16 %v2713_v28, %v2712_v27 }
0x1187   : > { %3309 = vmatmul.mubr.msk.bf16.vlgmr.msra.gmra.mxu0 %vm1118_vm2, %v2718_v29 }
0x1247   : > { %v2775_v31 = vpop.f32.mrf.mxu0 }
0x1248   : > { %v2776_v32 = vadd.f32 %v3076_v30, %v2775_v31 }
0x1249   : > { %v3310_v33 = vpop.f32.mrf.mxu0 }
0x124a   : > { %2782 = vst [vmem:[%s4090_s9] sm:$0xff] %v2776_v32 }
0x124b   : > { %v2778_v34 = vpop.f32.mrf.mxu0 }
0x124c   : > { %v2779_v35 = vadd.f32 %v3076_v30, %v2778_v34 }
0x124d   : > { %v3311_v36 = vpop.f32.mrf.mxu0 }
0x124e   : > { %2783 = vst [vmem:[%s4090_s9 + $0x8] sm:$0xff] %v2779_v35 }
0x124f PF: > { %s4091_s4 = sld [smem:[#allocation4_spill]] }
0x1255   : > { %s36_s27 = sadd.s32 1, %s4091_s4  }
0x1256   : > { %p33_p6 = scmp.ge.s32.totalorder %s36_s27, 4  }
0x1258   :  { %35 = sbr.rel (!%p33_p6) target bundleno = 19 (0x13), region = 215 }

</bundles_post_ra>
